<compile_context>
chip_gen: v5e
topology: v5e:2x2
jax: 0.10.0
libtpu: 0.0.40
codegen_flags: <defaults>
</compile_context>

<pallas_src>
import functools

import jax
import jax.numpy as jnp
from jax.experimental import pallas as pl
from jax.experimental.pallas import tpu as pltpu


def _round_up(x: int, m: int) -> int:
    return ((x + m - 1) // m) * m


# ----------------------- tiled GEMM + bias (projection) ----------------------

def _matmul_bias_kernel(x_ref, w_ref, b_ref, o_ref, acc_ref):
    k = pl.program_id(2)

    @pl.when(k == 0)
    def _init():
        acc_ref[...] = jnp.zeros_like(acc_ref)

    acc_ref[...] += jnp.dot(x_ref[...], w_ref[...],
                            preferred_element_type=jnp.float32)

    @pl.when(k == pl.num_programs(2) - 1)
    def _finalize():
        o_ref[...] = (acc_ref[...] + b_ref[...]).astype(o_ref.dtype)


def matmul_bias(x, w, b, *, out_dtype=jnp.bfloat16, tm=128, tn=256, tk=512):
    """out = x @ w + b. bf16 operands / f32 accumulation, real M/N/K grid."""
    m, k = x.shape
    k2, n = w.shape
    assert k2 == k and b.shape == (n,)
    tm = min(tm, _round_up(m, 8))
    tn = min(tn, _round_up(n, 128))
    tk = min(tk, _round_up(k, 128))
    mp, np_, kp = _round_up(m, tm), _round_up(n, tn), _round_up(k, tk)
    xp = jnp.pad(x, ((0, mp - m), (0, kp - k))).astype(jnp.bfloat16)
    wp = jnp.pad(w, ((0, kp - k), (0, np_ - n))).astype(jnp.bfloat16)
    bp = jnp.pad(b, (0, np_ - n)).astype(jnp.float32)[None, :]
    out = pl.pallas_call(
        _matmul_bias_kernel,
        out_shape=jax.ShapeDtypeStruct((mp, np_), out_dtype),
        grid_spec=pltpu.PrefetchScalarGridSpec(
            num_scalar_prefetch=0,
            grid=(mp // tm, np_ // tn, kp // tk),
            in_specs=[
                pl.BlockSpec((tm, tk), lambda i, j, kk: (i, kk)),
                pl.BlockSpec((tk, tn), lambda i, j, kk: (kk, j)),
                pl.BlockSpec((1, tn), lambda i, j, kk: (0, j)),
            ],
            out_specs=pl.BlockSpec((tm, tn), lambda i, j, kk: (i, j)),
            scratch_shapes=[pltpu.VMEM((tm, tn), jnp.float32)],
        ),
        compiler_params=pltpu.CompilerParams(
            dimension_semantics=("parallel", "parallel", "arbitrary"),
            vmem_limit_bytes=32 * 1024 * 1024),
    )(xp, wp, bp)
    return out[:m, :n]


# ----------------------- fused Conv1d + GLU (channels-last) ------------------

def _conv1d_glu_kernel(x_ref, w_ref, b_ref, o_ref, *, ksize, stride, l_out, half):
    """out[l, n, :] = GLU( sum_j x_padded[l*stride + j, n, :] @ W_j + b ).

    x_ref: (stride, L_r, TN, C_in_pad) bf16, de-interleaved by stride so tap j
           lives at x_ref[j % stride, l + j // stride]  (contiguous reads only).
    w_ref: (ksize, C_in_pad, C_out_pad) bf16, columns packed [a | g], half 128-aligned.
    """
    bias = b_ref[...].astype(jnp.float32)                    # (1, C_out_pad)
    for l in range(l_out):        # static unroll: l_out is the (small) subsampled batch axis
        acc = None
        for j in range(ksize):
            lhs = x_ref[j % stride, l + j // stride, :, :]    # (TN, C_in_pad) bf16
            part = jnp.dot(lhs, w_ref[j, :, :],
                           preferred_element_type=jnp.float32)  # MXU, f32 accumulation
            acc = part if acc is None else acc + part
        acc = acc + bias
        a, g = acc[:, :half], acc[:, half:]                   # lane-aligned GLU split
        o_ref[l, :, :] = (a * jax.nn.sigmoid(g)).astype(o_ref.dtype)


def conv1d_glu(x_lnc, w_taps, bias_row, *, ksize, stride, batch_tile):
    """Fused PyTorch-semantics Conv1d + GLU, channels-last.

    x_lnc:    (L, N, C_in_pad) bf16 -- conv length L on axis 0, conv batch N on axis 1
              (multiple of batch_tile), channels (lane axis, multiple of 128) last.
    w_taps:   (ksize, C_in_pad, C_out_pad) bf16 packed per-tap weight matrices.
    bias_row: (1, C_out_pad) f32 packed bias.
    Returns   (L_out, N, C_out_pad // 2) bf16.
    """
    l_in, n, c_in_pad = x_lnc.shape
    k2, c_in_pad_w, c_out_pad = w_taps.shape
    assert k2 == ksize and c_in_pad_w == c_in_pad and n % batch_tile == 0
    half = c_out_pad // 2
    pad = ksize // 2
    l_padded = l_in + 2 * pad
    l_out = (l_padded - ksize) // stride + 1
    l_r = max(l_out + (ksize - 1) // stride, -(-l_padded // stride))
    l_total = stride * l_r
    # conv zero-padding + de-interleave by stride (1x data, no im2col duplication)
    x_full = jnp.pad(x_lnc, ((pad, l_total - l_in - pad), (0, 0), (0, 0)))
    x_di = jnp.transpose(x_full.reshape(l_r, stride, n, c_in_pad), (1, 0, 2, 3))

    kernel = functools.partial(_conv1d_glu_kernel, ksize=ksize, stride=stride,
                               l_out=l_out, half=half)
    return pl.pallas_call(
        kernel,
        out_shape=jax.ShapeDtypeStruct((l_out, n, half), jnp.bfloat16),
        grid_spec=pltpu.PrefetchScalarGridSpec(
            num_scalar_prefetch=0,
            grid=(n // batch_tile,),
            in_specs=[
                pl.BlockSpec((stride, l_r, batch_tile, c_in_pad),
                             lambda i: (0, 0, i, 0)),
                pl.BlockSpec((ksize, c_in_pad, c_out_pad), lambda i: (0, 0, 0)),
                pl.BlockSpec((1, c_out_pad), lambda i: (0, 0)),
            ],
            out_specs=pl.BlockSpec((l_out, batch_tile, half), lambda i: (0, i, 0)),
        ),
        compiler_params=pltpu.CompilerParams(
            dimension_semantics=("parallel",),           # shards T-tiles across v7x cores
            vmem_limit_bytes=32 * 1024 * 1024),
    )(x_di, w_taps, bias_row)


def _prep_conv_weights(weight, bias, c_in_pad):
    """PyTorch Conv1d weight (C_out, C_in, K) -> per-tap (K, C_in_pad, C_out_pad) bf16,
    output columns packed [a-half | g-half] with each half padded to a 128 multiple."""
    c_out, c_in, k = weight.shape
    half = c_out // 2
    half_pad = _round_up(half, 128)
    w_taps = jnp.transpose(weight, (2, 1, 0))                  # (K, C_in, C_out)
    pad_ci, pad_ho = c_in_pad - c_in, half_pad - half
    wa = jnp.pad(w_taps[:, :, :half], ((0, 0), (0, pad_ci), (0, pad_ho)))
    wg = jnp.pad(w_taps[:, :, half:], ((0, 0), (0, pad_ci), (0, pad_ho)))
    w_packed = jnp.concatenate([wa, wg], axis=-1).astype(jnp.bfloat16)
    ba = jnp.pad(bias[:half], (0, pad_ho))
    bg = jnp.pad(bias[half:], (0, pad_ho))
    b_packed = jnp.concatenate([ba, bg]).astype(jnp.float32)[None, :]
    return w_packed, b_packed, half_pad


# --------------------------------- CNNAdapter --------------------------------

class CNNAdapterPallas:
    """JAX/Pallas port of multimodalhugs CNNAdapter (forward semantics)."""

    def __init__(self, input_dim, output_dim, factor, kernel_sizes=(3, 3),
                 strides=(2, 2), *, key):
        if isinstance(kernel_sizes, int):
            kernel_sizes = (kernel_sizes,)
        if isinstance(strides, int):
            strides = [strides] * len(kernel_sizes)
        if len(strides) != len(kernel_sizes):
            raise ValueError("Length of `strides` must match `kernel_sizes`.")
        self.kernel_sizes = list(kernel_sizes)
        self.strides = list(strides)
        self.output_dim = output_dim

        d_pad = _round_up(output_dim, 128)   # lane-padded channel width entering the conv stack
        self.chan_pad0 = d_pad

        keys = jax.random.split(key, 2 * len(kernel_sizes) + 2)
        ki = 0
        # NOTE: init is 0.02*normal (not PyTorch kaiming); only the forward math matters here.
        if input_dim != output_dim:
            w = 0.02 * jax.random.normal(keys[ki], (output_dim, input_dim), jnp.float32); ki += 1
            b = 0.02 * jax.random.normal(keys[ki], (output_dim,), jnp.float32); ki += 1
            self.proj_w_raw, self.proj_b_raw = w, b
            # pre-transposed + column-padded so the GEMM writes lane-padded channels directly
            self.proj_w = jnp.pad(w.T, ((0, 0), (0, d_pad - output_dim)))
            self.proj_b = jnp.pad(b, (0, d_pad - output_dim))
            input_dim = output_dim
        else:
            self.proj_w_raw = self.proj_b_raw = None
            self.proj_w = self.proj_b = None

        self.conv_raw = []      # raw f32 params (for the pure-JAX reference check)
        self.conv_params = []   # padded/packed bf16 params consumed by the kernels
        in_ch, in_ch_pad = input_dim, d_pad
        for i, ks in enumerate(self.kernel_sizes):
            out_ch = output_dim * 2 if i == len(self.kernel_sizes) - 1 else output_dim * factor
            w = 0.02 * jax.random.normal(keys[ki], (out_ch, in_ch, ks), jnp.float32); ki += 1
            b = 0.02 * jax.random.normal(keys[ki], (out_ch,), jnp.float32); ki += 1
            self.conv_raw.append((w, b))
            w_taps, b_row, half_pad = _prep_conv_weights(w, b, in_ch_pad)
            self.conv_params.append((w_taps, b_row, ks, self.strides[i]))
            in_ch, in_ch_pad = out_ch // 2, half_pad

    def get_out_mask(self, mask):
        lengths = jnp.sum(mask, axis=1).astype(jnp.int32)
        max_len = int(mask.shape[1])
        for s in self.strides:
            lengths = (lengths - 1) // s + 1
            max_len = (max_len - 1) // s + 1
        # TODO(synk): reference uses data-dependent max_len via .item() (host sync / un-jittable
        # dynamic shape); here it is the static T-derived upper bound, extra tail columns are 0.
        new_mask = jnp.arange(max_len)[None, :] < lengths[:, None]
        return new_mask.astype(mask.dtype)

    def __call__(self, x, mask):
        # x: (T, B, C) -- reference semantics: conv batch = T, conv length = B.
        t, b_dim, c = x.shape
        h = jnp.swapaxes(x, 0, 1)                               # (B, T, C)
        if self.proj_w is not None:
            h = matmul_bias(h.reshape(b_dim * t, c), self.proj_w, self.proj_b)
            h = h.reshape(b_dim, t, self.chan_pad0)             # (B, T, D_pad) bf16
        else:
            h = jnp.pad(h, ((0, 0), (0, 0), (0, self.chan_pad0 - c))).astype(jnp.bfloat16)
        # pad the conv batch (T) to a multiple of the per-step batch tile
        batch_tile = min(128, _round_up(t, 8))
        t_pad = _round_up(t, batch_tile)
        h = jnp.pad(h, ((0, 0), (0, t_pad - t), (0, 0)))        # layout (L=B, N=T_pad, C_pad)
        for w_taps, b_row, ks, st in self.conv_params:
            h = conv1d_glu(h, w_taps, b_row, ksize=ks, stride=st, batch_tile=batch_tile)
        # h: (B_out, T_pad, half_pad_last) -> (T, B_out, output_dim) like the reference
        out = jnp.transpose(h, (1, 0, 2))[:t, :, :self.output_dim].astype(jnp.float32)
        return out, self.get_out_mask(mask)


# --------------------- pure-JAX f32 reference (for checking) -----------------

def _reference_forward(x, adapter):
    """Direct re-implementation of the PyTorch CNNAdapter forward in plain JAX (f32)."""
    h = jnp.swapaxes(x, 0, 1)                                   # (B, T, C)
    if adapter.proj_w_raw is not None:
        h = h @ adapter.proj_w_raw.T + adapter.proj_b_raw       # (B, T, D)
    h = jnp.transpose(h, (1, 2, 0))                             # (T, D, B)
    for (w, b), k, s in zip(adapter.conv_raw, adapter.kernel_sizes, adapter.strides):
        pad = k // 2
        _, _, l_ = h.shape
        hp = jnp.pad(h, ((0, 0), (0, 0), (pad, pad)))
        l_out = (l_ + 2 * pad - k) // s + 1
        cols = jnp.stack([hp[:, :, j: j + s * (l_out - 1) + 1: s] for j in range(k)],
                         axis=-1)                               # (T, C_in, L_out, K)
        out = jnp.einsum('nclj,ocj->nol', cols, w) + b[None, :, None]
        half = out.shape[1] // 2
        h = out[:, :half, :] * jax.nn.sigmoid(out[:, half:, :])
    return jnp.transpose(h, (0, 2, 1))                          # (T, B_out, D)


# ------------------------------------ main ------------------------------------

if __name__ == "__main__":
    T, B, C_in, C_out = 4, 8, 16, 32
    key = jax.random.PRNGKey(0)
    k_x, k_params = jax.random.split(key)

    x = jax.random.normal(k_x, (T, B, C_in), dtype=jnp.float32)
    lengths = jnp.array([4, 4, 3, 4, 2, 4, 4, 1], dtype=jnp.int32)          # (B,)
    mask = (jnp.arange(T)[None, :] < lengths[:, None]).astype(jnp.int32)    # (B, T)

    adapter = CNNAdapterPallas(C_in, C_out, factor=3,
                               kernel_sizes=[3, 3], strides=[2, 2], key=k_params)

    fwd = jax.jit(adapter.__call__)          # whole forward is now jittable (static mask shape)
    out, out_mask = fwd(x, mask)
    jax.block_until_ready(out)
    jax.block_until_ready(out_mask)

    # shape sanity: out is (T, B_subsampled, C_out); mask is (B, T_subsampled)
    assert out.shape[0] == T and out.shape[2] == C_out
    assert out_mask.shape[0] == B

    # numerics vs the pure-JAX f32 reference (bf16 storage -> loose tolerance)
    ref = _reference_forward(x, adapter)
    assert ref.shape == out.shape, (ref.shape, out.shape)
    err = float(jnp.max(jnp.abs(out - ref)))
    scale = float(jnp.max(jnp.abs(ref)))
    assert err <= 1e-3 + 0.05 * scale, f"mismatch: max_abs_err={err}, ref_scale={scale}"

    print("KERNEL_OK")
</pallas_src>

<mosaic_0001>
module attributes {stable_mosaic.version = 11 : i64} {
  func.func @_matmul_bias_kernel(%arg0: i32, %arg1: i32, %arg2: i32, %arg3: memref<32x128xbf16, #tpu.memory_space<vmem>>, %arg4: memref<128x128xbf16, #tpu.memory_space<vmem>>, %arg5: memref<1x128xf32, #tpu.memory_space<vmem>>, %arg6: memref<32x128xbf16, #tpu.memory_space<vmem>>, %arg7: memref<32x128xf32, #tpu.memory_space<vmem>>) attributes {dimension_semantics = [#tpu.dimension_semantics<parallel>, #tpu.dimension_semantics<parallel>, #tpu.dimension_semantics<arbitrary>], iteration_bounds = array<i64: 1, 1, 1>, scalar_prefetch = 0 : i64, scratch_operands = 1 : i64, tpu.core_type = #tpu.core_type<tc>, window_params = [{transform_indices = @transform_0, window_bounds = array<i64: 32, 128>}, {transform_indices = @transform_1, window_bounds = array<i64: 128, 128>}, {transform_indices = @transform_2, window_bounds = array<i64: 1, 128>}, {transform_indices = @transform_3, window_bounds = array<i64: 32, 128>}]} {
    %c0_i32 = arith.constant 0 : i32
    %0 = arith.cmpi eq, %arg2, %c0_i32 : i32
    %1 = arith.extui %0 : i1 to i32
    %c0_i32_0 = arith.constant 0 : i32
    %2 = arith.cmpi ne, %1, %c0_i32_0 : i32
    scf.if %2 {
      %cst_10 = arith.constant 0.000000e+00 : f32
      %12 = vector.broadcast %cst_10 : f32 to vector<32x128xf32>
      %c0_11 = arith.constant 0 : index
      %c0_12 = arith.constant 0 : index
      %13 = vector.load %arg7[%c0_11, %c0_12] : memref<32x128xf32, #tpu.memory_space<vmem>>, vector<32x128xf32>
      tpu.vector_store %arg7[%c0_11, %c0_12], %12 {strides = array<i32>} : memref<32x128xf32, #tpu.memory_space<vmem>>, vector<32x128xf32>,
    } else {
    }
    %c0 = arith.constant 0 : index
    %c0_1 = arith.constant 0 : index
    %3 = vector.load %arg7[%c0, %c0_1] : memref<32x128xf32, #tpu.memory_space<vmem>>, vector<32x128xf32>
    %c0_2 = arith.constant 0 : index
    %c0_3 = arith.constant 0 : index
    %4 = vector.load %arg3[%c0_2, %c0_3] : memref<32x128xbf16, #tpu.memory_space<vmem>>, vector<32x128xbf16>
    %c0_4 = arith.constant 0 : index
    %c0_5 = arith.constant 0 : index
    %5 = vector.load %arg4[%c0_4, %c0_5] : memref<128x128xbf16, #tpu.memory_space<vmem>>, vector<128x128xbf16>
    %cst = arith.constant dense<0.000000e+00> : vector<32x128xf32>
    %6 = tpu.matmul %4, %5, %cst {dimension_numbers = #tpu.dot_dimension_numbers<[1], [0], [0], [1], [0, 0, 1, 1], [], []>} : vector<32x128xbf16>, vector<128x128xbf16>, vector<32x128xf32> -> vector<32x128xf32>
    %7 = arith.addf %3, %6 : vector<32x128xf32>
    %c0_6 = arith.constant 0 : index
    %c0_7 = arith.constant 0 : index
    %8 = vector.load %arg7[%c0_6, %c0_7] : memref<32x128xf32, #tpu.memory_space<vmem>>, vector<32x128xf32>
    tpu.vector_store %arg7[%c0_6, %c0_7], %7 {strides = array<i32>} : memref<32x128xf32, #tpu.memory_space<vmem>>, vector<32x128xf32>,
    %c0_i32_8 = arith.constant 0 : i32
    %9 = arith.cmpi eq, %arg2, %c0_i32_8 : i32
    %10 = arith.extui %9 : i1 to i32
    %c0_i32_9 = arith.constant 0 : i32
    %11 = arith.cmpi ne, %10, %c0_i32_9 : i32
    scf.if %11 {
      %c0_10 = arith.constant 0 : index
      %c0_11 = arith.constant 0 : index
      %12 = vector.load %arg7[%c0_10, %c0_11] : memref<32x128xf32, #tpu.memory_space<vmem>>, vector<32x128xf32>
      %c0_12 = arith.constant 0 : index
      %c0_13 = arith.constant 0 : index
      %13 = vector.load %arg5[%c0_12, %c0_13] : memref<1x128xf32, #tpu.memory_space<vmem>>, vector<1x128xf32>
      %14 = vector.broadcast %13 : vector<1x128xf32> to vector<32x128xf32>
      %15 = arith.addf %12, %14 : vector<32x128xf32>
      %16 = arith.truncf %15 : vector<32x128xf32> to vector<32x128xbf16>
      %c0_14 = arith.constant 0 : index
      %c0_15 = arith.constant 0 : index
      %17 = vector.load %arg6[%c0_14, %c0_15] : memref<32x128xbf16, #tpu.memory_space<vmem>>, vector<32x128xbf16>
      tpu.vector_store %arg6[%c0_14, %c0_15], %16 {strides = array<i32>} : memref<32x128xbf16, #tpu.memory_space<vmem>>, vector<32x128xbf16>,
    } else {
    }
    return
  }
  func.func @transform_0(%arg0: i32, %arg1: i32, %arg2: i32) -> (i32, i32) {
    %c0_i32 = arith.constant 0 : i32
    return %arg0, %arg2 : i32, i32
  }
  func.func @transform_1(%arg0: i32, %arg1: i32, %arg2: i32) -> (i32, i32) {
    %c0_i32 = arith.constant 0 : i32
    return %arg2, %arg1 : i32, i32
  }
  func.func @transform_2(%arg0: i32, %arg1: i32, %arg2: i32) -> (i32, i32) {
    %c0_i32 = arith.constant 0 : i32
    %c0_i32_0 = arith.constant 0 : i32
    return %c0_i32, %arg1 : i32, i32
  }
  func.func @transform_3(%arg0: i32, %arg1: i32, %arg2: i32) -> (i32, i32) {
    %c0_i32 = arith.constant 0 : i32
    return %arg0, %arg1 : i32, i32
  }
}

module attributes {stable_mosaic.version = 11 : i64} {
  func.func @_conv1d_glu_kernel(%arg0: i32, %arg1: memref<2x5x8x128xbf16, #tpu.memory_space<vmem>>, %arg2: memref<3x128x256xbf16, #tpu.memory_space<vmem>>, %arg3: memref<1x256xf32, #tpu.memory_space<vmem>>, %arg4: memref<4x8x128xbf16, #tpu.memory_space<vmem>>) attributes {dimension_semantics = [#tpu.dimension_semantics<parallel>], iteration_bounds = array<i64: 1>, scalar_prefetch = 0 : i64, scratch_operands = 0 : i64, tpu.core_type = #tpu.core_type<tc>, window_params = [{transform_indices = @transform_0, window_bounds = array<i64: 2, 5, 8, 128>}, {pipeline_mode = #tpu.pipeline_mode<synchronous>, transform_indices = @transform_1, window_bounds = array<i64: 3, 128, 256>}, {pipeline_mode = #tpu.pipeline_mode<synchronous>, transform_indices = @transform_2, window_bounds = array<i64: 1, 256>}, {transform_indices = @transform_3, window_bounds = array<i64: 4, 8, 128>}]} {
    %c0 = arith.constant 0 : index
    %c0_0 = arith.constant 0 : index
    %0 = vector.load %arg3[%c0, %c0_0] : memref<1x256xf32, #tpu.memory_space<vmem>>, vector<1x256xf32>
    %c0_1 = arith.constant 0 : index
    %c0_2 = arith.constant 0 : index
    %c0_3 = arith.constant 0 : index
    %c0_4 = arith.constant 0 : index
    %1 = vector.load %arg1[%c0_1, %c0_2, %c0_3, %c0_4] : memref<2x5x8x128xbf16, #tpu.memory_space<vmem>>, vector<1x1x8x128xbf16>
    %2 = vector.shape_cast %1 : vector<1x1x8x128xbf16> to vector<8x128xbf16>
    %c0_5 = arith.constant 0 : index
    %c0_6 = arith.constant 0 : index
    %c0_7 = arith.constant 0 : index
    %3 = vector.load %arg2[%c0_5, %c0_6, %c0_7] : memref<3x128x256xbf16, #tpu.memory_space<vmem>>, vector<1x128x256xbf16>
    %4 = vector.shape_cast %3 : vector<1x128x256xbf16> to vector<128x256xbf16>
    %cst = arith.constant dense<0.000000e+00> : vector<8x256xf32>
    %5 = tpu.matmul %2, %4, %cst {dimension_numbers = #tpu.dot_dimension_numbers<[1], [0], [0], [1], [0, 0, 1, 1], [], []>} : vector<8x128xbf16>, vector<128x256xbf16>, vector<8x256xf32> -> vector<8x256xf32>
    %c1 = arith.constant 1 : index
    %c0_8 = arith.constant 0 : index
    %c0_9 = arith.constant 0 : index
    %c0_10 = arith.constant 0 : index
    %6 = vector.load %arg1[%c1, %c0_8, %c0_9, %c0_10] : memref<2x5x8x128xbf16, #tpu.memory_space<vmem>>, vector<1x1x8x128xbf16>
    %7 = vector.shape_cast %6 : vector<1x1x8x128xbf16> to vector<8x128xbf16>
    %c1_11 = arith.constant 1 : index
    %c0_12 = arith.constant 0 : index
    %c0_13 = arith.constant 0 : index
    %8 = vector.load %arg2[%c1_11, %c0_12, %c0_13] : memref<3x128x256xbf16, #tpu.memory_space<vmem>>, vector<1x128x256xbf16>
    %9 = vector.shape_cast %8 : vector<1x128x256xbf16> to vector<128x256xbf16>
    %cst_14 = arith.constant dense<0.000000e+00> : vector<8x256xf32>
    %10 = tpu.matmul %7, %9, %cst_14 {dimension_numbers = #tpu.dot_dimension_numbers<[1], [0], [0], [1], [0, 0, 1, 1], [], []>} : vector<8x128xbf16>, vector<128x256xbf16>, vector<8x256xf32> -> vector<8x256xf32>
    %11 = arith.addf %5, %10 : vector<8x256xf32>
    %c0_15 = arith.constant 0 : index
    %c1_16 = arith.constant 1 : index
    %c0_17 = arith.constant 0 : index
    %c0_18 = arith.constant 0 : index
    %12 = vector.load %arg1[%c0_15, %c1_16, %c0_17, %c0_18] : memref<2x5x8x128xbf16, #tpu.memory_space<vmem>>, vector<1x1x8x128xbf16>
    %13 = vector.shape_cast %12 : vector<1x1x8x128xbf16> to vector<8x128xbf16>
    %c2 = arith.constant 2 : index
    %c0_19 = arith.constant 0 : index
    %c0_20 = arith.constant 0 : index
    %14 = vector.load %arg2[%c2, %c0_19, %c0_20] : memref<3x128x256xbf16, #tpu.memory_space<vmem>>, vector<1x128x256xbf16>
    %15 = vector.shape_cast %14 : vector<1x128x256xbf16> to vector<128x256xbf16>
    %cst_21 = arith.constant dense<0.000000e+00> : vector<8x256xf32>
    %16 = tpu.matmul %13, %15, %cst_21 {dimension_numbers = #tpu.dot_dimension_numbers<[1], [0], [0], [1], [0, 0, 1, 1], [], []>} : vector<8x128xbf16>, vector<128x256xbf16>, vector<8x256xf32> -> vector<8x256xf32>
    %17 = arith.addf %11, %16 : vector<8x256xf32>
    %18 = vector.broadcast %0 : vector<1x256xf32> to vector<8x256xf32>
    %19 = arith.addf %17, %18 : vector<8x256xf32>
    %20 = vector.extract_strided_slice %19 {offsets = [0, 0], sizes = [8, 128], strides = [1, 1]} : vector<8x256xf32> to vector<8x128xf32>
    %21 = vector.extract_strided_slice %19 {offsets = [0, 128], sizes = [8, 128], strides = [1, 1]} : vector<8x256xf32> to vector<8x128xf32>
    %22 = arith.negf %21 : vector<8x128xf32>
    %23 = math.exp %22 : vector<8x128xf32>
    %cst_22 = arith.constant 1.000000e+00 : f32
    %24 = vector.broadcast %cst_22 : f32 to vector<8x128xf32>
    %25 = arith.addf %24, %23 : vector<8x128xf32>
    %26 = arith.divf %24, %25 : vector<8x128xf32>
    %27 = arith.mulf %20, %26 : vector<8x128xf32>
    %28 = arith.truncf %27 : vector<8x128xf32> to vector<8x128xbf16>
    %c0_23 = arith.constant 0 : index
    %c0_24 = arith.constant 0 : index
    %c0_25 = arith.constant 0 : index
    %29 = vector.load %arg4[%c0_23, %c0_24, %c0_25] : memref<4x8x128xbf16, #tpu.memory_space<vmem>>, vector<1x8x128xbf16>
    %30 = vector.shape_cast %29 : vector<1x8x128xbf16> to vector<8x128xbf16>
    %31 = vector.shape_cast %28 : vector<8x128xbf16> to vector<1x8x128xbf16>
    tpu.vector_store %arg4[%c0_23, %c0_24, %c0_25], %31 {strides = array<i32>} : memref<4x8x128xbf16, #tpu.memory_space<vmem>>, vector<1x8x128xbf16>,
    %c0_26 = arith.constant 0 : index
    %c1_27 = arith.constant 1 : index
    %c0_28 = arith.constant 0 : index
    %c0_29 = arith.constant 0 : index
    %32 = vector.load %arg1[%c0_26, %c1_27, %c0_28, %c0_29] : memref<2x5x8x128xbf16, #tpu.memory_space<vmem>>, vector<1x1x8x128xbf16>
    %33 = vector.shape_cast %32 : vector<1x1x8x128xbf16> to vector<8x128xbf16>
    %c0_30 = arith.constant 0 : index
    %c0_31 = arith.constant 0 : index
    %c0_32 = arith.constant 0 : index
    %34 = vector.load %arg2[%c0_30, %c0_31, %c0_32] : memref<3x128x256xbf16, #tpu.memory_space<vmem>>, vector<1x128x256xbf16>
    %35 = vector.shape_cast %34 : vector<1x128x256xbf16> to vector<128x256xbf16>
    %cst_33 = arith.constant dense<0.000000e+00> : vector<8x256xf32>
    %36 = tpu.matmul %33, %35, %cst_33 {dimension_numbers = #tpu.dot_dimension_numbers<[1], [0], [0], [1], [0, 0, 1, 1], [], []>} : vector<8x128xbf16>, vector<128x256xbf16>, vector<8x256xf32> -> vector<8x256xf32>
    %c1_34 = arith.constant 1 : index
    %c1_35 = arith.constant 1 : index
    %c0_36 = arith.constant 0 : index
    %c0_37 = arith.constant 0 : index
    %37 = vector.load %arg1[%c1_34, %c1_35, %c0_36, %c0_37] : memref<2x5x8x128xbf16, #tpu.memory_space<vmem>>, vector<1x1x8x128xbf16>
    %38 = vector.shape_cast %37 : vector<1x1x8x128xbf16> to vector<8x128xbf16>
    %c1_38 = arith.constant 1 : index
    %c0_39 = arith.constant 0 : index
    %c0_40 = arith.constant 0 : index
    %39 = vector.load %arg2[%c1_38, %c0_39, %c0_40] : memref<3x128x256xbf16, #tpu.memory_space<vmem>>, vector<1x128x256xbf16>
    %40 = vector.shape_cast %39 : vector<1x128x256xbf16> to vector<128x256xbf16>
    %cst_41 = arith.constant dense<0.000000e+00> : vector<8x256xf32>
    %41 = tpu.matmul %38, %40, %cst_41 {dimension_numbers = #tpu.dot_dimension_numbers<[1], [0], [0], [1], [0, 0, 1, 1], [], []>} : vector<8x128xbf16>, vector<128x256xbf16>, vector<8x256xf32> -> vector<8x256xf32>
    %42 = arith.addf %36, %41 : vector<8x256xf32>
    %c0_42 = arith.constant 0 : index
    %c2_43 = arith.constant 2 : index
    %c0_44 = arith.constant 0 : index
    %c0_45 = arith.constant 0 : index
    %43 = vector.load %arg1[%c0_42, %c2_43, %c0_44, %c0_45] : memref<2x5x8x128xbf16, #tpu.memory_space<vmem>>, vector<1x1x8x128xbf16>
    %44 = vector.shape_cast %43 : vector<1x1x8x128xbf16> to vector<8x128xbf16>
    %c2_46 = arith.constant 2 : index
    %c0_47 = arith.constant 0 : index
    %c0_48 = arith.constant 0 : index
    %45 = vector.load %arg2[%c2_46, %c0_47, %c0_48] : memref<3x128x256xbf16, #tpu.memory_space<vmem>>, vector<1x128x256xbf16>
    %46 = vector.shape_cast %45 : vector<1x128x256xbf16> to vector<128x256xbf16>
    %cst_49 = arith.constant dense<0.000000e+00> : vector<8x256xf32>
    %47 = tpu.matmul %44, %46, %cst_49 {dimension_numbers = #tpu.dot_dimension_numbers<[1], [0], [0], [1], [0, 0, 1, 1], [], []>} : vector<8x128xbf16>, vector<128x256xbf16>, vector<8x256xf32> -> vector<8x256xf32>
    %48 = arith.addf %42, %47 : vector<8x256xf32>
    %49 = vector.broadcast %0 : vector<1x256xf32> to vector<8x256xf32>
    %50 = arith.addf %48, %49 : vector<8x256xf32>
    %51 = vector.extract_strided_slice %50 {offsets = [0, 0], sizes = [8, 128], strides = [1, 1]} : vector<8x256xf32> to vector<8x128xf32>
    %52 = vector.extract_strided_slice %50 {offsets = [0, 128], sizes = [8, 128], strides = [1, 1]} : vector<8x256xf32> to vector<8x128xf32>
    %53 = arith.negf %52 : vector<8x128xf32>
    %54 = math.exp %53 : vector<8x128xf32>
    %cst_50 = arith.constant 1.000000e+00 : f32
    %55 = vector.broadcast %cst_50 : f32 to vector<8x128xf32>
    %56 = arith.addf %55, %54 : vector<8x128xf32>
    %57 = arith.divf %55, %56 : vector<8x128xf32>
    %58 = arith.mulf %51, %57 : vector<8x128xf32>
    %59 = arith.truncf %58 : vector<8x128xf32> to vector<8x128xbf16>
    %c1_51 = arith.constant 1 : index
    %c0_52 = arith.constant 0 : index
    %c0_53 = arith.constant 0 : index
    %60 = vector.load %arg4[%c1_51, %c0_52, %c0_53] : memref<4x8x128xbf16, #tpu.memory_space<vmem>>, vector<1x8x128xbf16>
    %61 = vector.shape_cast %60 : vector<1x8x128xbf16> to vector<8x128xbf16>
    %62 = vector.shape_cast %59 : vector<8x128xbf16> to vector<1x8x128xbf16>
    tpu.vector_store %arg4[%c1_51, %c0_52, %c0_53], %62 {strides = array<i32>} : memref<4x8x128xbf16, #tpu.memory_space<vmem>>, vector<1x8x128xbf16>,
    %c0_54 = arith.constant 0 : index
    %c2_55 = arith.constant 2 : index
    %c0_56 = arith.constant 0 : index
    %c0_57 = arith.constant 0 : index
    %63 = vector.load %arg1[%c0_54, %c2_55, %c0_56, %c0_57] : memref<2x5x8x128xbf16, #tpu.memory_space<vmem>>, vector<1x1x8x128xbf16>
    %64 = vector.shape_cast %63 : vector<1x1x8x128xbf16> to vector<8x128xbf16>
    %c0_58 = arith.constant 0 : index
    %c0_59 = arith.constant 0 : index
    %c0_60 = arith.constant 0 : index
    %65 = vector.load %arg2[%c0_58, %c0_59, %c0_60] : memref<3x128x256xbf16, #tpu.memory_space<vmem>>, vector<1x128x256xbf16>
    %66 = vector.shape_cast %65 : vector<1x128x256xbf16> to vector<128x256xbf16>
    %cst_61 = arith.constant dense<0.000000e+00> : vector<8x256xf32>
    %67 = tpu.matmul %64, %66, %cst_61 {dimension_numbers = #tpu.dot_dimension_numbers<[1], [0], [0], [1], [0, 0, 1, 1], [], []>} : vector<8x128xbf16>, vector<128x256xbf16>, vector<8x256xf32> -> vector<8x256xf32>
    %c1_62 = arith.constant 1 : index
    %c2_63 = arith.constant 2 : index
    %c0_64 = arith.constant 0 : index
    %c0_65 = arith.constant 0 : index
    %68 = vector.load %arg1[%c1_62, %c2_63, %c0_64, %c0_65] : memref<2x5x8x128xbf16, #tpu.memory_space<vmem>>, vector<1x1x8x128xbf16>
    %69 = vector.shape_cast %68 : vector<1x1x8x128xbf16> to vector<8x128xbf16>
    %c1_66 = arith.constant 1 : index
    %c0_67 = arith.constant 0 : index
    %c0_68 = arith.constant 0 : index
    %70 = vector.load %arg2[%c1_66, %c0_67, %c0_68] : memref<3x128x256xbf16, #tpu.memory_space<vmem>>, vector<1x128x256xbf16>
    %71 = vector.shape_cast %70 : vector<1x128x256xbf16> to vector<128x256xbf16>
    %cst_69 = arith.constant dense<0.000000e+00> : vector<8x256xf32>
    %72 = tpu.matmul %69, %71, %cst_69 {dimension_numbers = #tpu.dot_dimension_numbers<[1], [0], [0], [1], [0, 0, 1, 1], [], []>} : vector<8x128xbf16>, vector<128x256xbf16>, vector<8x256xf32> -> vector<8x256xf32>
    %73 = arith.addf %67, %72 : vector<8x256xf32>
    %c0_70 = arith.constant 0 : index
    %c3 = arith.constant 3 : index
    %c0_71 = arith.constant 0 : index
    %c0_72 = arith.constant 0 : index
    %74 = vector.load %arg1[%c0_70, %c3, %c0_71, %c0_72] : memref<2x5x8x128xbf16, #tpu.memory_space<vmem>>, vector<1x1x8x128xbf16>
    %75 = vector.shape_cast %74 : vector<1x1x8x128xbf16> to vector<8x128xbf16>
    %c2_73 = arith.constant 2 : index
    %c0_74 = arith.constant 0 : index
    %c0_75 = arith.constant 0 : index
    %76 = vector.load %arg2[%c2_73, %c0_74, %c0_75] : memref<3x128x256xbf16, #tpu.memory_space<vmem>>, vector<1x128x256xbf16>
    %77 = vector.shape_cast %76 : vector<1x128x256xbf16> to vector<128x256xbf16>
    %cst_76 = arith.constant dense<0.000000e+00> : vector<8x256xf32>
    %78 = tpu.matmul %75, %77, %cst_76 {dimension_numbers = #tpu.dot_dimension_numbers<[1], [0], [0], [1], [0, 0, 1, 1], [], []>} : vector<8x128xbf16>, vector<128x256xbf16>, vector<8x256xf32> -> vector<8x256xf32>
    %79 = arith.addf %73, %78 : vector<8x256xf32>
    %80 = vector.broadcast %0 : vector<1x256xf32> to vector<8x256xf32>
    %81 = arith.addf %79, %80 : vector<8x256xf32>
    %82 = vector.extract_strided_slice %81 {offsets = [0, 0], sizes = [8, 128], strides = [1, 1]} : vector<8x256xf32> to vector<8x128xf32>
    %83 = vector.extract_strided_slice %81 {offsets = [0, 128], sizes = [8, 128], strides = [1, 1]} : vector<8x256xf32> to vector<8x128xf32>
    %84 = arith.negf %83 : vector<8x128xf32>
    %85 = math.exp %84 : vector<8x128xf32>
    %cst_77 = arith.constant 1.000000e+00 : f32
    %86 = vector.broadcast %cst_77 : f32 to vector<8x128xf32>
    %87 = arith.addf %86, %85 : vector<8x128xf32>
    %88 = arith.divf %86, %87 : vector<8x128xf32>
    %89 = arith.mulf %82, %88 : vector<8x128xf32>
    %90 = arith.truncf %89 : vector<8x128xf32> to vector<8x128xbf16>
    %c2_78 = arith.constant 2 : index
    %c0_79 = arith.constant 0 : index
    %c0_80 = arith.constant 0 : index
    %91 = vector.load %arg4[%c2_78, %c0_79, %c0_80] : memref<4x8x128xbf16, #tpu.memory_space<vmem>>, vector<1x8x128xbf16>
    %92 = vector.shape_cast %91 : vector<1x8x128xbf16> to vector<8x128xbf16>
    %93 = vector.shape_cast %90 : vector<8x128xbf16> to vector<1x8x128xbf16>
    tpu.vector_store %arg4[%c2_78, %c0_79, %c0_80], %93 {strides = array<i32>} : memref<4x8x128xbf16, #tpu.memory_space<vmem>>, vector<1x8x128xbf16>,
    %c0_81 = arith.constant 0 : index
    %c3_82 = arith.constant 3 : index
    %c0_83 = arith.constant 0 : index
    %c0_84 = arith.constant 0 : index
    %94 = vector.load %arg1[%c0_81, %c3_82, %c0_83, %c0_84] : memref<2x5x8x128xbf16, #tpu.memory_space<vmem>>, vector<1x1x8x128xbf16>
    %95 = vector.shape_cast %94 : vector<1x1x8x128xbf16> to vector<8x128xbf16>
    %c0_85 = arith.constant 0 : index
    %c0_86 = arith.constant 0 : index
    %c0_87 = arith.constant 0 : index
    %96 = vector.load %arg2[%c0_85, %c0_86, %c0_87] : memref<3x128x256xbf16, #tpu.memory_space<vmem>>, vector<1x128x256xbf16>
    %97 = vector.shape_cast %96 : vector<1x128x256xbf16> to vector<128x256xbf16>
    %cst_88 = arith.constant dense<0.000000e+00> : vector<8x256xf32>
    %98 = tpu.matmul %95, %97, %cst_88 {dimension_numbers = #tpu.dot_dimension_numbers<[1], [0], [0], [1], [0, 0, 1, 1], [], []>} : vector<8x128xbf16>, vector<128x256xbf16>, vector<8x256xf32> -> vector<8x256xf32>
    %c1_89 = arith.constant 1 : index
    %c3_90 = arith.constant 3 : index
    %c0_91 = arith.constant 0 : index
    %c0_92 = arith.constant 0 : index
    %99 = vector.load %arg1[%c1_89, %c3_90, %c0_91, %c0_92] : memref<2x5x8x128xbf16, #tpu.memory_space<vmem>>, vector<1x1x8x128xbf16>
    %100 = vector.shape_cast %99 : vector<1x1x8x128xbf16> to vector<8x128xbf16>
    %c1_93 = arith.constant 1 : index
    %c0_94 = arith.constant 0 : index
    %c0_95 = arith.constant 0 : index
    %101 = vector.load %arg2[%c1_93, %c0_94, %c0_95] : memref<3x128x256xbf16, #tpu.memory_space<vmem>>, vector<1x128x256xbf16>
    %102 = vector.shape_cast %101 : vector<1x128x256xbf16> to vector<128x256xbf16>
    %cst_96 = arith.constant dense<0.000000e+00> : vector<8x256xf32>
    %103 = tpu.matmul %100, %102, %cst_96 {dimension_numbers = #tpu.dot_dimension_numbers<[1], [0], [0], [1], [0, 0, 1, 1], [], []>} : vector<8x128xbf16>, vector<128x256xbf16>, vector<8x256xf32> -> vector<8x256xf32>
    %104 = arith.addf %98, %103 : vector<8x256xf32>
    %c0_97 = arith.constant 0 : index
    %c4 = arith.constant 4 : index
    %c0_98 = arith.constant 0 : index
    %c0_99 = arith.constant 0 : index
    %105 = vector.load %arg1[%c0_97, %c4, %c0_98, %c0_99] : memref<2x5x8x128xbf16, #tpu.memory_space<vmem>>, vector<1x1x8x128xbf16>
    %106 = vector.shape_cast %105 : vector<1x1x8x128xbf16> to vector<8x128xbf16>
    %c2_100 = arith.constant 2 : index
    %c0_101 = arith.constant 0 : index
    %c0_102 = arith.constant 0 : index
    %107 = vector.load %arg2[%c2_100, %c0_101, %c0_102] : memref<3x128x256xbf16, #tpu.memory_space<vmem>>, vector<1x128x256xbf16>
    %108 = vector.shape_cast %107 : vector<1x128x256xbf16> to vector<128x256xbf16>
    %cst_103 = arith.constant dense<0.000000e+00> : vector<8x256xf32>
    %109 = tpu.matmul %106, %108, %cst_103 {dimension_numbers = #tpu.dot_dimension_numbers<[1], [0], [0], [1], [0, 0, 1, 1], [], []>} : vector<8x128xbf16>, vector<128x256xbf16>, vector<8x256xf32> -> vector<8x256xf32>
    %110 = arith.addf %104, %109 : vector<8x256xf32>
    %111 = vector.broadcast %0 : vector<1x256xf32> to vector<8x256xf32>
    %112 = arith.addf %110, %111 : vector<8x256xf32>
    %113 = vector.extract_strided_slice %112 {offsets = [0, 0], sizes = [8, 128], strides = [1, 1]} : vector<8x256xf32> to vector<8x128xf32>
    %114 = vector.extract_strided_slice %112 {offsets = [0, 128], sizes = [8, 128], strides = [1, 1]} : vector<8x256xf32> to vector<8x128xf32>
    %115 = arith.negf %114 : vector<8x128xf32>
    %116 = math.exp %115 : vector<8x128xf32>
    %cst_104 = arith.constant 1.000000e+00 : f32
    %117 = vector.broadcast %cst_104 : f32 to vector<8x128xf32>
    %118 = arith.addf %117, %116 : vector<8x128xf32>
    %119 = arith.divf %117, %118 : vector<8x128xf32>
    %120 = arith.mulf %113, %119 : vector<8x128xf32>
    %121 = arith.truncf %120 : vector<8x128xf32> to vector<8x128xbf16>
    %c3_105 = arith.constant 3 : index
    %c0_106 = arith.constant 0 : index
    %c0_107 = arith.constant 0 : index
    %122 = vector.load %arg4[%c3_105, %c0_106, %c0_107] : memref<4x8x128xbf16, #tpu.memory_space<vmem>>, vector<1x8x128xbf16>
    %123 = vector.shape_cast %122 : vector<1x8x128xbf16> to vector<8x128xbf16>
    %124 = vector.shape_cast %121 : vector<8x128xbf16> to vector<1x8x128xbf16>
    tpu.vector_store %arg4[%c3_105, %c0_106, %c0_107], %124 {strides = array<i32>} : memref<4x8x128xbf16, #tpu.memory_space<vmem>>, vector<1x8x128xbf16>,
    return
  }
  func.func @transform_0(%arg0: i32) -> (i32, i32, i32, i32) {
    %c0_i32 = arith.constant 0 : i32
    %c0_i32_0 = arith.constant 0 : i32
    %c0_i32_1 = arith.constant 0 : i32
    %c0_i32_2 = arith.constant 0 : i32
    return %c0_i32, %c0_i32_0, %arg0, %c0_i32_1 : i32, i32, i32, i32
  }
  func.func @transform_1(%arg0: i32) -> (i32, i32, i32) {
    %c0_i32 = arith.constant 0 : i32
    %c0_i32_0 = arith.constant 0 : i32
    %c0_i32_1 = arith.constant 0 : i32
    %c0_i32_2 = arith.constant 0 : i32
    return %c0_i32, %c0_i32_0, %c0_i32_1 : i32, i32, i32
  }
  func.func @transform_2(%arg0: i32) -> (i32, i32) {
    %c0_i32 = arith.constant 0 : i32
    %c0_i32_0 = arith.constant 0 : i32
    %c0_i32_1 = arith.constant 0 : i32
    return %c0_i32, %c0_i32_0 : i32, i32
  }
  func.func @transform_3(%arg0: i32) -> (i32, i32, i32) {
    %c0_i32 = arith.constant 0 : i32
    %c0_i32_0 = arith.constant 0 : i32
    %c0_i32_1 = arith.constant 0 : i32
    return %c0_i32, %arg0, %c0_i32_0 : i32, i32, i32
  }
}

module attributes {stable_mosaic.version = 11 : i64} {
  func.func @_conv1d_glu_kernel(%arg0: i32, %arg1: memref<2x3x8x128xbf16, #tpu.memory_space<vmem>>, %arg2: memref<3x128x256xbf16, #tpu.memory_space<vmem>>, %arg3: memref<1x256xf32, #tpu.memory_space<vmem>>, %arg4: memref<2x8x128xbf16, #tpu.memory_space<vmem>>) attributes {dimension_semantics = [#tpu.dimension_semantics<parallel>], iteration_bounds = array<i64: 1>, scalar_prefetch = 0 : i64, scratch_operands = 0 : i64, tpu.core_type = #tpu.core_type<tc>, window_params = [{transform_indices = @transform_0, window_bounds = array<i64: 2, 3, 8, 128>}, {pipeline_mode = #tpu.pipeline_mode<synchronous>, transform_indices = @transform_1, window_bounds = array<i64: 3, 128, 256>}, {pipeline_mode = #tpu.pipeline_mode<synchronous>, transform_indices = @transform_2, window_bounds = array<i64: 1, 256>}, {transform_indices = @transform_3, window_bounds = array<i64: 2, 8, 128>}]} {
    %c0 = arith.constant 0 : index
    %c0_0 = arith.constant 0 : index
    %0 = vector.load %arg3[%c0, %c0_0] : memref<1x256xf32, #tpu.memory_space<vmem>>, vector<1x256xf32>
    %c0_1 = arith.constant 0 : index
    %c0_2 = arith.constant 0 : index
    %c0_3 = arith.constant 0 : index
    %c0_4 = arith.constant 0 : index
    %1 = vector.load %arg1[%c0_1, %c0_2, %c0_3, %c0_4] : memref<2x3x8x128xbf16, #tpu.memory_space<vmem>>, vector<1x1x8x128xbf16>
    %2 = vector.shape_cast %1 : vector<1x1x8x128xbf16> to vector<8x128xbf16>
    %c0_5 = arith.constant 0 : index
    %c0_6 = arith.constant 0 : index
    %c0_7 = arith.constant 0 : index
    %3 = vector.load %arg2[%c0_5, %c0_6, %c0_7] : memref<3x128x256xbf16, #tpu.memory_space<vmem>>, vector<1x128x256xbf16>
    %4 = vector.shape_cast %3 : vector<1x128x256xbf16> to vector<128x256xbf16>
    %cst = arith.constant dense<0.000000e+00> : vector<8x256xf32>
    %5 = tpu.matmul %2, %4, %cst {dimension_numbers = #tpu.dot_dimension_numbers<[1], [0], [0], [1], [0, 0, 1, 1], [], []>} : vector<8x128xbf16>, vector<128x256xbf16>, vector<8x256xf32> -> vector<8x256xf32>
    %c1 = arith.constant 1 : index
    %c0_8 = arith.constant 0 : index
    %c0_9 = arith.constant 0 : index
    %c0_10 = arith.constant 0 : index
    %6 = vector.load %arg1[%c1, %c0_8, %c0_9, %c0_10] : memref<2x3x8x128xbf16, #tpu.memory_space<vmem>>, vector<1x1x8x128xbf16>
    %7 = vector.shape_cast %6 : vector<1x1x8x128xbf16> to vector<8x128xbf16>
    %c1_11 = arith.constant 1 : index
    %c0_12 = arith.constant 0 : index
    %c0_13 = arith.constant 0 : index
    %8 = vector.load %arg2[%c1_11, %c0_12, %c0_13] : memref<3x128x256xbf16, #tpu.memory_space<vmem>>, vector<1x128x256xbf16>
    %9 = vector.shape_cast %8 : vector<1x128x256xbf16> to vector<128x256xbf16>
    %cst_14 = arith.constant dense<0.000000e+00> : vector<8x256xf32>
    %10 = tpu.matmul %7, %9, %cst_14 {dimension_numbers = #tpu.dot_dimension_numbers<[1], [0], [0], [1], [0, 0, 1, 1], [], []>} : vector<8x128xbf16>, vector<128x256xbf16>, vector<8x256xf32> -> vector<8x256xf32>
    %11 = arith.addf %5, %10 : vector<8x256xf32>
    %c0_15 = arith.constant 0 : index
    %c1_16 = arith.constant 1 : index
    %c0_17 = arith.constant 0 : index
    %c0_18 = arith.constant 0 : index
    %12 = vector.load %arg1[%c0_15, %c1_16, %c0_17, %c0_18] : memref<2x3x8x128xbf16, #tpu.memory_space<vmem>>, vector<1x1x8x128xbf16>
    %13 = vector.shape_cast %12 : vector<1x1x8x128xbf16> to vector<8x128xbf16>
    %c2 = arith.constant 2 : index
    %c0_19 = arith.constant 0 : index
    %c0_20 = arith.constant 0 : index
    %14 = vector.load %arg2[%c2, %c0_19, %c0_20] : memref<3x128x256xbf16, #tpu.memory_space<vmem>>, vector<1x128x256xbf16>
    %15 = vector.shape_cast %14 : vector<1x128x256xbf16> to vector<128x256xbf16>
    %cst_21 = arith.constant dense<0.000000e+00> : vector<8x256xf32>
    %16 = tpu.matmul %13, %15, %cst_21 {dimension_numbers = #tpu.dot_dimension_numbers<[1], [0], [0], [1], [0, 0, 1, 1], [], []>} : vector<8x128xbf16>, vector<128x256xbf16>, vector<8x256xf32> -> vector<8x256xf32>
    %17 = arith.addf %11, %16 : vector<8x256xf32>
    %18 = vector.broadcast %0 : vector<1x256xf32> to vector<8x256xf32>
    %19 = arith.addf %17, %18 : vector<8x256xf32>
    %20 = vector.extract_strided_slice %19 {offsets = [0, 0], sizes = [8, 128], strides = [1, 1]} : vector<8x256xf32> to vector<8x128xf32>
    %21 = vector.extract_strided_slice %19 {offsets = [0, 128], sizes = [8, 128], strides = [1, 1]} : vector<8x256xf32> to vector<8x128xf32>
    %22 = arith.negf %21 : vector<8x128xf32>
    %23 = math.exp %22 : vector<8x128xf32>
    %cst_22 = arith.constant 1.000000e+00 : f32
    %24 = vector.broadcast %cst_22 : f32 to vector<8x128xf32>
    %25 = arith.addf %24, %23 : vector<8x128xf32>
    %26 = arith.divf %24, %25 : vector<8x128xf32>
    %27 = arith.mulf %20, %26 : vector<8x128xf32>
    %28 = arith.truncf %27 : vector<8x128xf32> to vector<8x128xbf16>
    %c0_23 = arith.constant 0 : index
    %c0_24 = arith.constant 0 : index
    %c0_25 = arith.constant 0 : index
    %29 = vector.load %arg4[%c0_23, %c0_24, %c0_25] : memref<2x8x128xbf16, #tpu.memory_space<vmem>>, vector<1x8x128xbf16>
    %30 = vector.shape_cast %29 : vector<1x8x128xbf16> to vector<8x128xbf16>
    %31 = vector.shape_cast %28 : vector<8x128xbf16> to vector<1x8x128xbf16>
    tpu.vector_store %arg4[%c0_23, %c0_24, %c0_25], %31 {strides = array<i32>} : memref<2x8x128xbf16, #tpu.memory_space<vmem>>, vector<1x8x128xbf16>,
    %c0_26 = arith.constant 0 : index
    %c1_27 = arith.constant 1 : index
    %c0_28 = arith.constant 0 : index
    %c0_29 = arith.constant 0 : index
    %32 = vector.load %arg1[%c0_26, %c1_27, %c0_28, %c0_29] : memref<2x3x8x128xbf16, #tpu.memory_space<vmem>>, vector<1x1x8x128xbf16>
    %33 = vector.shape_cast %32 : vector<1x1x8x128xbf16> to vector<8x128xbf16>
    %c0_30 = arith.constant 0 : index
    %c0_31 = arith.constant 0 : index
    %c0_32 = arith.constant 0 : index
    %34 = vector.load %arg2[%c0_30, %c0_31, %c0_32] : memref<3x128x256xbf16, #tpu.memory_space<vmem>>, vector<1x128x256xbf16>
    %35 = vector.shape_cast %34 : vector<1x128x256xbf16> to vector<128x256xbf16>
    %cst_33 = arith.constant dense<0.000000e+00> : vector<8x256xf32>
    %36 = tpu.matmul %33, %35, %cst_33 {dimension_numbers = #tpu.dot_dimension_numbers<[1], [0], [0], [1], [0, 0, 1, 1], [], []>} : vector<8x128xbf16>, vector<128x256xbf16>, vector<8x256xf32> -> vector<8x256xf32>
    %c1_34 = arith.constant 1 : index
    %c1_35 = arith.constant 1 : index
    %c0_36 = arith.constant 0 : index
    %c0_37 = arith.constant 0 : index
    %37 = vector.load %arg1[%c1_34, %c1_35, %c0_36, %c0_37] : memref<2x3x8x128xbf16, #tpu.memory_space<vmem>>, vector<1x1x8x128xbf16>
    %38 = vector.shape_cast %37 : vector<1x1x8x128xbf16> to vector<8x128xbf16>
    %c1_38 = arith.constant 1 : index
    %c0_39 = arith.constant 0 : index
    %c0_40 = arith.constant 0 : index
    %39 = vector.load %arg2[%c1_38, %c0_39, %c0_40] : memref<3x128x256xbf16, #tpu.memory_space<vmem>>, vector<1x128x256xbf16>
    %40 = vector.shape_cast %39 : vector<1x128x256xbf16> to vector<128x256xbf16>
    %cst_41 = arith.constant dense<0.000000e+00> : vector<8x256xf32>
    %41 = tpu.matmul %38, %40, %cst_41 {dimension_numbers = #tpu.dot_dimension_numbers<[1], [0], [0], [1], [0, 0, 1, 1], [], []>} : vector<8x128xbf16>, vector<128x256xbf16>, vector<8x256xf32> -> vector<8x256xf32>
    %42 = arith.addf %36, %41 : vector<8x256xf32>
    %c0_42 = arith.constant 0 : index
    %c2_43 = arith.constant 2 : index
    %c0_44 = arith.constant 0 : index
    %c0_45 = arith.constant 0 : index
    %43 = vector.load %arg1[%c0_42, %c2_43, %c0_44, %c0_45] : memref<2x3x8x128xbf16, #tpu.memory_space<vmem>>, vector<1x1x8x128xbf16>
    %44 = vector.shape_cast %43 : vector<1x1x8x128xbf16> to vector<8x128xbf16>
    %c2_46 = arith.constant 2 : index
    %c0_47 = arith.constant 0 : index
    %c0_48 = arith.constant 0 : index
    %45 = vector.load %arg2[%c2_46, %c0_47, %c0_48] : memref<3x128x256xbf16, #tpu.memory_space<vmem>>, vector<1x128x256xbf16>
    %46 = vector.shape_cast %45 : vector<1x128x256xbf16> to vector<128x256xbf16>
    %cst_49 = arith.constant dense<0.000000e+00> : vector<8x256xf32>
    %47 = tpu.matmul %44, %46, %cst_49 {dimension_numbers = #tpu.dot_dimension_numbers<[1], [0], [0], [1], [0, 0, 1, 1], [], []>} : vector<8x128xbf16>, vector<128x256xbf16>, vector<8x256xf32> -> vector<8x256xf32>
    %48 = arith.addf %42, %47 : vector<8x256xf32>
    %49 = vector.broadcast %0 : vector<1x256xf32> to vector<8x256xf32>
    %50 = arith.addf %48, %49 : vector<8x256xf32>
    %51 = vector.extract_strided_slice %50 {offsets = [0, 0], sizes = [8, 128], strides = [1, 1]} : vector<8x256xf32> to vector<8x128xf32>
    %52 = vector.extract_strided_slice %50 {offsets = [0, 128], sizes = [8, 128], strides = [1, 1]} : vector<8x256xf32> to vector<8x128xf32>
    %53 = arith.negf %52 : vector<8x128xf32>
    %54 = math.exp %53 : vector<8x128xf32>
    %cst_50 = arith.constant 1.000000e+00 : f32
    %55 = vector.broadcast %cst_50 : f32 to vector<8x128xf32>
    %56 = arith.addf %55, %54 : vector<8x128xf32>
    %57 = arith.divf %55, %56 : vector<8x128xf32>
    %58 = arith.mulf %51, %57 : vector<8x128xf32>
    %59 = arith.truncf %58 : vector<8x128xf32> to vector<8x128xbf16>
    %c1_51 = arith.constant 1 : index
    %c0_52 = arith.constant 0 : index
    %c0_53 = arith.constant 0 : index
    %60 = vector.load %arg4[%c1_51, %c0_52, %c0_53] : memref<2x8x128xbf16, #tpu.memory_space<vmem>>, vector<1x8x128xbf16>
    %61 = vector.shape_cast %60 : vector<1x8x128xbf16> to vector<8x128xbf16>
    %62 = vector.shape_cast %59 : vector<8x128xbf16> to vector<1x8x128xbf16>
    tpu.vector_store %arg4[%c1_51, %c0_52, %c0_53], %62 {strides = array<i32>} : memref<2x8x128xbf16, #tpu.memory_space<vmem>>, vector<1x8x128xbf16>,
    return
  }
  func.func @transform_0(%arg0: i32) -> (i32, i32, i32, i32) {
    %c0_i32 = arith.constant 0 : i32
    %c0_i32_0 = arith.constant 0 : i32
    %c0_i32_1 = arith.constant 0 : i32
    %c0_i32_2 = arith.constant 0 : i32
    return %c0_i32, %c0_i32_0, %arg0, %c0_i32_1 : i32, i32, i32, i32
  }
  func.func @transform_1(%arg0: i32) -> (i32, i32, i32) {
    %c0_i32 = arith.constant 0 : i32
    %c0_i32_0 = arith.constant 0 : i32
    %c0_i32_1 = arith.constant 0 : i32
    %c0_i32_2 = arith.constant 0 : i32
    return %c0_i32, %c0_i32_0, %c0_i32_1 : i32, i32, i32
  }
  func.func @transform_2(%arg0: i32) -> (i32, i32) {
    %c0_i32 = arith.constant 0 : i32
    %c0_i32_0 = arith.constant 0 : i32
    %c0_i32_1 = arith.constant 0 : i32
    return %c0_i32, %c0_i32_0 : i32, i32
  }
  func.func @transform_3(%arg0: i32) -> (i32, i32, i32) {
    %c0_i32 = arith.constant 0 : i32
    %c0_i32_0 = arith.constant 0 : i32
    %c0_i32_1 = arith.constant 0 : i32
    return %c0_i32, %arg0, %c0_i32_0 : i32, i32, i32
  }
}

</mosaic_0001>

<bundles_post_ra>
// kernel: a_call__.3
= control target key start
LH: loop header
LB: loop body
LE: loop exit
PB: predicated region body
PF: predicated region fallthrough
CT: control target
= control target key end

     0   :  { %s289_s1 = inlined_call_operand.vmem [shape: bf16[128,128], index: 1, kind: input, shape index: {}]   ;;  %s290_s2 = inlined_call_operand.vmem [shape: f32[1,128], index: 2, kind: input, shape index: {}]   ;;  %s291_s0 = inlined_call_operand.vmem [shape: bf16[32,128], index: 0, kind: input, shape index: {}]   ;;  %s292_s3 = inlined_call_operand.vmem [shape: bf16[32,128], index: 3, kind: output, shape index: {}]  }
   0x1   :  { %v209_v0 = vld [vmem:[%s289_s1 + $0x38] sm:$0xff]  ;;  %v208_v1 = vld [vmem:[%s289_s1 + $0x30] sm:$0xff]  ;;  %v207_v2 = vld [vmem:[%s289_s1 + $0x28] sm:$0xff] }
   0x2   :  { %106 = vmatpush.bf16.msra.mxu0 %v209_v0  ;;  %221 = vmatpush.bf16.msra.mxu1 %v209_v0  ;;  %v206_v3 = vld [vmem:[%s289_s1 + $0x20] sm:$0xff]  ;;  %v205_v4 = vld [vmem:[%s289_s1 + $0x18] sm:$0xff]  ;;  %v204_v5 = vld [vmem:[%s289_s1 + $0x10] sm:$0xff] }
   0x3   :  { %v203_v6 = vld [vmem:[%s289_s1 + $0x8] sm:$0xff]  ;;  %v202_v7 = vld [vmem:[%s289_s1] sm:$0xff] }
   0x4   :  { %v200_v8 = vld [vmem:[%s291_s0] sm:$0xff]  ;;  %v201_v9 = vld [vmem:[%s291_s0 + $0x8] sm:$0xff] }
   0x5   :  { %v229_v12 = vld [vmem:[%s290_s2] ss:$0 sm:$0xff] }
   0x6   :  { %107 = vmatpush.bf16.msra.mxu0 %v208_v1  ;;  %222 = vmatpush.bf16.msra.mxu1 %v208_v1 }
   0xa   :  { %108 = vmatpush.bf16.msra.mxu0 %v207_v2  ;;  %223 = vmatpush.bf16.msra.mxu1 %v207_v2 }
   0xe   :  { %109 = vmatpush.bf16.msra.mxu0 %v206_v3  ;;  %224 = vmatpush.bf16.msra.mxu1 %v206_v3 }
  0x12   :  { %110 = vmatpush.bf16.msra.mxu0 %v205_v4  ;;  %225 = vmatpush.bf16.msra.mxu1 %v205_v4 }
  0x16   :  { %111 = vmatpush.bf16.msra.mxu0 %v204_v5  ;;  %226 = vmatpush.bf16.msra.mxu1 %v204_v5 }
  0x1a   :  { %112 = vmatpush.bf16.msra.mxu0 %v203_v6  ;;  %227 = vmatpush.bf16.msra.mxu1 %v203_v6 }
  0x1e   :  { %113 = vmatpush.bf16.msra.mxu0 %v202_v7  ;;  %228 = vmatpush.bf16.msra.mxu1 %v202_v7 }
  0x21   :  { %114 = vmatmul.bf16.vlgmr.msra.gmra.mxu0 %v200_v8  ;;  %119 = vmatmul.bf16.vlgmr.msra.gmra.mxu1 %v201_v9 }
  0x9e   :  { %v115_v10 = vpop.f32.mrf.mxu0  ;;  %v120_v11 = vpop.f32.mrf.mxu1 }
  0x9f   :  { %v144_v15 = vadd.f32 %v229_v12, %v115_v10  ;;  %v146_v16 = vadd.f32 %v229_v12, %v120_v11 }
  0xa6   :  { %v117_v13 = vpop.f32.mrf.mxu0  ;;  %v122_v14 = vpop.f32.mrf.mxu1 }
  0xa7   :  { %v145_v17 = vadd.f32 %v229_v12, %v117_v13  ;;  %v147_v18 = vadd.f32 %v229_v12, %v122_v14 }
  0xa9   :  { %v213_v19 = vpack.c.bf16 %v145_v17, %v144_v15  ;;  %v218_v20 = vpack.c.bf16 %v147_v18, %v146_v16 }
  0xab   :  { %214 = vst [vmem:[%s292_s3] sm:$0xff] %v213_v19  }
  0xac   :  { %220 = vst [vmem:[%s292_s3 + $0x8] sm:$0xff] %v218_v20  }

// kernel: a_call__.5
= control target key start
LH: loop header
LB: loop body
LE: loop exit
PB: predicated region body
PF: predicated region fallthrough
CT: control target
= control target key end

     0   :  { %8 = vsyncpa [#allocation3], 0  ;;  %s1363_s15 = smov [#allocation2]   ;;  %s1364_s17 = smov 128   ;;  %s1424_s0 = inlined_call_operand.vmem [shape: bf16[2,3,8,128], index: 0, kind: input, shape index: {}]   ;;  %s1425_s1 = inlined_call_operand.hbm [shape: bf16[3,128,256], index: 1, kind: input, shape index: {}]   ;;  %s1426_s2 = inlined_call_operand.vmem [shape: f32[1,256], index: 2, kind: input, shape index: {}]   ;;  %s1427_s3 = inlined_call_operand.vmem [shape: bf16[2,8,128], index: 3, kind: output, shape index: {}]  }
   0x1   :  { %s15_s14 = sshll.u32 %s1425_s1, 4  ;;  %s17_s16 = sshll.u32 %s1363_s15, 4  ;;  %s16_s14 = int_to_ptr.hbm [resolvable:$true] %s15_s14  ;;  %s18_s16 = int_to_ptr.vmem [resolvable:$true] %s17_s16 }
   0x2   :  { %s1365_s18 = smov 8  }
   0x3   :  { %23 = dma.hbm_to_vmem [thread:$0]  %s16_s14, 6144, %s18_s16, [#allocation3], %s1364_s17, %s1364_s17, %s1365_s18  }
   0x4   :  { %1361 = dma.done.wait [#allocation3], 6144  }
   0x5   :  { %1362 = vsyncadd [#allocation3], 4294961152  ;;  %v1260_v0 = vld [vmem:[#allocation2 + $0xf4] sm:$0xf]  ;;  %v899_v1 = vld [vmem:[#allocation2 + $0xf8] sm:$0xf0] }
   0x6   :  { %v1244_v2 = vld [vmem:[#allocation2 + $0x74] sm:$0xf]  ;;  %v902_v3 = vor.u32 %v1260_v0, %v899_v1  ;;  %v963_v4 = vld [vmem:[#allocation2 + $0x78] sm:$0xf0]  ;;  %v1258_v5 = vld [vmem:[#allocation2 + $0xe4] sm:$0xf] }
   0x7   :  { %v891_v6 = vld [vmem:[#allocation2 + $0xe8] sm:$0xf0]  ;;  %v966_v7 = vor.u32 %v1244_v2, %v963_v4  ;;  %v1242_v8 = vld [vmem:[#allocation2 + $0x64] sm:$0xf]  ;;  %v1256_v12 = vld [vmem:[#allocation2 + $0xd4] sm:$0xf] }
   0x8   :  { %v955_v9 = vld [vmem:[#allocation2 + $0x68] sm:$0xf0]  ;;  %160 = vmatpush.bf16.msra.mxu1 %v902_v3  ;;  %v894_v10 = vor.u32 %v1258_v5, %v891_v6  ;;  %v883_v13 = vld [vmem:[#allocation2 + $0xd8] sm:$0xf0]  ;;  %v1240_v14 = vld [vmem:[#allocation2 + $0x54] sm:$0xf] }
   0x9   :  { %266 = vmatpush.bf16.msra.mxu3 %v966_v7  ;;  %v958_v11 = vor.u32 %v1242_v8, %v955_v9  ;;  %v947_v15 = vld [vmem:[#allocation2 + $0x58] sm:$0xf0]  ;;  %v961_v16 = vld [vmem:[#allocation2 + $0x70] sm:$0xf]  ;;  %v1245_v17 = vld [vmem:[#allocation2 + $0x74] sm:$0xf0]  ;;  %v886_v19 = vor.u32 %v1256_v12, %v883_v13 }
   0xa   :  { %v962_v18 = vor.u32 %v1245_v17, %v961_v16  ;;  %v1254_v20 = vld [vmem:[#allocation2 + $0xc4] sm:$0xf]  ;;  %v897_v21 = vld [vmem:[#allocation2 + $0xf0] sm:$0xf]  ;;  %v1261_v22 = vld [vmem:[#allocation2 + $0xf4] sm:$0xf0]  ;;  %v950_v23 = vor.u32 %v1240_v14, %v947_v15 }
   0xb   :  { %v875_v24 = vld [vmem:[#allocation2 + $0xc8] sm:$0xf0]  ;;  %v898_v25 = vor.u32 %v1261_v22, %v897_v21  ;;  %v953_v26 = vld [vmem:[#allocation2 + $0x60] sm:$0xf]  ;;  %v1243_v27 = vld [vmem:[#allocation2 + $0x64] sm:$0xf0] }
   0xc   :  { %161 = vmatpush.bf16.msra.mxu1 %v894_v10  ;;  %253 = vmatpush.bf16.msra.mxu2 %v962_v18  ;;  %v1238_v28 = vld [vmem:[#allocation2 + $0x44] sm:$0xf]  ;;  %v939_v29 = vld [vmem:[#allocation2 + $0x48] sm:$0xf0]  ;;  %v954_v30 = vor.u32 %v1243_v27, %v953_v26  ;;  %v889_v31 = vld [vmem:[#allocation2 + $0xe0] sm:$0xf]  ;;  %v878_v34 = vor.u32 %v1254_v20, %v875_v24 }
   0xd   :  { %267 = vmatpush.bf16.msra.mxu3 %v958_v11  ;;  %147 = vmatpush.bf16.msra.mxu0 %v898_v25  ;;  %v1259_v32 = vld [vmem:[#allocation2 + $0xe4] sm:$0xf0]  ;;  %v945_v33 = vld [vmem:[#allocation2 + $0x50] sm:$0xf]  ;;  %v1252_v35 = vld [vmem:[#allocation2 + $0xb4] sm:$0xf]  ;;  %v942_v39 = vor.u32 %v1238_v28, %v939_v29 }
   0xe   :  { %v867_v36 = vld [vmem:[#allocation2 + $0xb8] sm:$0xf0]  ;;  %v890_v37 = vor.u32 %v1259_v32, %v889_v31  ;;  %v1241_v38 = vld [vmem:[#allocation2 + $0x54] sm:$0xf0]  ;;  %v1236_v40 = vld [vmem:[#allocation2 + $0x34] sm:$0xf] }
   0xf   :  { %v931_v41 = vld [vmem:[#allocation2 + $0x38] sm:$0xf0]  ;;  %v946_v42 = vor.u32 %v1241_v38, %v945_v33  ;;  %v881_v43 = vld [vmem:[#allocation2 + $0xd0] sm:$0xf]  ;;  %v1257_v44 = vld [vmem:[#allocation2 + $0xd4] sm:$0xf0]  ;;  %v870_v48 = vor.u32 %v1252_v35, %v867_v36 }
  0x10   :  { %162 = vmatpush.bf16.msra.mxu1 %v886_v19  ;;  %254 = vmatpush.bf16.msra.mxu2 %v954_v30  ;;  %v937_v45 = vld [vmem:[#allocation2 + $0x40] sm:$0xf]  ;;  %v1239_v46 = vld [vmem:[#allocation2 + $0x44] sm:$0xf0]  ;;  %v882_v47 = vor.u32 %v1257_v44, %v881_v43  ;;  %v1250_v49 = vld [vmem:[#allocation2 + $0xa4] sm:$0xf]  ;;  %v934_v51 = vor.u32 %v1236_v40, %v931_v41 }
  0x11   :  { %268 = vmatpush.bf16.msra.mxu3 %v950_v23  ;;  %148 = vmatpush.bf16.msra.mxu0 %v890_v37  ;;  %v859_v50 = vld [vmem:[#allocation2 + $0xa8] sm:$0xf0]  ;;  %v1234_v52 = vld [vmem:[#allocation2 + $0x24] sm:$0xf]  ;;  %v938_v54 = vor.u32 %v1239_v46, %v937_v45  ;;  %v873_v55 = vld [vmem:[#allocation2 + $0xc0] sm:$0xf] }
  0x12   :  { %v923_v53 = vld [vmem:[#allocation2 + $0x28] sm:$0xf0]  ;;  %v1255_v56 = vld [vmem:[#allocation2 + $0xc4] sm:$0xf0]  ;;  %v929_v57 = vld [vmem:[#allocation2 + $0x30] sm:$0xf]  ;;  %v862_v60 = vor.u32 %v1250_v49, %v859_v50 }
  0x13   :  { %v1237_v58 = vld [vmem:[#allocation2 + $0x34] sm:$0xf0]  ;;  %v874_v59 = vor.u32 %v1255_v56, %v873_v55  ;;  %v865_v61 = vld [vmem:[#allocation2 + $0xb0] sm:$0xf]  ;;  %v926_v63 = vor.u32 %v1234_v52, %v923_v53  ;;  %v1248_v0 = vld [vmem:[#allocation2 + $0x94] sm:$0xf] }
  0x14   :  { %163 = vmatpush.bf16.msra.mxu1 %v878_v34  ;;  %255 = vmatpush.bf16.msra.mxu2 %v946_v42  ;;  %v1253_v62 = vld [vmem:[#allocation2 + $0xb4] sm:$0xf0]  ;;  %v851_v1 = vld [vmem:[#allocation2 + $0x98] sm:$0xf0]  ;;  %v1232_v2 = vld [vmem:[#allocation2 + $0x14] sm:$0xf]  ;;  %v930_v3 = vor.u32 %v1237_v58, %v929_v57 }
  0x15   :  { %269 = vmatpush.bf16.msra.mxu3 %v942_v39  ;;  %149 = vmatpush.bf16.msra.mxu0 %v882_v47  ;;  %v915_v4 = vld [vmem:[#allocation2 + $0x18] sm:$0xf0]  ;;  %v921_v5 = vld [vmem:[#allocation2 + $0x20] sm:$0xf]  ;;  %v1235_v6 = vld [vmem:[#allocation2 + $0x24] sm:$0xf0]  ;;  %v866_v7 = vor.u32 %v1253_v62, %v865_v61  ;;  %v854_v8 = vor.u32 %v1248_v0, %v851_v1 }
  0x16   :  { %v1246_v9 = vld [vmem:[#allocation2 + $0x84] sm:$0xf]  ;;  %v857_v10 = vld [vmem:[#allocation2 + $0xa0] sm:$0xf]  ;;  %v1251_v11 = vld [vmem:[#allocation2 + $0xa4] sm:$0xf0]  ;;  %v918_v12 = vor.u32 %v1232_v2, %v915_v4  ;;  %v922_v16 = vor.u32 %v1235_v6, %v921_v5 }
  0x17   :  { %v843_v13 = vld [vmem:[#allocation2 + $0x88] sm:$0xf0]  ;;  %v1230_v14 = vld [vmem:[#allocation2 + $0x4] sm:$0xf]  ;;  %v1276_v17 = vld [vmem:[#allocation2 + $0x174] sm:$0xf]  ;;  %v858_v21 = vor.u32 %v1251_v11, %v857_v10 }
  0x18   :  { %164 = vmatpush.bf16.msra.mxu1 %v870_v48  ;;  %256 = vmatpush.bf16.msra.mxu2 %v938_v54  ;;  %v907_v15 = vld [vmem:[#allocation2 + $0x8] sm:$0xf0]  ;;  %v1028_v18 = vld [vmem:[#allocation2 + $0x178] sm:$0xf0]  ;;  %v1308_v19 = vld [vmem:[#allocation2 + $0xf4] sm:$0xf]  ;;  %v846_v24 = vor.u32 %v1246_v9, %v843_v13 }
  0x19   :  { %270 = vmatpush.bf16.msra.mxu3 %v934_v51  ;;  %150 = vmatpush.bf16.msra.mxu0 %v874_v59  ;;  %v1095_v20 = vld [vmem:[#allocation2 + $0xf8] sm:$0xf0]  ;;  %v913_v22 = vld [vmem:[#allocation2 + $0x10] sm:$0xf]  ;;  %v1233_v23 = vld [vmem:[#allocation2 + $0x14] sm:$0xf0]  ;;  %v910_v27 = vor.u32 %v1230_v14, %v907_v15  ;;  %v1031_v28 = vor.u32 %v1276_v17, %v1028_v18 }
  0x1a   :  { %v849_v25 = vld [vmem:[#allocation2 + $0x90] sm:$0xf]  ;;  %v1249_v26 = vld [vmem:[#allocation2 + $0x94] sm:$0xf0]  ;;  %v1274_v29 = vld [vmem:[#allocation2 + $0x164] sm:$0xf]  ;;  %v1098_v31 = vor.u32 %v1308_v19, %v1095_v20  ;;  %v914_v34 = vor.u32 %v1233_v23, %v913_v22 }
  0x1b   :  { %v1020_v30 = vld [vmem:[#allocation2 + $0x168] sm:$0xf0]  ;;  %v1306_v32 = vld [vmem:[#allocation2 + $0xe4] sm:$0xf]  ;;  %v905_v35 = vld [vmem:[#allocation2] sm:$0xf]  ;;  %v850_v36 = vor.u32 %v1249_v26, %v849_v25 }
  0x1c   :  { %165 = vmatpush.bf16.msra.mxu1 %v862_v60  ;;  %257 = vmatpush.bf16.msra.mxu2 %v930_v3  ;;  %v1087_v33 = vld [vmem:[#allocation2 + $0xe8] sm:$0xf0]  ;;  %v1231_v37 = vld [vmem:[#allocation2 + $0x4] sm:$0xf0]  ;;  %v1093_v38 = vld [vmem:[#allocation2 + $0xf0] sm:$0xf]  ;;  %v1023_v43 = vor.u32 %v1274_v29, %v1020_v30 }
  0x1d   :  { %271 = vmatpush.bf16.msra.mxu3 %v926_v63  ;;  %151 = vmatpush.bf16.msra.mxu0 %v866_v7  ;;  %v1309_v39 = vld [vmem:[#allocation2 + $0xf4] sm:$0xf0]  ;;  %v838_v40 = vld [vmem:[%s1424_s0 + $0xc] sm:$0xf]  ;;  %v841_v41 = vld [vmem:[#allocation2 + $0x80] sm:$0xf]  ;;  %v1090_v47 = vor.u32 %v1306_v32, %v1087_v33  ;;  %v906_v50 = vor.u32 %v1231_v37, %v905_v35 }
  0x1e   :  { %v1247_v42 = vld [vmem:[#allocation2 + $0x84] sm:$0xf0]  ;;  %v1026_v44 = vld [vmem:[#allocation2 + $0x170] sm:$0xf]  ;;  %v1277_v45 = vld [vmem:[#allocation2 + $0x174] sm:$0xf0]  ;;  %v1094_v53 = vor.u32 %v1309_v39, %v1093_v38 }
  0x1f   :  { %v31_v46 = vld [vmem:[%s1424_s0] sm:$0xf]  ;;  %v1272_v48 = vld [vmem:[#allocation2 + $0x154] sm:$0xf]  ;;  %v1012_v49 = vld [vmem:[#allocation2 + $0x158] sm:$0xf0]  ;;  %v842_v54 = vor.u32 %v1247_v42, %v841_v41  ;;  %v1027_v55 = vor.u32 %v1277_v45, %v1026_v44 }
  0x20   :  { %166 = vmatpush.bf16.msra.mxu1 %v854_v8  ;;  %258 = vmatpush.bf16.msra.mxu2 %v922_v16  ;;  %v1304_v51 = vld [vmem:[#allocation2 + $0xd4] sm:$0xf]  ;;  %v1079_v52 = vld [vmem:[#allocation2 + $0xd8] sm:$0xf0]  ;;  %v1085_v56 = vld [vmem:[#allocation2 + $0xe0] sm:$0xf]  ;;  %v1015_v58 = vor.u32 %v1272_v48, %v1012_v49 }
  0x21   :  { %272 = vmatpush.bf16.msra.mxu3 %v918_v12  ;;  %152 = vmatpush.bf16.msra.mxu0 %v858_v21  ;;  %v1307_v57 = vld [vmem:[#allocation2 + $0xe4] sm:$0xf0]  ;;  %v1018_v59 = vld [vmem:[#allocation2 + $0x160] sm:$0xf]  ;;  %v1082_v61 = vor.u32 %v1304_v51, %v1079_v52  ;;  %v1270_v62 = vld [vmem:[#allocation2 + $0x144] sm:$0xf] }
  0x22   :  { %v1275_v60 = vld [vmem:[#allocation2 + $0x164] sm:$0xf0]  ;;  %v1004_v63 = vld [vmem:[#allocation2 + $0x148] sm:$0xf0]  ;;  %v1302_v0 = vld [vmem:[#allocation2 + $0xc4] sm:$0xf]  ;;  %v1086_v2 = vor.u32 %v1307_v57, %v1085_v56 }
  0x23   :  { %v1071_v1 = vld [vmem:[#allocation2 + $0xc8] sm:$0xf0]  ;;  %v1019_v3 = vor.u32 %v1275_v60, %v1018_v59  ;;  %v1077_v4 = vld [vmem:[#allocation2 + $0xd0] sm:$0xf]  ;;  %v1305_v5 = vld [vmem:[#allocation2 + $0xd4] sm:$0xf0]  ;;  %v1007_v6 = vor.u32 %v1270_v62, %v1004_v63 }
  0x24   :  { %167 = vmatpush.bf16.msra.mxu1 %v846_v24  ;;  %259 = vmatpush.bf16.msra.mxu2 %v914_v34  ;;  %v1010_v7 = vld [vmem:[#allocation2 + $0x150] sm:$0xf]  ;;  %v1273_v8 = vld [vmem:[#allocation2 + $0x154] sm:$0xf0]  ;;  %v1074_v9 = vor.u32 %v1302_v0, %v1071_v1  ;;  %v1268_v10 = vld [vmem:[#allocation2 + $0x134] sm:$0xf]  ;;  %v1078_v14 = vor.u32 %v1305_v5, %v1077_v4 }
  0x25   :  { %273 = vmatpush.bf16.msra.mxu3 %v910_v27  ;;  %153 = vmatpush.bf16.msra.mxu0 %v850_v36  ;;  %v996_v11 = vld [vmem:[#allocation2 + $0x138] sm:$0xf0]  ;;  %v1300_v12 = vld [vmem:[#allocation2 + $0xb4] sm:$0xf]  ;;  %v1011_v15 = vor.u32 %v1273_v8, %v1010_v7  ;;  %v1069_v16 = vld [vmem:[#allocation2 + $0xc0] sm:$0xf] }
  0x26   :  { %v1063_v13 = vld [vmem:[#allocation2 + $0xb8] sm:$0xf0]  ;;  %v1303_v17 = vld [vmem:[#allocation2 + $0xc4] sm:$0xf0]  ;;  %v999_v18 = vor.u32 %v1268_v10, %v996_v11  ;;  %v1002_v19 = vld [vmem:[#allocation2 + $0x140] sm:$0xf] }
  0x27   :  { %168 = vmatmul.bf16.vlgmr.msra.gmra.mxu1 %v838_v40  ;;  %v1271_v20 = vld [vmem:[#allocation2 + $0x144] sm:$0xf0]  ;;  %v1066_v21 = vor.u32 %v1300_v12, %v1063_v13  ;;  %v1266_v22 = vld [vmem:[#allocation2 + $0x124] sm:$0xf]  ;;  %v988_v23 = vld [vmem:[#allocation2 + $0x128] sm:$0xf0]  ;;  %v1070_v26 = vor.u32 %v1303_v17, %v1069_v16 }
  0x28   :  { %391 = vmatpush.bf16.msrb.mxu1 %v1031_v28  ;;  %274 = vmatmul.bf16.vlgmr.msra.gmra.mxu3 %v31_v46  ;;  %v1298_v24 = vld [vmem:[#allocation2 + $0xa4] sm:$0xf]  ;;  %v1055_v25 = vld [vmem:[#allocation2 + $0xa8] sm:$0xf0]  ;;  %v1003_v27 = vor.u32 %v1271_v20, %v1002_v19  ;;  %v1061_v28 = vld [vmem:[#allocation2 + $0xb0] sm:$0xf]  ;;  %v991_v30 = vor.u32 %v1266_v22, %v988_v23 }
  0x29   :  { %563 = vmatpush.bf16.msrb.mxu3 %v1098_v31  ;;  %260 = vmatpush.bf16.msra.mxu2 %v906_v50  ;;  %v1301_v29 = vld [vmem:[#allocation2 + $0xb4] sm:$0xf0]  ;;  %v994_v31 = vld [vmem:[#allocation2 + $0x130] sm:$0xf]  ;;  %v1058_v33 = vor.u32 %v1298_v24, %v1055_v25  ;;  %v1264_v34 = vld [vmem:[#allocation2 + $0x114] sm:$0xf] }
  0x2a   :  { %154 = vmatpush.bf16.msra.mxu0 %v842_v54  ;;  %v1269_v32 = vld [vmem:[#allocation2 + $0x134] sm:$0xf0]  ;;  %v980_v35 = vld [vmem:[#allocation2 + $0x118] sm:$0xf0]  ;;  %v1296_v36 = vld [vmem:[#allocation2 + $0x94] sm:$0xf]  ;;  %v1062_v38 = vor.u32 %v1301_v29, %v1061_v28 }
  0x2b   :  { %v1047_v37 = vld [vmem:[#allocation2 + $0x98] sm:$0xf0]  ;;  %v995_v39 = vor.u32 %v1269_v32, %v994_v31  ;;  %v1299_v41 = vld [vmem:[#allocation2 + $0xa4] sm:$0xf0]  ;;  %v983_v42 = vor.u32 %v1264_v34, %v980_v35  ;;  %v986_v44 = vld [vmem:[#allocation2 + $0x120] sm:$0xf] }
  0x2c   :  { %392 = vmatpush.bf16.msrb.mxu1 %v1023_v43  ;;  %261 = vmatmul.bf16.vlgmr.msra.gmra.mxu2 %v31_v46  ;;  %v1262_v43 = vld [vmem:[#allocation2 + $0x104] sm:$0xf]  ;;  %v1267_v45 = vld [vmem:[#allocation2 + $0x124] sm:$0xf0]  ;;  %v1050_v46 = vor.u32 %v1296_v36, %v1047_v37  ;;  %v1039_v49 = vld [vmem:[#allocation2 + $0x88] sm:$0xf0] }
  0x2d   :  { %564 = vmatpush.bf16.msrb.mxu3 %v1090_v47  ;;  %550 = vmatpush.bf16.msrb.mxu2 %v1094_v53  ;;  %v972_v47 = vld [vmem:[#allocation2 + $0x108] sm:$0xf0]  ;;  %v1294_v48 = vld [vmem:[#allocation2 + $0x84] sm:$0xf]  ;;  %v1292_v50 = vld [vmem:[#allocation2 + $0x74] sm:$0xf] }
  0x2e   :  { %378 = vmatpush.bf16.msrb.mxu0 %v1027_v55  ;;  %v1159_v51 = vld [vmem:[#allocation2 + $0x78] sm:$0xf0]  ;;  %v1324_v52 = vld [vmem:[#allocation2 + $0x174] sm:$0xf]  ;;  %v987_v55 = vor.u32 %v1267_v45, %v986_v44  ;;  %v1045_v56 = vld [vmem:[#allocation2 + $0x90] sm:$0xf] }
  0x2f   :  { %155 = vmatmul.bf16.vlgmr.msra.gmra.mxu0 %v838_v40  ;;  %v1053_v40 = vld [vmem:[#allocation2 + $0xa0] sm:$0xf]  ;;  %v1224_v54 = vld [vmem:[#allocation2 + $0x178] sm:$0xf0]  ;;  %v1297_v57 = vld [vmem:[#allocation2 + $0x94] sm:$0xf0]  ;;  %v1162_v62 = vor.u32 %v1292_v50, %v1159_v51 }
  0x30   :  { %393 = vmatpush.bf16.msrb.mxu1 %v1015_v58  ;;  %v1054_v53 = vor.u32 %v1299_v41, %v1053_v40  ;;  %v975_v58 = vor.u32 %v1262_v43, %v972_v47  ;;  %v978_v59 = vld [vmem:[#allocation2 + $0x110] sm:$0xf]  ;;  %v1265_v60 = vld [vmem:[#allocation2 + $0x114] sm:$0xf0]  ;;  %v1290_v63 = vld [vmem:[#allocation2 + $0x64] sm:$0xf]  ;;  %v1227_v0 = vor.u32 %v1324_v52, %v1224_v54  ;;  %v1046_v5 = vor.u32 %v1297_v57, %v1045_v56 }
  0x31   :  { %565 = vmatpush.bf16.msrb.mxu3 %v1082_v61  ;;  %551 = vmatpush.bf16.msrb.mxu2 %v1086_v2  ;;  %v1042_v61 = vor.u32 %v1294_v48, %v1039_v49  ;;  %v1398_v1 = vld [vmem:[%s1424_s0 + $0x4] sm:$0xf]  ;;  %v1151_v2 = vld [vmem:[#allocation2 + $0x68] sm:$0xf0]  ;;  %v1037_v7 = vld [vmem:[#allocation2 + $0x80] sm:$0xf] }
  0x32   :  { %379 = vmatpush.bf16.msrb.mxu0 %v1019_v3  ;;  %v1322_v3 = vld [vmem:[#allocation2 + $0x164] sm:$0xf]  ;;  %v1216_v4 = vld [vmem:[#allocation2 + $0x168] sm:$0xf0]  ;;  %v1295_v8 = vld [vmem:[#allocation2 + $0x84] sm:$0xf0]  ;;  %v1154_v13 = vor.u32 %v1290_v63, %v1151_v2 }
  0x33   :  { %v1325_v10 = vld [vmem:[#allocation2 + $0x174] sm:$0xf0]  ;;  %v970_v11 = vld [vmem:[#allocation2 + $0x100] sm:$0xf]  ;;  %v1263_v12 = vld [vmem:[#allocation2 + $0x104] sm:$0xf0]  ;;  %v1219_v17 = vor.u32 %v1322_v3, %v1216_v4  ;;  %v1038_v20 = vor.u32 %v1295_v8, %v1037_v7 }
  0x34   :  { %394 = vmatpush.bf16.msrb.mxu1 %v1007_v6  ;;  %v979_v6 = vor.u32 %v1265_v60, %v978_v59  ;;  %v1293_v16 = vld [vmem:[#allocation2 + $0x74] sm:$0xf0]  ;;  %v1143_v19 = vld [vmem:[#allocation2 + $0x58] sm:$0xf0]  ;;  %v971_v24 = vor.u32 %v1263_v12, %v970_v11  ;;  %v1149_v29 = vld [vmem:[#allocation2 + $0x60] sm:$0xf] }
  0x35   :  { %566 = vmatpush.bf16.msrb.mxu3 %v1074_v9  ;;  %552 = vmatpush.bf16.msrb.mxu2 %v1078_v14  ;;  %v1222_v9 = vld [vmem:[#allocation2 + $0x170] sm:$0xf]  ;;  %v1208_v22 = vld [vmem:[#allocation2 + $0x158] sm:$0xf0]  ;;  %v1286_v32 = vld [vmem:[#allocation2 + $0x44] sm:$0xf] }
  0x36   :  { %380 = vmatpush.bf16.msrb.mxu0 %v1011_v15  ;;  %v1034_v14 = vld [vmem:[%s1424_s0 + $0x10] sm:$0xf]  ;;  %v1223_v23 = vor.u32 %v1325_v10, %v1222_v9  ;;  %v1318_v34 = vld [vmem:[#allocation2 + $0x144] sm:$0xf]  ;;  %v1200_v35 = vld [vmem:[#allocation2 + $0x148] sm:$0xf0] }
  0x37   :  { %v1157_v15 = vld [vmem:[#allocation2 + $0x70] sm:$0xf]  ;;  %v1203_v43 = vor.u32 %v1318_v34, %v1200_v35  ;;  %v1284_v44 = vld [vmem:[#allocation2 + $0x34] sm:$0xf]  ;;  %v1127_v45 = vld [vmem:[#allocation2 + $0x38] sm:$0xf0] }
  0x38   :  { %395 = vmatpush.bf16.msrb.mxu1 %v999_v18  ;;  %v1288_v18 = vld [vmem:[#allocation2 + $0x54] sm:$0xf]  ;;  %v1158_v25 = vor.u32 %v1293_v16, %v1157_v15  ;;  %v1141_v41 = vld [vmem:[#allocation2 + $0x50] sm:$0xf]  ;;  %v1192_v47 = vld [vmem:[#allocation2 + $0x138] sm:$0xf0]  ;;  %v1130_v52 = vor.u32 %v1284_v44, %v1127_v45 }
  0x39   :  { %567 = vmatpush.bf16.msrb.mxu3 %v1066_v21  ;;  %553 = vmatpush.bf16.msrb.mxu2 %v1070_v26  ;;  %v1320_v21 = vld [vmem:[#allocation2 + $0x154] sm:$0xf]  ;;  %v1214_v26 = vld [vmem:[#allocation2 + $0x160] sm:$0xf]  ;;  %v1146_v28 = vor.u32 %v1288_v18, %v1143_v19  ;;  %v1319_v51 = vld [vmem:[#allocation2 + $0x144] sm:$0xf0] }
  0x3a   :  { %381 = vmatpush.bf16.msrb.mxu0 %v1003_v27  ;;  %v1323_v27 = vld [vmem:[#allocation2 + $0x164] sm:$0xf0]  ;;  %v1211_v31 = vor.u32 %v1320_v21, %v1208_v22  ;;  %v1198_v50 = vld [vmem:[#allocation2 + $0x140] sm:$0xf]  ;;  %v1282_v56 = vld [vmem:[#allocation2 + $0x24] sm:$0xf] }
  0x3b   :  { %v1215_v36 = vor.u32 %v1323_v27, %v1214_v26  ;;  %v1287_v54 = vld [vmem:[#allocation2 + $0x44] sm:$0xf0]  ;;  %v1119_v57 = vld [vmem:[#allocation2 + $0x28] sm:$0xf0]  ;;  %v1199_v60 = vor.u32 %v1319_v51, %v1198_v50  ;;  %v1317_v63 = vld [vmem:[#allocation2 + $0x134] sm:$0xf0] }
  0x3c   :  { %396 = vmatpush.bf16.msrb.mxu1 %v991_v30  ;;  %v1291_v30 = vld [vmem:[#allocation2 + $0x64] sm:$0xf0]  ;;  %v1184_v59 = vld [vmem:[#allocation2 + $0x128] sm:$0xf0]  ;;  %v1285_v2 = vld [vmem:[#allocation2 + $0x34] sm:$0xf0] }
  0x3d   :  { %568 = vmatpush.bf16.msrb.mxu3 %v1058_v33  ;;  %554 = vmatpush.bf16.msrb.mxu2 %v1062_v38  ;;  %v1135_v33 = vld [vmem:[#allocation2 + $0x48] sm:$0xf0]  ;;  %v1150_v37 = vor.u32 %v1291_v30, %v1149_v29  ;;  %v1206_v38 = vld [vmem:[#allocation2 + $0x150] sm:$0xf]  ;;  %v1280_v4 = vld [vmem:[#allocation2 + $0x14] sm:$0xf] }
  0x3e   :  { %382 = vmatpush.bf16.msrb.mxu0 %v995_v39  ;;  %v1321_v39 = vld [vmem:[#allocation2 + $0x154] sm:$0xf0]  ;;  %v1138_v40 = vor.u32 %v1286_v32, %v1135_v33  ;;  %v1176_v7 = vld [vmem:[#allocation2 + $0x118] sm:$0xf0]  ;;  %v1182_v10 = vld [vmem:[#allocation2 + $0x120] sm:$0xf] }
  0x3f   :  { %v1207_v48 = vor.u32 %v1321_v39, %v1206_v38  ;;  %v1315_v11 = vld [vmem:[#allocation2 + $0x124] sm:$0xf0]  ;;  %v1278_v16 = vld [vmem:[#allocation2 + $0x4] sm:$0xf]  ;;  %v1168_v19 = vld [vmem:[#allocation2 + $0x108] sm:$0xf0] }
  0x40   :  { %397 = vmatpush.bf16.msrb.mxu1 %v983_v42  ;;  %v1289_v42 = vld [vmem:[#allocation2 + $0x54] sm:$0xf0]  ;;  %v1310_v18 = vld [vmem:[#allocation2 + $0x104] sm:$0xf]  ;;  %v1174_v22 = vld [vmem:[#allocation2 + $0x110] sm:$0xf] }
  0x41   :  { %569 = vmatpush.bf16.msrb.mxu3 %v1050_v46  ;;  %555 = vmatpush.bf16.msrb.mxu2 %v1054_v53  ;;  %v1316_v46 = vld [vmem:[#allocation2 + $0x134] sm:$0xf]  ;;  %v1142_v49 = vor.u32 %v1289_v42, %v1141_v41  ;;  %v1133_v53 = vld [vmem:[#allocation2 + $0x40] sm:$0xf]  ;;  %v1281_v26 = vld [vmem:[#allocation2 + $0x14] sm:$0xf0]  ;;  %v1171_v27 = vor.u32 %v1310_v18, %v1168_v19 }
  0x42   :  { %383 = vmatpush.bf16.msrb.mxu0 %v987_v55  ;;  %v1195_v55 = vor.u32 %v1316_v46, %v1192_v47  ;;  %v1166_v30 = vld [vmem:[#allocation2 + $0x100] sm:$0xf]  ;;  %v1033_v32 = vld [vmem:[%s1424_s0 + $0x4] sm:$0xf]  ;;  %v1279_v34 = vld [vmem:[#allocation2 + $0x4] sm:$0xf0] }
  0x43   :  { %v1101_v33 = vld [vmem:[#allocation2] sm:$0xf]  ;;  %v1163_v35 = vld [vmem:[%s1424_s0 + $0x8] sm:$0xf] }
  0x44   :  { %398 = vmatpush.bf16.msrb.mxu1 %v975_v58  ;;  %v1314_v58 = vld [vmem:[#allocation2 + $0x124] sm:$0xf]  ;;  %v1414_v46 = vld [vmem:[%s1426_s2] sm:$0x3] }
  0x45   :  { %570 = vmatpush.bf16.msrb.mxu3 %v1042_v61  ;;  %556 = vmatpush.bf16.msrb.mxu2 %v1046_v5  ;;  %v1134_v61 = vor.u32 %v1287_v54, %v1133_v53  ;;  %v1187_v3 = vor.u32 %v1314_v58, %v1184_v59  ;;  %v1111_v5 = vld [vmem:[#allocation2 + $0x18] sm:$0xf0] }
  0x46   :  { %384 = vmatpush.bf16.msrb.mxu0 %v979_v6  ;;  %v1312_v6 = vld [vmem:[#allocation2 + $0x114] sm:$0xf]  ;;  %v1114_v12 = vor.u32 %v1280_v4, %v1111_v5 }
  0x47   :  { %399 = vmatmul.bf16.vlgmr.msrb.gmra.mxu1 %v1398_v1  ;;  %v1179_v15 = vor.u32 %v1312_v6, %v1176_v7 }
  0x48   :  { %669 = vmatpush.bf16.msra.mxu1 %v1162_v62  ;;  %571 = vmatmul.bf16.vlgmr.msrb.gmra.mxu3 %v1034_v14  ;;  %v1190_v62 = vld [vmem:[#allocation2 + $0x130] sm:$0xf] }
  0x49   :  { %793 = vmatpush.bf16.msra.mxu3 %v1227_v0  ;;  %557 = vmatpush.bf16.msrb.mxu2 %v1038_v20  ;;  %v1122_v0 = vor.u32 %v1282_v56, %v1119_v57  ;;  %v1191_v8 = vor.u32 %v1317_v63, %v1190_v62  ;;  %v1183_v20 = vor.u32 %v1315_v11, %v1182_v10 }
  0x4a   :  { %385 = vmatpush.bf16.msrb.mxu0 %v971_v24 }
  0x4c   :  { %670 = vmatpush.bf16.msra.mxu1 %v1154_v13  ;;  %558 = vmatmul.bf16.vlgmr.msrb.gmra.mxu2 %v1034_v14  ;;  %v1117_v13 = vld [vmem:[#allocation2 + $0x20] sm:$0xf]  ;;  %v1283_v14 = vld [vmem:[#allocation2 + $0x24] sm:$0xf0] }
  0x4d   :  { %794 = vmatpush.bf16.msra.mxu3 %v1219_v17  ;;  %780 = vmatpush.bf16.msra.mxu2 %v1223_v23  ;;  %v1103_v17 = vld [vmem:[#allocation2 + $0x8] sm:$0xf0]  ;;  %v1118_v21 = vor.u32 %v1283_v14, %v1117_v13  ;;  %v1313_v23 = vld [vmem:[#allocation2 + $0x114] sm:$0xf0] }
  0x4e   :  { %656 = vmatpush.bf16.msra.mxu0 %v1158_v25  ;;  %v1106_v24 = vor.u32 %v1278_v16, %v1103_v17  ;;  %v1109_v25 = vld [vmem:[#allocation2 + $0x10] sm:$0xf] }
  0x4f   :  { %386 = vmatmul.bf16.vlgmr.msrb.gmra.mxu0 %v1398_v1  ;;  %v1125_v1 = vld [vmem:[#allocation2 + $0x30] sm:$0xf]  ;;  %v1110_v29 = vor.u32 %v1281_v26, %v1109_v25 }
  0x50   :  { %671 = vmatpush.bf16.msra.mxu1 %v1146_v28  ;;  %v1126_v9 = vor.u32 %v1285_v2, %v1125_v1  ;;  %v1175_v28 = vor.u32 %v1313_v23, %v1174_v22  ;;  %v407_v2 = vperm.slane %v1414_v46, 0 }
  0x51   :  { %795 = vmatpush.bf16.msra.mxu3 %v1211_v31  ;;  %781 = vmatpush.bf16.msra.mxu2 %v1215_v36  ;;  %v1311_v31 = vld [vmem:[#allocation2 + $0x104] sm:$0xf0] }
  0x52   :  { %657 = vmatpush.bf16.msra.mxu0 %v1150_v37  ;;  %v1167_v36 = vor.u32 %v1311_v31, %v1166_v30  ;;  %v1102_v37 = vor.u32 %v1279_v34, %v1101_v33 }
  0x54   :  { %672 = vmatpush.bf16.msra.mxu1 %v1138_v40 }
  0x55   :  { %796 = vmatpush.bf16.msra.mxu3 %v1203_v43  ;;  %782 = vmatpush.bf16.msra.mxu2 %v1207_v48  ;;  %v408_v48 = vperm.slane %v1414_v46, 1 }
  0x56   :  { %658 = vmatpush.bf16.msra.mxu0 %v1142_v49 }
  0x58   :  { %673 = vmatpush.bf16.msra.mxu1 %v1130_v52 }
  0x59   :  { %797 = vmatpush.bf16.msra.mxu3 %v1195_v55  ;;  %783 = vmatpush.bf16.msra.mxu2 %v1199_v60 }
  0x5a   :  { %659 = vmatpush.bf16.msra.mxu0 %v1134_v61 }
  0x5c   :  { %674 = vmatpush.bf16.msra.mxu1 %v1122_v0 }
  0x5d   :  { %798 = vmatpush.bf16.msra.mxu3 %v1187_v3  ;;  %784 = vmatpush.bf16.msra.mxu2 %v1191_v8 }
  0x5e   :  { %660 = vmatpush.bf16.msra.mxu0 %v1126_v9 }
  0x60   :  { %675 = vmatpush.bf16.msra.mxu1 %v1114_v12 }
  0x61   :  { %799 = vmatpush.bf16.msra.mxu3 %v1179_v15  ;;  %785 = vmatpush.bf16.msra.mxu2 %v1183_v20 }
  0x62   :  { %661 = vmatpush.bf16.msra.mxu0 %v1118_v21 }
  0x64   :  { %676 = vmatpush.bf16.msra.mxu1 %v1106_v24 }
  0x65   :  { %800 = vmatpush.bf16.msra.mxu3 %v1171_v27  ;;  %786 = vmatpush.bf16.msra.mxu2 %v1175_v28 }
  0x66   :  { %662 = vmatpush.bf16.msra.mxu0 %v1110_v29 }
  0x67   :  { %677 = vmatmul.bf16.vlgmr.msra.gmra.mxu1 %v1033_v32 }
  0x68   :  { %801 = vmatmul.bf16.vlgmr.msra.gmra.mxu3 %v1163_v35 }
  0x69   :  { %787 = vmatpush.bf16.msra.mxu2 %v1167_v36 }
  0x6a   :  { %663 = vmatpush.bf16.msra.mxu0 %v1102_v37 }
  0x6c   :  { %788 = vmatmul.bf16.vlgmr.msra.gmra.mxu2 %v1163_v35 }
  0x6d   :  { %664 = vmatmul.bf16.vlgmr.msra.gmra.mxu0 %v1033_v32 }
  0xa4   :  { %v169_v38 = vpop.f32.mrf.mxu1 }
  0xab   :  { %v275_v39 = vpop.f32.mrf.mxu3 }
  0xac   :  { %v171_v40 = vpop.f32.mrf.mxu1  ;;  %v156_v41 = vpop.f32.mrf.mxu0  ;;  %v276_v47 = vadd.f32 %v275_v39, %v169_v38 }
  0xaf   :  { %v262_v42 = vpop.f32.mrf.mxu2 }
  0xb0   :  { %v263_v62 = vadd.f32 %v262_v42, %v156_v41 }
  0xb3   :  { %v277_v43 = vpop.f32.mrf.mxu3 }
  0xb4   :  { %v158_v44 = vpop.f32.mrf.mxu0 }
  0xb7   :  { %v264_v45 = vpop.f32.mrf.mxu2 }
  0xc4   :  { %v400_v49 = vpop.f32.mrf.mxu1 }
  0xc5   :  { %v405_v50 = vadd.f32 %v400_v49, %v276_v47 }
  0xc7   :  { %v412_v51 = vadd.f32 %v408_v48, %v405_v50 }
  0xc9   :  { %v1032_v52 = vmul.f32 -1.442695, %v412_v51 }
  0xcb   :  { %1329 = vpow2.f32 %v1032_v52  ;;  %v572_v53 = vpop.f32.mrf.mxu3 }
  0xcc   :  { %v387_v54 = vpop.f32.mrf.mxu0  ;;  %v402_v55 = vpop.f32.mrf.mxu1 }
  0xcd   :  { %v404_v1 = vadd.f32 %v387_v54, %v263_v62 }
  0xcf   :  { %v559_v56 = vpop.f32.mrf.mxu2  ;;  %v411_v7 = vadd.f32 %v407_v2, %v404_v1 }
  0xd1   :  { %v1330_v57 = vpop.eup %1329 }
  0xd2   :  { %v416_v58 = vadd.f32 1.0, %v1330_v57 }
  0xd3   :  { %v574_v59 = vpop.f32.mrf.mxu3 }
  0xd4   :  { %v389_v60 = vpop.f32.mrf.mxu0  ;;  %1331 = vrcp.f32 %v416_v58  ;;  %v428_v4 = vand.u32 2147483648, %v416_v58  ;;  %v426_v6 = vand.u32 2147483647, %v416_v58  ;;  %vm422_vm1 = vweird.f32 %v416_v58 }
  0xd6   :  { %v429_v10 = vor.u32 1.1754944e-38, %v428_v4  ;;  %vm427_vm3 = vcmp.eq.f32.partialorder %v426_v6, 8.507059e+37 }
  0xd7   :  { %v561_v61 = vpop.f32.mrf.mxu2 }
  0xda   :  { %v1332_v63 = vpop.eup %1331 }
  0xdb   :  { %v418_v0 = vmul.f32 %v1332_v63, %v416_v58  ;;  %vm423_vm0 = vweird.f32 %v1332_v63 }
  0xdc   :  { %vm424_vm2 = vmor %vm422_vm1, %vm423_vm0 }
  0xdd   :  { %v419_v3 = vsub.f32 1.0, %v418_v0 }
  0xdf   :  { %v420_v5 = vmul.f32 %v1332_v63, %v419_v3 }
  0xe1   :  { %v421_v8 = vadd.f32 %v1332_v63, %v420_v5 }
  0xe3   :  { %v425_v11 = vsel %vm424_vm2, %v1332_v63, %v421_v8 }
  0xe4   :  { %v678_v9 = vpop.f32.mrf.mxu1  ;;  %v430_v12 = vsel %vm427_vm3, %v429_v10, %v425_v11 }
  0xe5   :  { %v432_v13 = vmul.f32 %v430_v12, %v411_v7  ;;  %v679_v15 = vadd.f32 %v678_v9, %v572_v53 }
  0xe7   :  { %v433_v14 = vpack.c.bf16 %v432_v13, %v432_v13 }
  0xe9   :  { %434 = vst [vmem:[%s1427_s3] sm:$0xf] %v433_v14 }
  0xea   :  { %v665_v17 = vpop.f32.mrf.mxu0 }
  0xeb   :  { %v802_v16 = vpop.f32.mrf.mxu3  ;;  %v666_v29 = vadd.f32 %v665_v17, %v559_v56 }
  0xec   :  { %v807_v18 = vadd.f32 %v802_v16, %v679_v15  ;;  %v680_v19 = vpop.f32.mrf.mxu1 }
  0xee   :  { %v809_v20 = vadd.f32 %v807_v18, %v408_v48 }
  0xef   :  { %v789_v22 = vpop.f32.mrf.mxu2 }
  0xf0   :  { %v1228_v21 = vmul.f32 -1.442695, %v809_v20  ;;  %v806_v33 = vadd.f32 %v789_v22, %v666_v29 }
  0xf2   :  { %1333 = vpow2.f32 %v1228_v21  ;;  %v667_v24 = vpop.f32.mrf.mxu0  ;;  %v808_v38 = vadd.f32 %v806_v33, %v407_v2 }
  0xf3   :  { %v804_v23 = vpop.f32.mrf.mxu3 }
  0xf7   :  { %v791_v26 = vpop.f32.mrf.mxu2 }
  0xf8   :  { %v1334_v25 = vpop.eup %1333 }
  0xf9   :  { %v813_v27 = vadd.f32 1.0, %v1334_v25 }
  0xfb   :  { %1335 = vrcp.f32 %v813_v27  ;;  %v825_v32 = vand.u32 2147483648, %v813_v27  ;;  %v823_v35 = vand.u32 2147483647, %v813_v27  ;;  %vm819_vm5 = vweird.f32 %v813_v27 }
  0xfd   :  { %v826_v37 = vor.u32 1.1754944e-38, %v825_v32  ;;  %vm824_vm7 = vcmp.eq.f32.partialorder %v823_v35, 8.507059e+37 }
 0x101   :  { %v1336_v28 = vpop.eup %1335 }
 0x102   :  { %v815_v30 = vmul.f32 %v1336_v28, %v813_v27  ;;  %vm820_vm4 = vweird.f32 %v1336_v28 }
 0x103   :  { %vm821_vm6 = vmor %vm819_vm5, %vm820_vm4 }
 0x104   :  { %v816_v31 = vsub.f32 1.0, %v815_v30 }
 0x106   :  { %v817_v34 = vmul.f32 %v1336_v28, %v816_v31 }
 0x108   :  { %v818_v36 = vadd.f32 %v1336_v28, %v817_v34 }
 0x10a   :  { %v822_v39 = vsel %vm821_vm6, %v1336_v28, %v818_v36 }
 0x10b   :  { %v827_v40 = vsel %vm824_vm7, %v826_v37, %v822_v39 }
 0x10c   :  { %v829_v41 = vmul.f32 %v827_v40, %v808_v38 }
 0x10e   :  { %v830_v42 = vpack.c.bf16 %v829_v41, %v829_v41 }
 0x110   :  { %1229 = vst [vmem:[%s1427_s3 + $0x4] sm:$0xf] %v830_v42 }
 0x111   :  { %837 = vsyncpa [#allocation3], 1 }

// kernel: a_call__.4
= control target key start
LH: loop header
LB: loop body
LE: loop exit
PB: predicated region body
PF: predicated region fallthrough
CT: control target
= control target key end

     0   :  { %8 = vsyncpa [#allocation3], 0  ;;  %s2657_s15 = smov [#allocation2]   ;;  %s2658_s17 = smov 128   ;;  %s2757_s0 = inlined_call_operand.vmem [shape: bf16[2,5,8,128], index: 0, kind: input, shape index: {}]   ;;  %s2758_s1 = inlined_call_operand.hbm [shape: bf16[3,128,256], index: 1, kind: input, shape index: {}]   ;;  %s2759_s2 = inlined_call_operand.vmem [shape: f32[1,256], index: 2, kind: input, shape index: {}]   ;;  %s2760_s3 = inlined_call_operand.vmem [shape: bf16[4,8,128], index: 3, kind: output, shape index: {}]  }
   0x1   :  { %s15_s14 = sshll.u32 %s2758_s1, 4  ;;  %s17_s16 = sshll.u32 %s2657_s15, 4  ;;  %s16_s14 = int_to_ptr.hbm [resolvable:$true] %s15_s14  ;;  %s18_s16 = int_to_ptr.vmem [resolvable:$true] %s17_s16 }
   0x2   :  { %s2659_s18 = smov 8  }
   0x3   :  { %23 = dma.hbm_to_vmem [thread:$0]  %s16_s14, 6144, %s18_s16, [#allocation3], %s2658_s17, %s2658_s17, %s2659_s18  }
   0x4   :  { %2655 = dma.done.wait [#allocation3], 6144  }
   0x5   :  { %2656 = vsyncadd [#allocation3], 4294961152  ;;  %v2450_v0 = vld [vmem:[#allocation2 + $0xf4] sm:$0xf]  ;;  %v1695_v1 = vld [vmem:[#allocation2 + $0xf8] sm:$0xf0] }
   0x6   :  { %v2434_v2 = vld [vmem:[#allocation2 + $0x74] sm:$0xf]  ;;  %v1698_v3 = vor.u32 %v2450_v0, %v1695_v1  ;;  %v1759_v4 = vld [vmem:[#allocation2 + $0x78] sm:$0xf0]  ;;  %v2448_v5 = vld [vmem:[#allocation2 + $0xe4] sm:$0xf] }
   0x7   :  { %v1687_v6 = vld [vmem:[#allocation2 + $0xe8] sm:$0xf0]  ;;  %v1762_v7 = vor.u32 %v2434_v2, %v1759_v4  ;;  %v2432_v8 = vld [vmem:[#allocation2 + $0x64] sm:$0xf]  ;;  %v2446_v12 = vld [vmem:[#allocation2 + $0xd4] sm:$0xf] }
   0x8   :  { %v1751_v9 = vld [vmem:[#allocation2 + $0x68] sm:$0xf0]  ;;  %160 = vmatpush.bf16.msra.mxu1 %v1698_v3  ;;  %v1690_v10 = vor.u32 %v2448_v5, %v1687_v6  ;;  %v1679_v13 = vld [vmem:[#allocation2 + $0xd8] sm:$0xf0]  ;;  %v2430_v14 = vld [vmem:[#allocation2 + $0x54] sm:$0xf] }
   0x9   :  { %266 = vmatpush.bf16.msra.mxu3 %v1762_v7  ;;  %v1754_v11 = vor.u32 %v2432_v8, %v1751_v9  ;;  %v1743_v15 = vld [vmem:[#allocation2 + $0x58] sm:$0xf0]  ;;  %v1757_v16 = vld [vmem:[#allocation2 + $0x70] sm:$0xf]  ;;  %v2435_v17 = vld [vmem:[#allocation2 + $0x74] sm:$0xf0]  ;;  %v1682_v19 = vor.u32 %v2446_v12, %v1679_v13 }
   0xa   :  { %v1758_v18 = vor.u32 %v2435_v17, %v1757_v16  ;;  %v2444_v20 = vld [vmem:[#allocation2 + $0xc4] sm:$0xf]  ;;  %v1693_v21 = vld [vmem:[#allocation2 + $0xf0] sm:$0xf]  ;;  %v2451_v22 = vld [vmem:[#allocation2 + $0xf4] sm:$0xf0]  ;;  %v1746_v23 = vor.u32 %v2430_v14, %v1743_v15 }
   0xb   :  { %v1671_v24 = vld [vmem:[#allocation2 + $0xc8] sm:$0xf0]  ;;  %v1694_v25 = vor.u32 %v2451_v22, %v1693_v21  ;;  %v1749_v26 = vld [vmem:[#allocation2 + $0x60] sm:$0xf]  ;;  %v2433_v27 = vld [vmem:[#allocation2 + $0x64] sm:$0xf0] }
   0xc   :  { %161 = vmatpush.bf16.msra.mxu1 %v1690_v10  ;;  %253 = vmatpush.bf16.msra.mxu2 %v1758_v18  ;;  %v2428_v28 = vld [vmem:[#allocation2 + $0x44] sm:$0xf]  ;;  %v1735_v29 = vld [vmem:[#allocation2 + $0x48] sm:$0xf0]  ;;  %v1750_v30 = vor.u32 %v2433_v27, %v1749_v26  ;;  %v1685_v31 = vld [vmem:[#allocation2 + $0xe0] sm:$0xf]  ;;  %v1674_v34 = vor.u32 %v2444_v20, %v1671_v24 }
   0xd   :  { %267 = vmatpush.bf16.msra.mxu3 %v1754_v11  ;;  %147 = vmatpush.bf16.msra.mxu0 %v1694_v25  ;;  %v2449_v32 = vld [vmem:[#allocation2 + $0xe4] sm:$0xf0]  ;;  %v1741_v33 = vld [vmem:[#allocation2 + $0x50] sm:$0xf]  ;;  %v2442_v35 = vld [vmem:[#allocation2 + $0xb4] sm:$0xf]  ;;  %v1738_v39 = vor.u32 %v2428_v28, %v1735_v29 }
   0xe   :  { %v1663_v36 = vld [vmem:[#allocation2 + $0xb8] sm:$0xf0]  ;;  %v1686_v37 = vor.u32 %v2449_v32, %v1685_v31  ;;  %v2431_v38 = vld [vmem:[#allocation2 + $0x54] sm:$0xf0]  ;;  %v2426_v40 = vld [vmem:[#allocation2 + $0x34] sm:$0xf] }
   0xf   :  { %v1727_v41 = vld [vmem:[#allocation2 + $0x38] sm:$0xf0]  ;;  %v1742_v42 = vor.u32 %v2431_v38, %v1741_v33  ;;  %v1677_v43 = vld [vmem:[#allocation2 + $0xd0] sm:$0xf]  ;;  %v2447_v44 = vld [vmem:[#allocation2 + $0xd4] sm:$0xf0]  ;;  %v1666_v48 = vor.u32 %v2442_v35, %v1663_v36 }
  0x10   :  { %162 = vmatpush.bf16.msra.mxu1 %v1682_v19  ;;  %254 = vmatpush.bf16.msra.mxu2 %v1750_v30  ;;  %v1733_v45 = vld [vmem:[#allocation2 + $0x40] sm:$0xf]  ;;  %v2429_v46 = vld [vmem:[#allocation2 + $0x44] sm:$0xf0]  ;;  %v1678_v47 = vor.u32 %v2447_v44, %v1677_v43  ;;  %v2440_v49 = vld [vmem:[#allocation2 + $0xa4] sm:$0xf]  ;;  %v1730_v51 = vor.u32 %v2426_v40, %v1727_v41 }
  0x11   :  { %268 = vmatpush.bf16.msra.mxu3 %v1746_v23  ;;  %148 = vmatpush.bf16.msra.mxu0 %v1686_v37  ;;  %v1655_v50 = vld [vmem:[#allocation2 + $0xa8] sm:$0xf0]  ;;  %v2424_v52 = vld [vmem:[#allocation2 + $0x24] sm:$0xf]  ;;  %v1734_v54 = vor.u32 %v2429_v46, %v1733_v45  ;;  %v1669_v55 = vld [vmem:[#allocation2 + $0xc0] sm:$0xf] }
  0x12   :  { %v1719_v53 = vld [vmem:[#allocation2 + $0x28] sm:$0xf0]  ;;  %v2445_v56 = vld [vmem:[#allocation2 + $0xc4] sm:$0xf0]  ;;  %v1725_v57 = vld [vmem:[#allocation2 + $0x30] sm:$0xf]  ;;  %v1658_v60 = vor.u32 %v2440_v49, %v1655_v50 }
  0x13   :  { %v2427_v58 = vld [vmem:[#allocation2 + $0x34] sm:$0xf0]  ;;  %v1670_v59 = vor.u32 %v2445_v56, %v1669_v55  ;;  %v1661_v61 = vld [vmem:[#allocation2 + $0xb0] sm:$0xf]  ;;  %v1722_v63 = vor.u32 %v2424_v52, %v1719_v53  ;;  %v2438_v0 = vld [vmem:[#allocation2 + $0x94] sm:$0xf] }
  0x14   :  { %163 = vmatpush.bf16.msra.mxu1 %v1674_v34  ;;  %255 = vmatpush.bf16.msra.mxu2 %v1742_v42  ;;  %v2443_v62 = vld [vmem:[#allocation2 + $0xb4] sm:$0xf0]  ;;  %v1647_v1 = vld [vmem:[#allocation2 + $0x98] sm:$0xf0]  ;;  %v2422_v2 = vld [vmem:[#allocation2 + $0x14] sm:$0xf]  ;;  %v1726_v3 = vor.u32 %v2427_v58, %v1725_v57 }
  0x15   :  { %269 = vmatpush.bf16.msra.mxu3 %v1738_v39  ;;  %149 = vmatpush.bf16.msra.mxu0 %v1678_v47  ;;  %v1711_v4 = vld [vmem:[#allocation2 + $0x18] sm:$0xf0]  ;;  %v1717_v5 = vld [vmem:[#allocation2 + $0x20] sm:$0xf]  ;;  %v2425_v6 = vld [vmem:[#allocation2 + $0x24] sm:$0xf0]  ;;  %v1662_v7 = vor.u32 %v2443_v62, %v1661_v61  ;;  %v1650_v8 = vor.u32 %v2438_v0, %v1647_v1 }
  0x16   :  { %v2436_v9 = vld [vmem:[#allocation2 + $0x84] sm:$0xf]  ;;  %v1653_v10 = vld [vmem:[#allocation2 + $0xa0] sm:$0xf]  ;;  %v2441_v11 = vld [vmem:[#allocation2 + $0xa4] sm:$0xf0]  ;;  %v1714_v12 = vor.u32 %v2422_v2, %v1711_v4  ;;  %v1718_v16 = vor.u32 %v2425_v6, %v1717_v5 }
  0x17   :  { %v1639_v13 = vld [vmem:[#allocation2 + $0x88] sm:$0xf0]  ;;  %v2420_v14 = vld [vmem:[#allocation2 + $0x4] sm:$0xf]  ;;  %v2466_v17 = vld [vmem:[#allocation2 + $0x174] sm:$0xf]  ;;  %v1654_v21 = vor.u32 %v2441_v11, %v1653_v10 }
  0x18   :  { %164 = vmatpush.bf16.msra.mxu1 %v1666_v48  ;;  %256 = vmatpush.bf16.msra.mxu2 %v1734_v54  ;;  %v1703_v15 = vld [vmem:[#allocation2 + $0x8] sm:$0xf0]  ;;  %v1824_v18 = vld [vmem:[#allocation2 + $0x178] sm:$0xf0]  ;;  %v2498_v19 = vld [vmem:[#allocation2 + $0xf4] sm:$0xf]  ;;  %v1642_v24 = vor.u32 %v2436_v9, %v1639_v13 }
  0x19   :  { %270 = vmatpush.bf16.msra.mxu3 %v1730_v51  ;;  %150 = vmatpush.bf16.msra.mxu0 %v1670_v59  ;;  %v1891_v20 = vld [vmem:[#allocation2 + $0xf8] sm:$0xf0]  ;;  %v1709_v22 = vld [vmem:[#allocation2 + $0x10] sm:$0xf]  ;;  %v2423_v23 = vld [vmem:[#allocation2 + $0x14] sm:$0xf0]  ;;  %v1706_v27 = vor.u32 %v2420_v14, %v1703_v15  ;;  %v1827_v28 = vor.u32 %v2466_v17, %v1824_v18 }
  0x1a   :  { %v1645_v25 = vld [vmem:[#allocation2 + $0x90] sm:$0xf]  ;;  %v2439_v26 = vld [vmem:[#allocation2 + $0x94] sm:$0xf0]  ;;  %v2464_v29 = vld [vmem:[#allocation2 + $0x164] sm:$0xf]  ;;  %v1894_v31 = vor.u32 %v2498_v19, %v1891_v20  ;;  %v1710_v34 = vor.u32 %v2423_v23, %v1709_v22 }
  0x1b   :  { %v1816_v30 = vld [vmem:[#allocation2 + $0x168] sm:$0xf0]  ;;  %v2496_v32 = vld [vmem:[#allocation2 + $0xe4] sm:$0xf]  ;;  %v1701_v35 = vld [vmem:[#allocation2] sm:$0xf]  ;;  %v1646_v36 = vor.u32 %v2439_v26, %v1645_v25 }
  0x1c   :  { %165 = vmatpush.bf16.msra.mxu1 %v1658_v60  ;;  %257 = vmatpush.bf16.msra.mxu2 %v1726_v3  ;;  %v1883_v33 = vld [vmem:[#allocation2 + $0xe8] sm:$0xf0]  ;;  %v2421_v37 = vld [vmem:[#allocation2 + $0x4] sm:$0xf0]  ;;  %v1889_v38 = vld [vmem:[#allocation2 + $0xf0] sm:$0xf]  ;;  %v1819_v43 = vor.u32 %v2464_v29, %v1816_v30 }
  0x1d   :  { %271 = vmatpush.bf16.msra.mxu3 %v1722_v63  ;;  %151 = vmatpush.bf16.msra.mxu0 %v1662_v7  ;;  %v2499_v39 = vld [vmem:[#allocation2 + $0xf4] sm:$0xf0]  ;;  %v1634_v40 = vld [vmem:[%s2757_s0 + $0x14] sm:$0xf]  ;;  %v1637_v41 = vld [vmem:[#allocation2 + $0x80] sm:$0xf]  ;;  %v1886_v47 = vor.u32 %v2496_v32, %v1883_v33  ;;  %v1702_v50 = vor.u32 %v2421_v37, %v1701_v35 }
  0x1e   :  { %v2437_v42 = vld [vmem:[#allocation2 + $0x84] sm:$0xf0]  ;;  %v1822_v44 = vld [vmem:[#allocation2 + $0x170] sm:$0xf]  ;;  %v2467_v45 = vld [vmem:[#allocation2 + $0x174] sm:$0xf0]  ;;  %v1890_v53 = vor.u32 %v2499_v39, %v1889_v38 }
  0x1f   :  { %v31_v46 = vld [vmem:[%s2757_s0] sm:$0xf]  ;;  %v2462_v48 = vld [vmem:[#allocation2 + $0x154] sm:$0xf]  ;;  %v1808_v49 = vld [vmem:[#allocation2 + $0x158] sm:$0xf0]  ;;  %v1638_v54 = vor.u32 %v2437_v42, %v1637_v41  ;;  %v1823_v55 = vor.u32 %v2467_v45, %v1822_v44 }
  0x20   :  { %166 = vmatpush.bf16.msra.mxu1 %v1650_v8  ;;  %258 = vmatpush.bf16.msra.mxu2 %v1718_v16  ;;  %v2494_v51 = vld [vmem:[#allocation2 + $0xd4] sm:$0xf]  ;;  %v1875_v52 = vld [vmem:[#allocation2 + $0xd8] sm:$0xf0]  ;;  %v1881_v56 = vld [vmem:[#allocation2 + $0xe0] sm:$0xf]  ;;  %v1811_v58 = vor.u32 %v2462_v48, %v1808_v49 }
  0x21   :  { %272 = vmatpush.bf16.msra.mxu3 %v1714_v12  ;;  %152 = vmatpush.bf16.msra.mxu0 %v1654_v21  ;;  %v2497_v57 = vld [vmem:[#allocation2 + $0xe4] sm:$0xf0]  ;;  %v1814_v59 = vld [vmem:[#allocation2 + $0x160] sm:$0xf]  ;;  %v1878_v61 = vor.u32 %v2494_v51, %v1875_v52  ;;  %v2460_v62 = vld [vmem:[#allocation2 + $0x144] sm:$0xf] }
  0x22   :  { %v2465_v60 = vld [vmem:[#allocation2 + $0x164] sm:$0xf0]  ;;  %v1800_v63 = vld [vmem:[#allocation2 + $0x148] sm:$0xf0]  ;;  %v2492_v0 = vld [vmem:[#allocation2 + $0xc4] sm:$0xf]  ;;  %v1882_v2 = vor.u32 %v2497_v57, %v1881_v56 }
  0x23   :  { %v1867_v1 = vld [vmem:[#allocation2 + $0xc8] sm:$0xf0]  ;;  %v1815_v3 = vor.u32 %v2465_v60, %v1814_v59  ;;  %v1873_v4 = vld [vmem:[#allocation2 + $0xd0] sm:$0xf]  ;;  %v2495_v5 = vld [vmem:[#allocation2 + $0xd4] sm:$0xf0]  ;;  %v1803_v6 = vor.u32 %v2460_v62, %v1800_v63 }
  0x24   :  { %167 = vmatpush.bf16.msra.mxu1 %v1642_v24  ;;  %259 = vmatpush.bf16.msra.mxu2 %v1710_v34  ;;  %v1806_v7 = vld [vmem:[#allocation2 + $0x150] sm:$0xf]  ;;  %v2463_v8 = vld [vmem:[#allocation2 + $0x154] sm:$0xf0]  ;;  %v1870_v9 = vor.u32 %v2492_v0, %v1867_v1  ;;  %v2458_v10 = vld [vmem:[#allocation2 + $0x134] sm:$0xf]  ;;  %v1874_v14 = vor.u32 %v2495_v5, %v1873_v4 }
  0x25   :  { %273 = vmatpush.bf16.msra.mxu3 %v1706_v27  ;;  %153 = vmatpush.bf16.msra.mxu0 %v1646_v36  ;;  %v1792_v11 = vld [vmem:[#allocation2 + $0x138] sm:$0xf0]  ;;  %v2490_v12 = vld [vmem:[#allocation2 + $0xb4] sm:$0xf]  ;;  %v1807_v15 = vor.u32 %v2463_v8, %v1806_v7  ;;  %v1865_v16 = vld [vmem:[#allocation2 + $0xc0] sm:$0xf] }
  0x26   :  { %v1859_v13 = vld [vmem:[#allocation2 + $0xb8] sm:$0xf0]  ;;  %v2493_v17 = vld [vmem:[#allocation2 + $0xc4] sm:$0xf0]  ;;  %v1795_v18 = vor.u32 %v2458_v10, %v1792_v11  ;;  %v1798_v19 = vld [vmem:[#allocation2 + $0x140] sm:$0xf] }
  0x27   :  { %168 = vmatmul.bf16.vlgmr.msra.gmra.mxu1 %v1634_v40  ;;  %v2461_v20 = vld [vmem:[#allocation2 + $0x144] sm:$0xf0]  ;;  %v1862_v21 = vor.u32 %v2490_v12, %v1859_v13  ;;  %v2456_v22 = vld [vmem:[#allocation2 + $0x124] sm:$0xf]  ;;  %v1784_v23 = vld [vmem:[#allocation2 + $0x128] sm:$0xf0]  ;;  %v1866_v26 = vor.u32 %v2493_v17, %v1865_v16 }
  0x28   :  { %391 = vmatpush.bf16.msrb.mxu1 %v1827_v28  ;;  %274 = vmatmul.bf16.vlgmr.msra.gmra.mxu3 %v31_v46  ;;  %v2488_v24 = vld [vmem:[#allocation2 + $0xa4] sm:$0xf]  ;;  %v1851_v25 = vld [vmem:[#allocation2 + $0xa8] sm:$0xf0]  ;;  %v1799_v27 = vor.u32 %v2461_v20, %v1798_v19  ;;  %v1857_v28 = vld [vmem:[#allocation2 + $0xb0] sm:$0xf]  ;;  %v1787_v30 = vor.u32 %v2456_v22, %v1784_v23 }
  0x29   :  { %563 = vmatpush.bf16.msrb.mxu3 %v1894_v31  ;;  %260 = vmatpush.bf16.msra.mxu2 %v1702_v50  ;;  %v2491_v29 = vld [vmem:[#allocation2 + $0xb4] sm:$0xf0]  ;;  %v1790_v31 = vld [vmem:[#allocation2 + $0x130] sm:$0xf]  ;;  %v1854_v33 = vor.u32 %v2488_v24, %v1851_v25  ;;  %v2454_v34 = vld [vmem:[#allocation2 + $0x114] sm:$0xf] }
  0x2a   :  { %154 = vmatpush.bf16.msra.mxu0 %v1638_v54  ;;  %v2459_v32 = vld [vmem:[#allocation2 + $0x134] sm:$0xf0]  ;;  %v1776_v35 = vld [vmem:[#allocation2 + $0x118] sm:$0xf0]  ;;  %v2486_v36 = vld [vmem:[#allocation2 + $0x94] sm:$0xf]  ;;  %v1858_v38 = vor.u32 %v2491_v29, %v1857_v28 }
  0x2b   :  { %v1843_v37 = vld [vmem:[#allocation2 + $0x98] sm:$0xf0]  ;;  %v1791_v39 = vor.u32 %v2459_v32, %v1790_v31  ;;  %v2489_v41 = vld [vmem:[#allocation2 + $0xa4] sm:$0xf0]  ;;  %v1779_v42 = vor.u32 %v2454_v34, %v1776_v35  ;;  %v1782_v44 = vld [vmem:[#allocation2 + $0x120] sm:$0xf] }
  0x2c   :  { %392 = vmatpush.bf16.msrb.mxu1 %v1819_v43  ;;  %261 = vmatmul.bf16.vlgmr.msra.gmra.mxu2 %v31_v46  ;;  %v2452_v43 = vld [vmem:[#allocation2 + $0x104] sm:$0xf]  ;;  %v2457_v45 = vld [vmem:[#allocation2 + $0x124] sm:$0xf0]  ;;  %v1846_v46 = vor.u32 %v2486_v36, %v1843_v37  ;;  %v1835_v49 = vld [vmem:[#allocation2 + $0x88] sm:$0xf0] }
  0x2d   :  { %564 = vmatpush.bf16.msrb.mxu3 %v1886_v47  ;;  %550 = vmatpush.bf16.msrb.mxu2 %v1890_v53  ;;  %v1768_v47 = vld [vmem:[#allocation2 + $0x108] sm:$0xf0]  ;;  %v2484_v48 = vld [vmem:[#allocation2 + $0x84] sm:$0xf]  ;;  %v2482_v50 = vld [vmem:[#allocation2 + $0x74] sm:$0xf] }
  0x2e   :  { %378 = vmatpush.bf16.msrb.mxu0 %v1823_v55  ;;  %v1955_v51 = vld [vmem:[#allocation2 + $0x78] sm:$0xf0]  ;;  %v2514_v52 = vld [vmem:[#allocation2 + $0x174] sm:$0xf]  ;;  %v1783_v55 = vor.u32 %v2457_v45, %v1782_v44  ;;  %v1841_v56 = vld [vmem:[#allocation2 + $0x90] sm:$0xf] }
  0x2f   :  { %155 = vmatmul.bf16.vlgmr.msra.gmra.mxu0 %v1634_v40  ;;  %v1849_v40 = vld [vmem:[#allocation2 + $0xa0] sm:$0xf]  ;;  %v2020_v54 = vld [vmem:[#allocation2 + $0x178] sm:$0xf0]  ;;  %v2487_v57 = vld [vmem:[#allocation2 + $0x94] sm:$0xf0]  ;;  %v1958_v62 = vor.u32 %v2482_v50, %v1955_v51 }
  0x30   :  { %393 = vmatpush.bf16.msrb.mxu1 %v1811_v58  ;;  %v1850_v53 = vor.u32 %v2489_v41, %v1849_v40  ;;  %v1771_v58 = vor.u32 %v2452_v43, %v1768_v47  ;;  %v1774_v59 = vld [vmem:[#allocation2 + $0x110] sm:$0xf]  ;;  %v2455_v60 = vld [vmem:[#allocation2 + $0x114] sm:$0xf0]  ;;  %v2480_v63 = vld [vmem:[#allocation2 + $0x64] sm:$0xf]  ;;  %v2023_v0 = vor.u32 %v2514_v52, %v2020_v54  ;;  %v1842_v5 = vor.u32 %v2487_v57, %v1841_v56 }
  0x31   :  { %565 = vmatpush.bf16.msrb.mxu3 %v1878_v61  ;;  %551 = vmatpush.bf16.msrb.mxu2 %v1882_v2  ;;  %v1838_v61 = vor.u32 %v2484_v48, %v1835_v49  ;;  %v2692_v1 = vld [vmem:[%s2757_s0 + $0x4] sm:$0xf]  ;;  %v1947_v2 = vld [vmem:[#allocation2 + $0x68] sm:$0xf0]  ;;  %v1833_v7 = vld [vmem:[#allocation2 + $0x80] sm:$0xf] }
  0x32   :  { %379 = vmatpush.bf16.msrb.mxu0 %v1815_v3  ;;  %v2512_v3 = vld [vmem:[#allocation2 + $0x164] sm:$0xf]  ;;  %v2012_v4 = vld [vmem:[#allocation2 + $0x168] sm:$0xf0]  ;;  %v2485_v8 = vld [vmem:[#allocation2 + $0x84] sm:$0xf0]  ;;  %v1950_v13 = vor.u32 %v2480_v63, %v1947_v2 }
  0x33   :  { %v2515_v10 = vld [vmem:[#allocation2 + $0x174] sm:$0xf0]  ;;  %v1766_v11 = vld [vmem:[#allocation2 + $0x100] sm:$0xf]  ;;  %v2453_v12 = vld [vmem:[#allocation2 + $0x104] sm:$0xf0]  ;;  %v2015_v17 = vor.u32 %v2512_v3, %v2012_v4  ;;  %v1834_v20 = vor.u32 %v2485_v8, %v1833_v7 }
  0x34   :  { %394 = vmatpush.bf16.msrb.mxu1 %v1803_v6  ;;  %v1775_v6 = vor.u32 %v2455_v60, %v1774_v59  ;;  %v2483_v16 = vld [vmem:[#allocation2 + $0x74] sm:$0xf0]  ;;  %v1939_v19 = vld [vmem:[#allocation2 + $0x58] sm:$0xf0]  ;;  %v1767_v24 = vor.u32 %v2453_v12, %v1766_v11  ;;  %v1945_v29 = vld [vmem:[#allocation2 + $0x60] sm:$0xf] }
  0x35   :  { %566 = vmatpush.bf16.msrb.mxu3 %v1870_v9  ;;  %552 = vmatpush.bf16.msrb.mxu2 %v1874_v14  ;;  %v2018_v9 = vld [vmem:[#allocation2 + $0x170] sm:$0xf]  ;;  %v1830_v14 = vld [vmem:[%s2757_s0 + $0x18] sm:$0xf]  ;;  %v2004_v22 = vld [vmem:[#allocation2 + $0x158] sm:$0xf0] }
  0x36   :  { %380 = vmatpush.bf16.msrb.mxu0 %v1807_v15  ;;  %v1953_v15 = vld [vmem:[#allocation2 + $0x70] sm:$0xf]  ;;  %v2019_v23 = vor.u32 %v2515_v10, %v2018_v9  ;;  %v2476_v32 = vld [vmem:[#allocation2 + $0x44] sm:$0xf]  ;;  %v1996_v35 = vld [vmem:[#allocation2 + $0x148] sm:$0xf0] }
  0x37   :  { %v1954_v25 = vor.u32 %v2483_v16, %v1953_v15  ;;  %v2508_v34 = vld [vmem:[#allocation2 + $0x144] sm:$0xf]  ;;  %v1937_v41 = vld [vmem:[#allocation2 + $0x50] sm:$0xf]  ;;  %v2474_v44 = vld [vmem:[#allocation2 + $0x34] sm:$0xf] }
  0x38   :  { %395 = vmatpush.bf16.msrb.mxu1 %v1795_v18  ;;  %v2478_v18 = vld [vmem:[#allocation2 + $0x54] sm:$0xf]  ;;  %v1999_v43 = vor.u32 %v2508_v34, %v1996_v35  ;;  %v1923_v45 = vld [vmem:[#allocation2 + $0x38] sm:$0xf0]  ;;  %v1994_v50 = vld [vmem:[#allocation2 + $0x140] sm:$0xf] }
  0x39   :  { %567 = vmatpush.bf16.msrb.mxu3 %v1862_v21  ;;  %553 = vmatpush.bf16.msrb.mxu2 %v1866_v26  ;;  %v2510_v21 = vld [vmem:[#allocation2 + $0x154] sm:$0xf]  ;;  %v2010_v26 = vld [vmem:[#allocation2 + $0x160] sm:$0xf]  ;;  %v1942_v28 = vor.u32 %v2478_v18, %v1939_v19  ;;  %v1988_v47 = vld [vmem:[#allocation2 + $0x138] sm:$0xf0]  ;;  %v1926_v52 = vor.u32 %v2474_v44, %v1923_v45 }
  0x3a   :  { %381 = vmatpush.bf16.msrb.mxu0 %v1799_v27  ;;  %v2513_v27 = vld [vmem:[#allocation2 + $0x164] sm:$0xf0]  ;;  %v2007_v31 = vor.u32 %v2510_v21, %v2004_v22  ;;  %v2472_v56 = vld [vmem:[#allocation2 + $0x24] sm:$0xf]  ;;  %v1915_v57 = vld [vmem:[#allocation2 + $0x28] sm:$0xf0] }
  0x3b   :  { %v2011_v36 = vor.u32 %v2513_v27, %v2010_v26  ;;  %v2509_v51 = vld [vmem:[#allocation2 + $0x144] sm:$0xf0]  ;;  %v1980_v59 = vld [vmem:[#allocation2 + $0x128] sm:$0xf0]  ;;  %v2507_v63 = vld [vmem:[#allocation2 + $0x134] sm:$0xf0] }
  0x3c   :  { %396 = vmatpush.bf16.msrb.mxu1 %v1787_v30  ;;  %v2481_v30 = vld [vmem:[#allocation2 + $0x64] sm:$0xf0]  ;;  %v1995_v60 = vor.u32 %v2509_v51, %v1994_v50  ;;  %v2475_v2 = vld [vmem:[#allocation2 + $0x34] sm:$0xf0]  ;;  %v2470_v4 = vld [vmem:[#allocation2 + $0x14] sm:$0xf] }
  0x3d   :  { %568 = vmatpush.bf16.msrb.mxu3 %v1854_v33  ;;  %554 = vmatpush.bf16.msrb.mxu2 %v1858_v38  ;;  %v1931_v33 = vld [vmem:[#allocation2 + $0x48] sm:$0xf0]  ;;  %v1946_v37 = vor.u32 %v2481_v30, %v1945_v29  ;;  %v2002_v38 = vld [vmem:[#allocation2 + $0x150] sm:$0xf]  ;;  %v2477_v54 = vld [vmem:[#allocation2 + $0x44] sm:$0xf0] }
  0x3e   :  { %382 = vmatpush.bf16.msrb.mxu0 %v1791_v39  ;;  %v2511_v39 = vld [vmem:[#allocation2 + $0x154] sm:$0xf0]  ;;  %v1934_v40 = vor.u32 %v2476_v32, %v1931_v33  ;;  %v1972_v7 = vld [vmem:[#allocation2 + $0x118] sm:$0xf0]  ;;  %v1978_v10 = vld [vmem:[#allocation2 + $0x120] sm:$0xf] }
  0x3f   :  { %v2003_v48 = vor.u32 %v2511_v39, %v2002_v38  ;;  %v2505_v11 = vld [vmem:[#allocation2 + $0x124] sm:$0xf0]  ;;  %v2500_v18 = vld [vmem:[#allocation2 + $0x104] sm:$0xf]  ;;  %v1964_v19 = vld [vmem:[#allocation2 + $0x108] sm:$0xf0] }
  0x40   :  { %397 = vmatpush.bf16.msrb.mxu1 %v1779_v42  ;;  %v2479_v42 = vld [vmem:[#allocation2 + $0x54] sm:$0xf0]  ;;  %v2473_v15 = vld [vmem:[#allocation2 + $0x24] sm:$0xf0]  ;;  %v2088_v21 = vld [vmem:[#allocation2 + $0xf8] sm:$0xf0] }
  0x41   :  { %569 = vmatpush.bf16.msrb.mxu3 %v1846_v46  ;;  %555 = vmatpush.bf16.msrb.mxu2 %v1850_v53  ;;  %v2506_v46 = vld [vmem:[#allocation2 + $0x134] sm:$0xf]  ;;  %v1938_v49 = vor.u32 %v2479_v42, %v1937_v41  ;;  %v1929_v53 = vld [vmem:[#allocation2 + $0x40] sm:$0xf]  ;;  %v1970_v26 = vld [vmem:[#allocation2 + $0x110] sm:$0xf] }
  0x42   :  { %383 = vmatpush.bf16.msrb.mxu0 %v1783_v55  ;;  %v1991_v55 = vor.u32 %v2506_v46, %v1988_v47  ;;  %v2530_v22 = vld [vmem:[#allocation2 + $0x74] sm:$0xf]  ;;  %v2503_v27 = vld [vmem:[#allocation2 + $0x114] sm:$0xf0]  ;;  %v1905_v29 = vld [vmem:[#allocation2 + $0x10] sm:$0xf] }
  0x43   :  { %v2471_v30 = vld [vmem:[#allocation2 + $0x14] sm:$0xf0]  ;;  %v2544_v33 = vld [vmem:[#allocation2 + $0xe4] sm:$0xf]  ;;  %v2080_v34 = vld [vmem:[#allocation2 + $0xe8] sm:$0xf0]  ;;  %v1971_v39 = vor.u32 %v2503_v27, %v1970_v26 }
  0x44   :  { %398 = vmatpush.bf16.msrb.mxu1 %v1771_v58  ;;  %v2504_v58 = vld [vmem:[#allocation2 + $0x124] sm:$0xf]  ;;  %v1962_v41 = vld [vmem:[#allocation2 + $0x100] sm:$0xf]  ;;  %v2501_v42 = vld [vmem:[#allocation2 + $0x104] sm:$0xf0] }
  0x45   :  { %570 = vmatpush.bf16.msrb.mxu3 %v1838_v61  ;;  %556 = vmatpush.bf16.msrb.mxu2 %v1842_v5  ;;  %v1930_v61 = vor.u32 %v2477_v54, %v1929_v53  ;;  %v1983_v3 = vor.u32 %v2504_v58, %v1980_v59  ;;  %v1907_v5 = vld [vmem:[#allocation2 + $0x18] sm:$0xf0]  ;;  %v1829_v38 = vld [vmem:[%s2757_s0 + $0x4] sm:$0xf]  ;;  %v2531_v44 = vld [vmem:[#allocation2 + $0x74] sm:$0xf0]  ;;  %v1963_v54 = vor.u32 %v2501_v42, %v1962_v41 }
  0x46   :  { %384 = vmatpush.bf16.msrb.mxu0 %v1775_v6  ;;  %v2502_v6 = vld [vmem:[#allocation2 + $0x114] sm:$0xf]  ;;  %v1910_v12 = vor.u32 %v2470_v4, %v1907_v5  ;;  %v1897_v45 = vld [vmem:[#allocation2] sm:$0xf]  ;;  %v2469_v46 = vld [vmem:[#allocation2 + $0x4] sm:$0xf0] }
  0x47   :  { %399 = vmatmul.bf16.vlgmr.msrb.gmra.mxu1 %v2692_v1  ;;  %v1975_v16 = vor.u32 %v2502_v6, %v1972_v7  ;;  %v1959_v47 = vld [vmem:[%s2757_s0 + $0x8] sm:$0xf]  ;;  %v2547_v50 = vld [vmem:[#allocation2 + $0xf4] sm:$0xf0]  ;;  %v2072_v53 = vld [vmem:[#allocation2 + $0xd8] sm:$0xf0]  ;;  %v1898_v58 = vor.u32 %v2469_v46, %v1897_v45 }
  0x48   :  { %669 = vmatpush.bf16.msra.mxu1 %v1958_v62  ;;  %571 = vmatmul.bf16.vlgmr.msrb.gmra.mxu3 %v1830_v14  ;;  %v1986_v62 = vld [vmem:[#allocation2 + $0x130] sm:$0xf]  ;;  %v2524_v4 = vld [vmem:[#allocation2 + $0x44] sm:$0xf]  ;;  %v2128_v5 = vld [vmem:[#allocation2 + $0x48] sm:$0xf0] }
  0x49   :  { %793 = vmatpush.bf16.msra.mxu3 %v2023_v0  ;;  %557 = vmatpush.bf16.msrb.mxu2 %v1834_v20  ;;  %v1918_v0 = vor.u32 %v2472_v56, %v1915_v57  ;;  %v1987_v8 = vor.u32 %v2507_v63, %v1986_v62  ;;  %v2546_v20 = vld [vmem:[#allocation2 + $0xf4] sm:$0xf]  ;;  %v2136_v56 = vld [vmem:[#allocation2 + $0x58] sm:$0xf0]  ;;  %v2078_v63 = vld [vmem:[#allocation2 + $0xe0] sm:$0xf] }
  0x4a   :  { %385 = vmatpush.bf16.msrb.mxu0 %v1767_v24  ;;  %v2152_v24 = vld [vmem:[#allocation2 + $0x78] sm:$0xf0]  ;;  %v2091_v32 = vor.u32 %v2546_v20, %v2088_v21  ;;  %v2126_v20 = vld [vmem:[#allocation2 + $0x40] sm:$0xf]  ;;  %v2525_v21 = vld [vmem:[#allocation2 + $0x44] sm:$0xf0] }
  0x4b   :  { %v2155_v35 = vor.u32 %v2530_v22, %v2152_v24  ;;  %v2541_v24 = vld [vmem:[#allocation2 + $0xc4] sm:$0xf0]  ;;  %v2536_v26 = vld [vmem:[#allocation2 + $0xa4] sm:$0xf]  ;;  %v2048_v27 = vld [vmem:[#allocation2 + $0xa8] sm:$0xf0] }
  0x4c   :  { %670 = vmatpush.bf16.msra.mxu1 %v1950_v13  ;;  %558 = vmatmul.bf16.vlgmr.msrb.gmra.mxu2 %v1830_v14  ;;  %v2468_v13 = vld [vmem:[#allocation2 + $0x4] sm:$0xf]  ;;  %v1913_v14 = vld [vmem:[#allocation2 + $0x20] sm:$0xf]  ;;  %v2104_v41 = vld [vmem:[#allocation2 + $0x18] sm:$0xf0] }
  0x4d   :  { %794 = vmatpush.bf16.msra.mxu3 %v2015_v17  ;;  %780 = vmatpush.bf16.msra.mxu2 %v2019_v23  ;;  %v1899_v17 = vld [vmem:[#allocation2 + $0x8] sm:$0xf0]  ;;  %v1979_v23 = vor.u32 %v2505_v11, %v1978_v10  ;;  %v2070_v11 = vld [vmem:[#allocation2 + $0xd0] sm:$0xf]  ;;  %v2521_v45 = vld [vmem:[#allocation2 + $0x24] sm:$0xf0] }
  0x4e   :  { %656 = vmatpush.bf16.msra.mxu0 %v1954_v25  ;;  %v1914_v25 = vor.u32 %v2473_v15, %v1913_v14  ;;  %v2538_v14 = vld [vmem:[#allocation2 + $0xb4] sm:$0xf]  ;;  %v2056_v15 = vld [vmem:[#allocation2 + $0xb8] sm:$0xf0] }
  0x4f   :  { %386 = vmatmul.bf16.vlgmr.msrb.gmra.mxu0 %v2692_v1  ;;  %v1921_v1 = vld [vmem:[#allocation2 + $0x30] sm:$0xf]  ;;  %v2059_v22 = vor.u32 %v2538_v14, %v2056_v15  ;;  %v2027_v14 = vld [vmem:[%s2757_s0 + $0x1c] sm:$0xf]  ;;  %v2030_v15 = vld [vmem:[#allocation2 + $0x80] sm:$0xf] }
  0x50   :  { %671 = vmatpush.bf16.msra.mxu1 %v1942_v28  ;;  %v1922_v9 = vor.u32 %v2475_v2, %v1921_v1  ;;  %v1902_v28 = vor.u32 %v2468_v13, %v1899_v17  ;;  %v2540_v2 = vld [vmem:[#allocation2 + $0xc4] sm:$0xf]  ;;  %v2131_v13 = vor.u32 %v2524_v4, %v2128_v5  ;;  %v2120_v17 = vld [vmem:[#allocation2 + $0x38] sm:$0xf0]  ;;  %v2209_v4 = vld [vmem:[#allocation2 + $0x168] sm:$0xf0] }
  0x51   :  { %795 = vmatpush.bf16.msra.mxu3 %v2007_v31  ;;  %781 = vmatpush.bf16.msra.mxu2 %v2011_v36  ;;  %v1967_v31 = vor.u32 %v2500_v18, %v1964_v19  ;;  %v2528_v36 = vld [vmem:[#allocation2 + $0x64] sm:$0xf] }
  0x52   :  { %657 = vmatpush.bf16.msra.mxu0 %v1946_v37  ;;  %v2144_v37 = vld [vmem:[#allocation2 + $0x68] sm:$0xf0] }
  0x53   :  { %v2147_v51 = vor.u32 %v2528_v36, %v2144_v37  ;;  %v2539_v36 = vld [vmem:[#allocation2 + $0xb4] sm:$0xf0] }
  0x54   :  { %672 = vmatpush.bf16.msra.mxu1 %v1934_v40  ;;  %v1906_v40 = vor.u32 %v2471_v30, %v1905_v29  ;;  %v2112_v29 = vld [vmem:[#allocation2 + $0x28] sm:$0xf0]  ;;  %v2127_v30 = vor.u32 %v2525_v21, %v2126_v20  ;;  %v2026_v20 = vld [vmem:[%s2757_s0 + $0x8] sm:$0xf] }
  0x55   :  { %796 = vmatpush.bf16.msra.mxu3 %v1999_v43  ;;  %782 = vmatpush.bf16.msra.mxu2 %v2003_v48  ;;  %v2150_v43 = vld [vmem:[#allocation2 + $0x70] sm:$0xf]  ;;  %v2083_v48 = vor.u32 %v2544_v33, %v2080_v34  ;;  %v2523_v33 = vld [vmem:[#allocation2 + $0x34] sm:$0xf0]  ;;  %v2051_v34 = vor.u32 %v2536_v26, %v2048_v27  ;;  %v2269_v26 = vld [vmem:[#allocation2 + $0xd8] sm:$0xf0] }
  0x56   :  { %658 = vmatpush.bf16.msra.mxu0 %v1938_v49  ;;  %v2086_v49 = vld [vmem:[#allocation2 + $0xf0] sm:$0xf]  ;;  %v2151_v57 = vor.u32 %v2531_v44, %v2150_v43  ;;  %v2110_v44 = vld [vmem:[#allocation2 + $0x20] sm:$0xf] }
  0x57   :  { %v2087_v59 = vor.u32 %v2547_v50, %v2086_v49  ;;  %v2537_v49 = vld [vmem:[#allocation2 + $0xa4] sm:$0xf0] }
  0x58   :  { %673 = vmatpush.bf16.msra.mxu1 %v1926_v52  ;;  %v2542_v52 = vld [vmem:[#allocation2 + $0xd4] sm:$0xf] }
  0x59   :  { %797 = vmatpush.bf16.msra.mxu3 %v1991_v55  ;;  %783 = vmatpush.bf16.msra.mxu2 %v1995_v60  ;;  %v2526_v55 = vld [vmem:[#allocation2 + $0x54] sm:$0xf]  ;;  %v2142_v60 = vld [vmem:[#allocation2 + $0x60] sm:$0xf]  ;;  %v2075_v62 = vor.u32 %v2542_v52, %v2072_v53  ;;  %v2516_v52 = vld [vmem:[#allocation2 + $0x4] sm:$0xf] }
  0x5a   :  { %659 = vmatpush.bf16.msra.mxu0 %v1930_v61  ;;  %v2529_v61 = vld [vmem:[#allocation2 + $0x64] sm:$0xf0]  ;;  %v2139_v1 = vor.u32 %v2526_v55, %v2136_v56  ;;  %v2096_v53 = vld [vmem:[#allocation2 + $0x8] sm:$0xf0]  ;;  %v2217_v55 = vld [vmem:[#allocation2 + $0x178] sm:$0xf0] }
  0x5b   :  { %v2143_v6 = vor.u32 %v2529_v61, %v2142_v60  ;;  %v2594_v56 = vld [vmem:[#allocation2 + $0xf4] sm:$0xf]  ;;  %v2102_v60 = vld [vmem:[#allocation2 + $0x10] sm:$0xf]  ;;  %v2519_v61 = vld [vmem:[#allocation2 + $0x14] sm:$0xf0] }
  0x5c   :  { %674 = vmatpush.bf16.msra.mxu1 %v1918_v0  ;;  %v2545_v0 = vld [vmem:[#allocation2 + $0xe4] sm:$0xf0] }
  0x5d   :  { %798 = vmatpush.bf16.msra.mxu3 %v1983_v3  ;;  %784 = vmatpush.bf16.msra.mxu2 %v1987_v8  ;;  %v2064_v3 = vld [vmem:[#allocation2 + $0xc8] sm:$0xf0]  ;;  %v2079_v7 = vor.u32 %v2545_v0, %v2078_v63  ;;  %v2134_v8 = vld [vmem:[#allocation2 + $0x50] sm:$0xf]  ;;  %v2535_v0 = vld [vmem:[#allocation2 + $0x94] sm:$0xf0] }
  0x5e   :  { %660 = vmatpush.bf16.msra.mxu0 %v1922_v9  ;;  %v2527_v9 = vld [vmem:[#allocation2 + $0x54] sm:$0xf0]  ;;  %v2067_v10 = vor.u32 %v2540_v2, %v2064_v3  ;;  %v2038_v63 = vld [vmem:[#allocation2 + $0x90] sm:$0xf]  ;;  %v2560_v3 = vld [vmem:[#allocation2 + $0x164] sm:$0xf] }
  0x5f   :  { %v2135_v18 = vor.u32 %v2527_v9, %v2134_v8  ;;  %v2103_v8 = vor.u32 %v2519_v61, %v2102_v60  ;;  %v2094_v9 = vld [vmem:[#allocation2] sm:$0xf]  ;;  %v2552_v60 = vld [vmem:[#allocation2 + $0x124] sm:$0xf]  ;;  %v2177_v61 = vld [vmem:[#allocation2 + $0x128] sm:$0xf0] }
  0x60   :  { %675 = vmatpush.bf16.msra.mxu1 %v1910_v12  ;;  %v2543_v12 = vld [vmem:[#allocation2 + $0xd4] sm:$0xf0] }
  0x61   :  { %799 = vmatpush.bf16.msra.mxu3 %v1975_v16  ;;  %785 = vmatpush.bf16.msra.mxu2 %v1979_v23  ;;  %v2522_v16 = vld [vmem:[#allocation2 + $0x34] sm:$0xf]  ;;  %v2071_v19 = vor.u32 %v2543_v12, %v2070_v11  ;;  %v2062_v23 = vld [vmem:[#allocation2 + $0xc0] sm:$0xf]  ;;  %v2517_v11 = vld [vmem:[#allocation2 + $0x4] sm:$0xf0] }
  0x62   :  { %661 = vmatpush.bf16.msra.mxu0 %v1914_v25  ;;  %v2123_v25 = vor.u32 %v2522_v16, %v2120_v17  ;;  %v2283_v12 = vld [vmem:[#allocation2 + $0xf0] sm:$0xf]  ;;  %v2533_v16 = vld [vmem:[#allocation2 + $0x84] sm:$0xf0]  ;;  %v2212_v17 = vor.u32 %v2560_v3, %v2209_v4  ;;  %v2587_v3 = vld [vmem:[#allocation2 + $0xb4] sm:$0xf0]  ;;  %v2180_v4 = vor.u32 %v2552_v60, %v2177_v61 }
  0x63   :  { %v2398_v60 = vld [vmem:[#allocation2 + $0x158] sm:$0xf0] }
  0x64   :  { %676 = vmatpush.bf16.msra.mxu1 %v1902_v28  ;;  %v2520_v28 = vld [vmem:[#allocation2 + $0x24] sm:$0xf] }
  0x65   :  { %800 = vmatpush.bf16.msra.mxu3 %v1967_v31  ;;  %786 = vmatpush.bf16.msra.mxu2 %v1971_v39  ;;  %v2063_v31 = vor.u32 %v2541_v24, %v2062_v23  ;;  %v2115_v37 = vor.u32 %v2520_v28, %v2112_v29  ;;  %v2040_v39 = vld [vmem:[#allocation2 + $0x98] sm:$0xf0]  ;;  %v2095_v24 = vor.u32 %v2517_v11, %v2094_v9 }
  0x66   :  { %662 = vmatpush.bf16.msra.mxu0 %v1906_v40  ;;  %v2518_v40 = vld [vmem:[#allocation2 + $0x14] sm:$0xf]  ;;  %v2201_v23 = vld [vmem:[#allocation2 + $0x158] sm:$0xf0]  ;;  %v2031_v28 = vor.u32 %v2533_v16, %v2030_v15  ;;  %v2585_v15 = vld [vmem:[#allocation2 + $0xa4] sm:$0xf0] }
  0x67   :  { %677 = vmatmul.bf16.vlgmr.msra.gmra.mxu1 %v1829_v38  ;;  %v2107_v50 = vor.u32 %v2518_v40, %v2104_v41  ;;  %v2169_v9 = vld [vmem:[#allocation2 + $0x118] sm:$0xf0] }
  0x68   :  { %961 = vmatpush.bf16.msrb.mxu1 %v2091_v32  ;;  %801 = vmatmul.bf16.vlgmr.msra.gmra.mxu3 %v1959_v47  ;;  %v2118_v32 = vld [vmem:[#allocation2 + $0x30] sm:$0xf]  ;;  %v2237_v11 = vld [vmem:[#allocation2 + $0x98] sm:$0xf0] }
  0x69   :  { %1067 = vmatpush.bf16.msrb.mxu3 %v2155_v35  ;;  %787 = vmatpush.bf16.msra.mxu2 %v1963_v54  ;;  %v2054_v35 = vld [vmem:[#allocation2 + $0xb0] sm:$0xf]  ;;  %v2119_v42 = vor.u32 %v2523_v33, %v2118_v32  ;;  %v2562_v54 = vld [vmem:[#allocation2 + $0x174] sm:$0xf]  ;;  %v2207_v33 = vld [vmem:[#allocation2 + $0x160] sm:$0xf] }
  0x6a   :  { %663 = vmatpush.bf16.msra.mxu0 %v1898_v58  ;;  %v2055_v43 = vor.u32 %v2539_v36, %v2054_v35  ;;  %v2285_v58 = vld [vmem:[#allocation2 + $0xf8] sm:$0xf0]  ;;  %v2220_v2 = vor.u32 %v2562_v54, %v2217_v55  ;;  %v2556_v36 = vld [vmem:[#allocation2 + $0x144] sm:$0xf]  ;;  %v2259_v54 = vld [vmem:[#allocation2 + $0xc0] sm:$0xf] }
  0x6b   :  { %v2288_v5 = vor.u32 %v2594_v56, %v2285_v58  ;;  %v2589_v55 = vld [vmem:[#allocation2 + $0xc4] sm:$0xf0] }
  0x6c   :  { %962 = vmatpush.bf16.msrb.mxu1 %v2083_v48  ;;  %788 = vmatmul.bf16.vlgmr.msra.gmra.mxu2 %v1959_v47  ;;  %v2532_v47 = vld [vmem:[#allocation2 + $0x84] sm:$0xf]  ;;  %v2046_v48 = vld [vmem:[#allocation2 + $0xa0] sm:$0xf]  ;;  %v2557_v58 = vld [vmem:[#allocation2 + $0x144] sm:$0xf0] }
  0x6d   :  { %1068 = vmatpush.bf16.msrb.mxu3 %v2147_v51  ;;  %1054 = vmatpush.bf16.msrb.mxu2 %v2151_v57  ;;  %v2032_v51 = vld [vmem:[#allocation2 + $0x88] sm:$0xf0]  ;;  %v2111_v57 = vor.u32 %v2521_v45, %v2110_v44  ;;  %v2199_v45 = vld [vmem:[#allocation2 + $0x150] sm:$0xf] }
  0x6e   :  { %948 = vmatpush.bf16.msrb.mxu0 %v2087_v59  ;;  %v2047_v59 = vor.u32 %v2537_v49, %v2046_v48  ;;  %v2554_v48 = vld [vmem:[#allocation2 + $0x134] sm:$0xf]  ;;  %v2185_v49 = vld [vmem:[#allocation2 + $0x138] sm:$0xf0] }
  0x6f   :  { %664 = vmatmul.bf16.vlgmr.msra.gmra.mxu0 %v1829_v38  ;;  %v2534_v38 = vld [vmem:[#allocation2 + $0x94] sm:$0xf]  ;;  %v2188_v56 = vor.u32 %v2554_v48, %v2185_v49  ;;  %v2611_v48 = vld [vmem:[#allocation2 + $0x174] sm:$0xf0]  ;;  %v2159_v49 = vld [vmem:[#allocation2 + $0x100] sm:$0xf] }
  0x70   :  { %963 = vmatpush.bf16.msrb.mxu1 %v2075_v62  ;;  %v2043_v46 = vor.u32 %v2534_v38, %v2040_v39  ;;  %v2035_v62 = vor.u32 %v2532_v47, %v2032_v51  ;;  %v2588_v38 = vld [vmem:[#allocation2 + $0xc4] sm:$0xf]  ;;  %v2261_v39 = vld [vmem:[#allocation2 + $0xc8] sm:$0xf0]  ;;  %v2253_v51 = vld [vmem:[#allocation2 + $0xb8] sm:$0xf0] }
  0x71   :  { %1069 = vmatpush.bf16.msrb.mxu3 %v2139_v1  ;;  %1055 = vmatpush.bf16.msrb.mxu2 %v2143_v6  ;;  %v2099_v1 = vor.u32 %v2516_v52, %v2096_v53  ;;  %v2592_v6 = vld [vmem:[#allocation2 + $0xe4] sm:$0xf]  ;;  %v2264_v47 = vor.u32 %v2588_v38, %v2261_v39  ;;  %v2714_v39 = vld [vmem:[%s2757_s0 + $0xc] sm:$0xf] }
  0x72   :  { %949 = vmatpush.bf16.msrb.mxu0 %v2079_v7  ;;  %v2277_v7 = vld [vmem:[#allocation2 + $0xe8] sm:$0xf0] }
  0x73   :  { %v2280_v21 = vor.u32 %v2592_v6, %v2277_v7  ;;  %v2555_v6 = vld [vmem:[#allocation2 + $0x134] sm:$0xf0] }
  0x74   :  { %964 = vmatpush.bf16.msrb.mxu1 %v2067_v10  ;;  %v2039_v10 = vor.u32 %v2535_v0, %v2038_v63  ;;  %v2245_v63 = vld [vmem:[#allocation2 + $0xa8] sm:$0xf0]  ;;  %v2260_v0 = vor.u32 %v2589_v55, %v2259_v54  ;;  %v2579_v54 = vld [vmem:[#allocation2 + $0x74] sm:$0xf0] }
  0x75   :  { %1070 = vmatpush.bf16.msrb.mxu3 %v2131_v13  ;;  %1056 = vmatpush.bf16.msrb.mxu2 %v2135_v18  ;;  %v2595_v13 = vld [vmem:[#allocation2 + $0xf4] sm:$0xf0]  ;;  %v2215_v18 = vld [vmem:[#allocation2 + $0x170] sm:$0xf] }
  0x76   :  { %950 = vmatpush.bf16.msrb.mxu0 %v2071_v19  ;;  %v2563_v19 = vld [vmem:[#allocation2 + $0x174] sm:$0xf0]  ;;  %v2284_v27 = vor.u32 %v2595_v13, %v2283_v12 }
  0x77   :  { %v2216_v29 = vor.u32 %v2563_v19, %v2215_v18  ;;  %v2175_v18 = vld [vmem:[#allocation2 + $0x120] sm:$0xf]  ;;  %v2553_v19 = vld [vmem:[#allocation2 + $0x124] sm:$0xf0] }
  0x78   :  { %965 = vmatpush.bf16.msrb.mxu1 %v2059_v22  ;;  %v2558_v22 = vld [vmem:[#allocation2 + $0x154] sm:$0xf] }
  0x79   :  { %1071 = vmatpush.bf16.msrb.mxu3 %v2123_v25  ;;  %1057 = vmatpush.bf16.msrb.mxu2 %v2127_v30  ;;  %v2590_v25 = vld [vmem:[#allocation2 + $0xd4] sm:$0xf]  ;;  %v2275_v30 = vld [vmem:[#allocation2 + $0xe0] sm:$0xf]  ;;  %v2204_v32 = vor.u32 %v2558_v22, %v2201_v23  ;;  %v2580_v22 = vld [vmem:[#allocation2 + $0x84] sm:$0xf] }
  0x7a   :  { %951 = vmatpush.bf16.msrb.mxu0 %v2063_v31  ;;  %v2593_v31 = vld [vmem:[#allocation2 + $0xe4] sm:$0xf0]  ;;  %v2272_v35 = vor.u32 %v2590_v25, %v2269_v26  ;;  %v2229_v23 = vld [vmem:[#allocation2 + $0x88] sm:$0xf0]  ;;  %v2349_v25 = vld [vmem:[#allocation2 + $0x78] sm:$0xf0] }
  0x7b   :  { %v2276_v40 = vor.u32 %v2593_v31, %v2275_v30  ;;  %v2610_v26 = vld [vmem:[#allocation2 + $0x174] sm:$0xf]  ;;  %v2235_v30 = vld [vmem:[#allocation2 + $0x90] sm:$0xf]  ;;  %v2583_v31 = vld [vmem:[#allocation2 + $0x94] sm:$0xf0] }
  0x7c   :  { %966 = vmatpush.bf16.msrb.mxu1 %v2051_v34  ;;  %v2561_v34 = vld [vmem:[#allocation2 + $0x164] sm:$0xf0] }
  0x7d   :  { %1072 = vmatpush.bf16.msrb.mxu3 %v2115_v37  ;;  %1058 = vmatpush.bf16.msrb.mxu2 %v2119_v42  ;;  %v2193_v37 = vld [vmem:[#allocation2 + $0x148] sm:$0xf0]  ;;  %v2208_v41 = vor.u32 %v2561_v34, %v2207_v33  ;;  %v2267_v42 = vld [vmem:[#allocation2 + $0xd0] sm:$0xf]  ;;  %v2551_v34 = vld [vmem:[#allocation2 + $0x114] sm:$0xf0] }
  0x7e   :  { %952 = vmatpush.bf16.msrb.mxu0 %v2055_v43  ;;  %v2591_v43 = vld [vmem:[#allocation2 + $0xd4] sm:$0xf0]  ;;  %v2196_v44 = vor.u32 %v2556_v36, %v2193_v37  ;;  %v2167_v33 = vld [vmem:[#allocation2 + $0x110] sm:$0xf]  ;;  %v2576_v37 = vld [vmem:[#allocation2 + $0x64] sm:$0xf] }
  0x7f   :  { %v2268_v52 = vor.u32 %v2591_v43, %v2267_v42  ;;  %v2406_v42 = vld [vmem:[#allocation2 + $0x168] sm:$0xf0]  ;;  %v2236_v43 = vor.u32 %v2583_v31, %v2235_v30  ;;  %v2568_v31 = vld [vmem:[#allocation2 + $0x24] sm:$0xf] }
  0x80   :  { %967 = vmatpush.bf16.msrb.mxu1 %v2043_v46  ;;  %v2559_v46 = vld [vmem:[#allocation2 + $0x154] sm:$0xf0] }
  0x81   :  { %1073 = vmatpush.bf16.msrb.mxu3 %v2107_v50  ;;  %1059 = vmatpush.bf16.msrb.mxu2 %v2111_v57  ;;  %v2586_v50 = vld [vmem:[#allocation2 + $0xb4] sm:$0xf]  ;;  %v2200_v53 = vor.u32 %v2559_v46, %v2199_v45  ;;  %v2191_v57 = vld [vmem:[#allocation2 + $0x140] sm:$0xf]  ;;  %v2581_v46 = vld [vmem:[#allocation2 + $0x84] sm:$0xf0] }
  0x82   :  { %953 = vmatpush.bf16.msrb.mxu0 %v2047_v59  ;;  %v2256_v59 = vor.u32 %v2586_v50, %v2253_v51  ;;  %v2227_v45 = vld [vmem:[#allocation2 + $0x80] sm:$0xf]  ;;  %v2549_v50 = vld [vmem:[#allocation2 + $0x104] sm:$0xf0] }
  0x84   :  { %968 = vmatpush.bf16.msrb.mxu1 %v2035_v62  ;;  %v2584_v62 = vld [vmem:[#allocation2 + $0xa4] sm:$0xf] }
  0x85   :  { %1074 = vmatpush.bf16.msrb.mxu3 %v2099_v1  ;;  %1060 = vmatpush.bf16.msrb.mxu2 %v2103_v8  ;;  %v2192_v1 = vor.u32 %v2557_v58, %v2191_v57  ;;  %v2248_v7 = vor.u32 %v2584_v62, %v2245_v63  ;;  %v2550_v8 = vld [vmem:[#allocation2 + $0x114] sm:$0xf]  ;;  %v2333_v57 = vld [vmem:[#allocation2 + $0x58] sm:$0xf0]  ;;  %v2228_v58 = vor.u32 %v2581_v46, %v2227_v45 }
  0x86   :  { %954 = vmatpush.bf16.msrb.mxu0 %v2039_v10  ;;  %v2582_v10 = vld [vmem:[#allocation2 + $0x94] sm:$0xf]  ;;  %v2172_v16 = vor.u32 %v2550_v8, %v2169_v9  ;;  %v2160_v62 = vor.u32 %v2549_v50, %v2159_v49  ;;  %v2604_v8 = vld [vmem:[#allocation2 + $0x144] sm:$0xf]  ;;  %v2390_v9 = vld [vmem:[#allocation2 + $0x148] sm:$0xf0] }
  0x87   :  { %969 = vmatmul.bf16.vlgmr.msrb.gmra.mxu1 %v2027_v14  ;;  %v2598_v45 = vld [vmem:[#allocation2 + $0x114] sm:$0xf]  ;;  %v2366_v46 = vld [vmem:[#allocation2 + $0x118] sm:$0xf0] }
  0x88   :  { %1191 = vmatpush.bf16.msra.mxu1 %v2220_v2  ;;  %1075 = vmatmul.bf16.vlgmr.msrb.gmra.mxu3 %v2026_v20  ;;  %v2251_v2 = vld [vmem:[#allocation2 + $0xb0] sm:$0xf] }
  0x89   :  { %1359 = vmatpush.bf16.msra.mxu3 %v2288_v5  ;;  %1061 = vmatpush.bf16.msrb.mxu2 %v2095_v24  ;;  %v2183_v5 = vld [vmem:[#allocation2 + $0x130] sm:$0xf]  ;;  %v2252_v12 = vor.u32 %v2587_v3, %v2251_v2  ;;  %v2578_v24 = vld [vmem:[#allocation2 + $0x74] sm:$0xf]  ;;  %v2339_v3 = vld [vmem:[#allocation2 + $0x60] sm:$0xf] }
  0x8a   :  { %955 = vmatpush.bf16.msrb.mxu0 %v2031_v28  ;;  %v2184_v13 = vor.u32 %v2555_v6, %v2183_v5  ;;  %v2414_v28 = vld [vmem:[#allocation2 + $0x178] sm:$0xf0]  ;;  %v2352_v36 = vor.u32 %v2578_v24, %v2349_v25  ;;  %v2572_v6 = vld [vmem:[#allocation2 + $0x44] sm:$0xf]  ;;  %v2388_v25 = vld [vmem:[#allocation2 + $0x140] sm:$0xf] }
  0x8b   :  { %v2417_v38 = vor.u32 %v2610_v26, %v2414_v28  ;;  %v2605_v26 = vld [vmem:[#allocation2 + $0x144] sm:$0xf0]  ;;  %v2323_v28 = vld [vmem:[#allocation2 + $0x40] sm:$0xf] }
  0x8c   :  { %1192 = vmatpush.bf16.msra.mxu1 %v2212_v17  ;;  %1062 = vmatmul.bf16.vlgmr.msrb.gmra.mxu2 %v2026_v20  ;;  %v2548_v17 = vld [vmem:[#allocation2 + $0x104] sm:$0xf]  ;;  %v2240_v20 = vor.u32 %v2582_v10, %v2237_v11 }
  0x8d   :  { %1360 = vmatpush.bf16.msra.mxu3 %v2280_v21  ;;  %1346 = vmatpush.bf16.msra.mxu2 %v2284_v27  ;;  %v2161_v21 = vld [vmem:[#allocation2 + $0x108] sm:$0xf0] }
  0x8e   :  { %1178 = vmatpush.bf16.msra.mxu0 %v2216_v29  ;;  %v2176_v29 = vor.u32 %v2553_v19, %v2175_v18  ;;  %v2570_v18 = vld [vmem:[#allocation2 + $0x34] sm:$0xf]  ;;  %v2317_v19 = vld [vmem:[#allocation2 + $0x38] sm:$0xf0] }
  0x8f   :  { %956 = vmatmul.bf16.vlgmr.msrb.gmra.mxu0 %v2027_v14  ;;  %v2243_v14 = vld [vmem:[#allocation2 + $0xa0] sm:$0xf] }
  0x90   :  { %1193 = vmatpush.bf16.msra.mxu1 %v2204_v32  ;;  %v2244_v27 = vor.u32 %v2585_v15, %v2243_v14  ;;  %v2164_v32 = vor.u32 %v2548_v17, %v2161_v21  ;;  %v2331_v15 = vld [vmem:[#allocation2 + $0x50] sm:$0xf]  ;;  %v2393_v17 = vor.u32 %v2604_v8, %v2390_v9  ;;  %v2382_v21 = vld [vmem:[#allocation2 + $0x138] sm:$0xf0] }
  0x91   :  { %1361 = vmatpush.bf16.msra.mxu3 %v2272_v35  ;;  %1347 = vmatpush.bf16.msra.mxu2 %v2276_v40  ;;  %v2232_v35 = vor.u32 %v2580_v22, %v2229_v23  ;;  %v2341_v40 = vld [vmem:[#allocation2 + $0x68] sm:$0xf0] }
  0x92   :  { %1179 = vmatpush.bf16.msra.mxu0 %v2208_v41  ;;  %v2608_v41 = vld [vmem:[#allocation2 + $0x164] sm:$0xf]  ;;  %v2344_v51 = vor.u32 %v2576_v37, %v2341_v40  ;;  %v2380_v37 = vld [vmem:[#allocation2 + $0x130] sm:$0xf] }
  0x93   :  { %v2409_v55 = vor.u32 %v2608_v41, %v2406_v42  ;;  %v2315_v40 = vld [vmem:[#allocation2 + $0x30] sm:$0xf]  ;;  %v2571_v41 = vld [vmem:[#allocation2 + $0x34] sm:$0xf0] }
  0x94   :  { %1194 = vmatpush.bf16.msra.mxu1 %v2196_v44  ;;  %v2168_v44 = vor.u32 %v2551_v34, %v2167_v33  ;;  %v2600_v33 = vld [vmem:[#allocation2 + $0x124] sm:$0xf]  ;;  %v2374_v34 = vld [vmem:[#allocation2 + $0x128] sm:$0xf0]  ;;  %v2316_v50 = vor.u32 %v2571_v41, %v2315_v40 }
  0x95   :  { %1362 = vmatpush.bf16.msra.mxu3 %v2264_v47  ;;  %1348 = vmatpush.bf16.msra.mxu2 %v2268_v52  ;;  %v2412_v47 = vld [vmem:[#allocation2 + $0x170] sm:$0xf]  ;;  %v2224_v52 = vld [vmem:[%s2757_s0 + $0x20] sm:$0xf]  ;;  %v2377_v42 = vor.u32 %v2600_v33, %v2374_v34 }
  0x96   :  { %1180 = vmatpush.bf16.msra.mxu0 %v2200_v53  ;;  %v2347_v53 = vld [vmem:[#allocation2 + $0x70] sm:$0xf]  ;;  %v2413_v61 = vor.u32 %v2611_v48, %v2412_v47 }
  0x97   :  { %v2348_v63 = vor.u32 %v2579_v54, %v2347_v53  ;;  %v2307_v54 = vld [vmem:[#allocation2 + $0x20] sm:$0xf] }
  0x98   :  { %1195 = vmatpush.bf16.msra.mxu1 %v2188_v56  ;;  %v2574_v56 = vld [vmem:[#allocation2 + $0x54] sm:$0xf] }
  0x99   :  { %1363 = vmatpush.bf16.msra.mxu3 %v2256_v59  ;;  %1349 = vmatpush.bf16.msra.mxu2 %v2260_v0  ;;  %v2606_v59 = vld [vmem:[#allocation2 + $0x154] sm:$0xf]  ;;  %v2404_v0 = vld [vmem:[#allocation2 + $0x160] sm:$0xf]  ;;  %v2336_v2 = vor.u32 %v2574_v56, %v2333_v57  ;;  %v2369_v56 = vor.u32 %v2598_v45, %v2366_v46  ;;  %v2564_v57 = vld [vmem:[#allocation2 + $0x4] sm:$0xf] }
  0x9a   :  { %1181 = vmatpush.bf16.msra.mxu0 %v2192_v1  ;;  %v2609_v1 = vld [vmem:[#allocation2 + $0x164] sm:$0xf0]  ;;  %v2401_v5 = vor.u32 %v2606_v59, %v2398_v60  ;;  %v2596_v60 = vld [vmem:[#allocation2 + $0x104] sm:$0xf] }
  0x9b   :  { %v2405_v10 = vor.u32 %v2609_v1, %v2404_v0  ;;  %v2364_v0 = vld [vmem:[#allocation2 + $0x110] sm:$0xf]  ;;  %v2599_v1 = vld [vmem:[#allocation2 + $0x114] sm:$0xf0] }
  0x9c   :  { %1196 = vmatpush.bf16.msra.mxu1 %v2180_v4  ;;  %v2577_v4 = vld [vmem:[#allocation2 + $0x64] sm:$0xf0] }
  0x9d   :  { %1364 = vmatpush.bf16.msra.mxu3 %v2248_v7  ;;  %1350 = vmatpush.bf16.msra.mxu2 %v2252_v12  ;;  %v2325_v7 = vld [vmem:[#allocation2 + $0x48] sm:$0xf0]  ;;  %v2340_v11 = vor.u32 %v2577_v4, %v2339_v3  ;;  %v2396_v12 = vld [vmem:[#allocation2 + $0x150] sm:$0xf]  ;;  %v2567_v4 = vld [vmem:[#allocation2 + $0x14] sm:$0xf0] }
  0x9e   :  { %1182 = vmatpush.bf16.msra.mxu0 %v2184_v13  ;;  %v2607_v13 = vld [vmem:[#allocation2 + $0x154] sm:$0xf0]  ;;  %v2328_v14 = vor.u32 %v2572_v6, %v2325_v7  ;;  %v2299_v3 = vld [vmem:[#allocation2 + $0x10] sm:$0xf]  ;;  %v2365_v7 = vor.u32 %v2599_v1, %v2364_v0 }
  0x9f   :  { %v2397_v22 = vor.u32 %v2607_v13, %v2396_v12  ;;  %v2300_v9 = vor.u32 %v2567_v4, %v2299_v3  ;;  %v2223_v12 = vld [vmem:[%s2757_s0 + $0xc] sm:$0xf]  ;;  %v2291_v13 = vld [vmem:[#allocation2] sm:$0xf] }
  0xa0   :  { %1197 = vmatpush.bf16.msra.mxu1 %v2172_v16  ;;  %v2575_v16 = vld [vmem:[#allocation2 + $0x54] sm:$0xf0] }
  0xa1   :  { %1365 = vmatpush.bf16.msra.mxu3 %v2240_v20  ;;  %1351 = vmatpush.bf16.msra.mxu2 %v2244_v27  ;;  %v2602_v20 = vld [vmem:[#allocation2 + $0x134] sm:$0xf]  ;;  %v2332_v24 = vor.u32 %v2575_v16, %v2331_v15  ;;  %v2320_v27 = vor.u32 %v2570_v18, %v2317_v19  ;;  %v2353_v15 = vld [vmem:[%s2757_s0 + $0x10] sm:$0xf] }
  0xa2   :  { %1183 = vmatpush.bf16.msra.mxu0 %v2176_v29  ;;  %v2573_v29 = vld [vmem:[#allocation2 + $0x44] sm:$0xf0]  ;;  %v2385_v30 = vor.u32 %v2602_v20, %v2382_v21  ;;  %v30_v20 = vld [vmem:[%s2759_s2] sm:$0x3] }
  0xa3   :  { %v2736_v40 = vperm.slane %v30_v20, 0 }
  0xa4   :  { %1198 = vmatpush.bf16.msra.mxu1 %v2164_v32  ;;  %v2721_v23 = vpop.f32.mrf.mxu1  ;;  %v2309_v32 = vld [vmem:[#allocation2 + $0x28] sm:$0xf0] }
  0xa5   :  { %1366 = vmatpush.bf16.msra.mxu3 %v2232_v35  ;;  %1352 = vmatpush.bf16.msra.mxu2 %v2236_v43  ;;  %v2389_v35 = vor.u32 %v2605_v26, %v2388_v25  ;;  %v2566_v43 = vld [vmem:[#allocation2 + $0x14] sm:$0xf] }
  0xa6   :  { %1184 = vmatpush.bf16.msra.mxu0 %v2168_v44  ;;  %v2301_v44 = vld [vmem:[#allocation2 + $0x18] sm:$0xf0] }
  0xa7   :  { %1199 = vmatmul.bf16.vlgmr.msra.gmra.mxu1 %v2714_v39  ;;  %v2304_v53 = vor.u32 %v2566_v43, %v2301_v44 }
  0xa8   :  { %1465 = vmatpush.bf16.msrb.mxu1 %v2352_v36  ;;  %1367 = vmatmul.bf16.vlgmr.msra.gmra.mxu3 %v2224_v52  ;;  %v2324_v36 = vor.u32 %v2573_v29, %v2323_v28 }
  0xa9   :  { %1589 = vmatpush.bf16.msrb.mxu3 %v2417_v38  ;;  %1353 = vmatpush.bf16.msra.mxu2 %v2228_v58  ;;  %v2603_v38 = vld [vmem:[#allocation2 + $0x134] sm:$0xf0]  ;;  %v2293_v58 = vld [vmem:[#allocation2 + $0x8] sm:$0xf0] }
  0xaa   :  { %1185 = vmatpush.bf16.msra.mxu0 %v2160_v62  ;;  %v2381_v47 = vor.u32 %v2603_v38, %v2380_v37 }
  0xab   :  { %v275_v48 = vpop.f32.mrf.mxu3 }
  0xac   :  { %1466 = vmatpush.bf16.msrb.mxu1 %v2344_v51  ;;  %1354 = vmatmul.bf16.vlgmr.msra.gmra.mxu2 %v2224_v52  ;;  %v171_v49 = vpop.f32.mrf.mxu1  ;;  %v2372_v51 = vld [vmem:[#allocation2 + $0x120] sm:$0xf]  ;;  %v2601_v52 = vld [vmem:[#allocation2 + $0x124] sm:$0xf0]  ;;  %v156_v59 = vpop.f32.mrf.mxu0  ;;  %v276_v21 = vadd.f32 %v275_v48, %v2721_v23 }
  0xad   :  { %1590 = vmatpush.bf16.msrb.mxu3 %v2409_v55  ;;  %1576 = vmatpush.bf16.msrb.mxu2 %v2413_v61  ;;  %v2569_v55 = vld [vmem:[#allocation2 + $0x24] sm:$0xf0]  ;;  %v2358_v61 = vld [vmem:[#allocation2 + $0x108] sm:$0xf0]  ;;  %v2373_v62 = vor.u32 %v2601_v52, %v2372_v51 }
  0xae   :  { %1452 = vmatpush.bf16.msrb.mxu0 %v2348_v63  ;;  %v2308_v63 = vor.u32 %v2569_v55, %v2307_v54  ;;  %v2361_v6 = vor.u32 %v2596_v60, %v2358_v61 }
  0xaf   :  { %1186 = vmatmul.bf16.vlgmr.msra.gmra.mxu0 %v2714_v39  ;;  %v2312_v39 = vor.u32 %v2568_v31, %v2309_v32 }
  0xb0   :  { %1467 = vmatpush.bf16.msrb.mxu1 %v2336_v2  ;;  %v2296_v2 = vor.u32 %v2564_v57, %v2293_v58 }
  0xb1   :  { %1591 = vmatpush.bf16.msrb.mxu3 %v2401_v5  ;;  %1577 = vmatpush.bf16.msrb.mxu2 %v2405_v10  ;;  %v262_v5 = vpop.f32.mrf.mxu2  ;;  %v2356_v10 = vld [vmem:[#allocation2 + $0x100] sm:$0xf] }
  0xb2   :  { %1453 = vmatpush.bf16.msrb.mxu0 %v2340_v11  ;;  %v2597_v11 = vld [vmem:[#allocation2 + $0x104] sm:$0xf0]  ;;  %v263_v23 = vadd.f32 %v262_v5, %v156_v59 }
  0xb3   :  { %v277_v8 = vpop.f32.mrf.mxu3 }
  0xb4   :  { %1468 = vmatpush.bf16.msrb.mxu1 %v2328_v14  ;;  %v2565_v14 = vld [vmem:[#allocation2 + $0x4] sm:$0xf0]  ;;  %v158_v16 = vpop.f32.mrf.mxu0 }
  0xb5   :  { %1592 = vmatpush.bf16.msrb.mxu3 %v2393_v17  ;;  %1578 = vmatpush.bf16.msrb.mxu2 %v2397_v22  ;;  %v2357_v17 = vor.u32 %v2597_v11, %v2356_v10  ;;  %v2292_v18 = vor.u32 %v2565_v14, %v2291_v13  ;;  %v2733_v22 = vperm.slane %v30_v20, 1 }
  0xb6   :  { %1454 = vmatpush.bf16.msrb.mxu0 %v2332_v24 }
  0xb8   :  { %1469 = vmatpush.bf16.msrb.mxu1 %v2320_v27 }
  0xb9   :  { %1593 = vmatpush.bf16.msrb.mxu3 %v2385_v30  ;;  %1579 = vmatpush.bf16.msrb.mxu2 %v2389_v35  ;;  %v264_v19 = vpop.f32.mrf.mxu2 }
  0xba   :  { %1455 = vmatpush.bf16.msrb.mxu0 %v2324_v36 }
  0xbc   :  { %1470 = vmatpush.bf16.msrb.mxu1 %v2312_v39 }
  0xbd   :  { %1594 = vmatpush.bf16.msrb.mxu3 %v2377_v42  ;;  %1580 = vmatpush.bf16.msrb.mxu2 %v2381_v47 }
  0xbe   :  { %1456 = vmatpush.bf16.msrb.mxu0 %v2316_v50 }
  0xc0   :  { %1471 = vmatpush.bf16.msrb.mxu1 %v2304_v53 }
  0xc1   :  { %1595 = vmatpush.bf16.msrb.mxu3 %v2369_v56  ;;  %1581 = vmatpush.bf16.msrb.mxu2 %v2373_v62 }
  0xc2   :  { %1457 = vmatpush.bf16.msrb.mxu0 %v2308_v63 }
  0xc4   :  { %1472 = vmatpush.bf16.msrb.mxu1 %v2296_v2  ;;  %v400_v24 = vpop.f32.mrf.mxu1 }
  0xc5   :  { %1596 = vmatpush.bf16.msrb.mxu3 %v2361_v6  ;;  %1582 = vmatpush.bf16.msrb.mxu2 %v2365_v7  ;;  %v405_v25 = vadd.f32 %v400_v24, %v276_v21 }
  0xc6   :  { %1458 = vmatpush.bf16.msrb.mxu0 %v2300_v9 }
  0xc7   :  { %1473 = vmatmul.bf16.vlgmr.msrb.gmra.mxu1 %v2223_v12  ;;  %v412_v26 = vadd.f32 %v2733_v22, %v405_v25 }
  0xc8   :  { %1597 = vmatmul.bf16.vlgmr.msrb.gmra.mxu3 %v2353_v15 }
  0xc9   :  { %1583 = vmatpush.bf16.msrb.mxu2 %v2357_v17  ;;  %v1828_v27 = vmul.f32 -1.442695, %v412_v26 }
  0xca   :  { %1459 = vmatpush.bf16.msrb.mxu0 %v2292_v18 }
  0xcb   :  { %2615 = vpow2.f32 %v1828_v27  ;;  %v572_v28 = vpop.f32.mrf.mxu3 }
  0xcc   :  { %1584 = vmatmul.bf16.vlgmr.msrb.gmra.mxu2 %v2353_v15  ;;  %v387_v29 = vpop.f32.mrf.mxu0  ;;  %v402_v30 = vpop.f32.mrf.mxu1 }
  0xcd   :  { %1460 = vmatmul.bf16.vlgmr.msrb.gmra.mxu0 %v2223_v12  ;;  %v404_v39 = vadd.f32 %v387_v29, %v263_v23 }
  0xcf   :  { %v559_v35 = vpop.f32.mrf.mxu2  ;;  %v411_v45 = vadd.f32 %v2736_v40, %v404_v39 }
  0xd1   :  { %v2616_v31 = vpop.eup %2615 }
  0xd2   :  { %v416_v32 = vadd.f32 1.0, %v2616_v31 }
  0xd3   :  { %v574_v33 = vpop.f32.mrf.mxu3 }
  0xd4   :  { %v389_v34 = vpop.f32.mrf.mxu0  ;;  %2617 = vrcp.f32 %v416_v32  ;;  %v428_v42 = vand.u32 2147483648, %v416_v32  ;;  %v426_v44 = vand.u32 2147483647, %v416_v32  ;;  %vm422_vm1 = vweird.f32 %v416_v32 }
  0xd6   :  { %v429_v48 = vor.u32 1.1754944e-38, %v428_v42  ;;  %vm427_vm3 = vcmp.eq.f32.partialorder %v426_v44, 8.507059e+37 }
  0xd7   :  { %v561_v38 = vpop.f32.mrf.mxu2 }
  0xda   :  { %v2618_v36 = vpop.eup %2617 }
  0xdb   :  { %v418_v37 = vmul.f32 %v2618_v36, %v416_v32  ;;  %vm423_vm0 = vweird.f32 %v2618_v36 }
  0xdc   :  { %vm424_vm2 = vmor %vm422_vm1, %vm423_vm0 }
  0xdd   :  { %v419_v41 = vsub.f32 1.0, %v418_v37 }
  0xdf   :  { %v420_v43 = vmul.f32 %v2618_v36, %v419_v41 }
  0xe1   :  { %v421_v46 = vadd.f32 %v2618_v36, %v420_v43 }
  0xe3   :  { %v425_v49 = vsel %vm424_vm2, %v2618_v36, %v421_v46 }
  0xe4   :  { %v678_v47 = vpop.f32.mrf.mxu1  ;;  %v430_v50 = vsel %vm427_vm3, %v429_v48, %v425_v49 }
  0xe5   :  { %v432_v51 = vmul.f32 %v430_v50, %v411_v45  ;;  %v679_v52 = vadd.f32 %v678_v47, %v572_v28 }
  0xe7   :  { %v433_v53 = vpack.c.bf16 %v432_v51, %v432_v51 }
  0xe9   :  { %434 = vst [vmem:[%s2760_s3] sm:$0xf] %v433_v53 }
  0xeb   :  { %v802_v54 = vpop.f32.mrf.mxu3 }
  0xec   :  { %v665_v55 = vpop.f32.mrf.mxu0  ;;  %v807_v56 = vadd.f32 %v802_v54, %v679_v52  ;;  %v680_v57 = vpop.f32.mrf.mxu1 }
  0xed   :  { %v666_v2 = vadd.f32 %v665_v55, %v559_v35 }
  0xee   :  { %v809_v58 = vadd.f32 %v807_v56, %v2733_v22 }
  0xef   :  { %v789_v60 = vpop.f32.mrf.mxu2 }
  0xf0   :  { %v2024_v59 = vmul.f32 -1.442695, %v809_v58  ;;  %v806_v6 = vadd.f32 %v789_v60, %v666_v2 }
  0xf2   :  { %2619 = vpow2.f32 %v2024_v59  ;;  %v808_v11 = vadd.f32 %v806_v6, %v2736_v40 }
  0xf3   :  { %v804_v61 = vpop.f32.mrf.mxu3 }
  0xf4   :  { %v667_v62 = vpop.f32.mrf.mxu0 }
  0xf7   :  { %v791_v0 = vpop.f32.mrf.mxu2 }
  0xf8   :  { %v2620_v63 = vpop.eup %2619 }
  0xf9   :  { %v813_v1 = vadd.f32 1.0, %v2620_v63 }
  0xfb   :  { %2621 = vrcp.f32 %v813_v1  ;;  %v825_v8 = vand.u32 2147483648, %v813_v1  ;;  %v823_v10 = vand.u32 2147483647, %v813_v1  ;;  %vm819_vm5 = vweird.f32 %v813_v1 }
  0xfd   :  { %v826_v14 = vor.u32 1.1754944e-38, %v825_v8  ;;  %vm824_vm7 = vcmp.eq.f32.partialorder %v823_v10, 8.507059e+37 }
 0x101   :  { %v2622_v3 = vpop.eup %2621 }
 0x102   :  { %v815_v5 = vmul.f32 %v2622_v3, %v813_v1  ;;  %vm820_vm4 = vweird.f32 %v2622_v3 }
 0x103   :  { %vm821_vm6 = vmor %vm819_vm5, %vm820_vm4 }
 0x104   :  { %v970_v4 = vpop.f32.mrf.mxu1  ;;  %v816_v7 = vsub.f32 1.0, %v815_v5 }
 0x106   :  { %v817_v9 = vmul.f32 %v2622_v3, %v816_v7 }
 0x108   :  { %v818_v12 = vadd.f32 %v2622_v3, %v817_v9 }
 0x10a   :  { %v822_v16 = vsel %vm821_vm6, %v2622_v3, %v818_v12 }
 0x10b   :  { %v1076_v13 = vpop.f32.mrf.mxu3  ;;  %v827_v17 = vsel %vm824_vm7, %v826_v14, %v822_v16 }
 0x10c   :  { %v972_v15 = vpop.f32.mrf.mxu1  ;;  %v957_v18 = vpop.f32.mrf.mxu0  ;;  %v829_v19 = vmul.f32 %v827_v17, %v808_v11  ;;  %v1077_v27 = vadd.f32 %v1076_v13, %v970_v4 }
 0x10e   :  { %v830_v20 = vpack.c.bf16 %v829_v19, %v829_v19 }
 0x10f   :  { %v1063_v21 = vpop.f32.mrf.mxu2 }
 0x110   :  { %2025 = vst [vmem:[%s2760_s3 + $0x4] sm:$0xf] %v830_v20  ;;  %v1064_v41 = vadd.f32 %v1063_v21, %v957_v18 }
 0x113   :  { %v1078_v24 = vpop.f32.mrf.mxu3 }
 0x114   :  { %v959_v25 = vpop.f32.mrf.mxu0 }
 0x117   :  { %v1065_v26 = vpop.f32.mrf.mxu2 }
 0x124   :  { %v1200_v28 = vpop.f32.mrf.mxu1 }
 0x125   :  { %v1205_v29 = vadd.f32 %v1200_v28, %v1077_v27 }
 0x127   :  { %v1207_v30 = vadd.f32 %v1205_v29, %v2733_v22 }
 0x129   :  { %v2221_v31 = vmul.f32 -1.442695, %v1207_v30 }
 0x12b   :  { %2623 = vpow2.f32 %v2221_v31  ;;  %v1368_v32 = vpop.f32.mrf.mxu3 }
 0x12c   :  { %v1187_v33 = vpop.f32.mrf.mxu0  ;;  %v1202_v34 = vpop.f32.mrf.mxu1 }
 0x12d   :  { %v1204_v44 = vadd.f32 %v1187_v33, %v1064_v41 }
 0x12f   :  { %v1355_v35 = vpop.f32.mrf.mxu2  ;;  %v1206_v49 = vadd.f32 %v1204_v44, %v2736_v40 }
 0x131   :  { %v2624_v23 = vpop.eup %2623 }
 0x132   :  { %v1211_v36 = vadd.f32 1.0, %v2624_v23 }
 0x133   :  { %v1370_v37 = vpop.f32.mrf.mxu3 }
 0x134   :  { %v1189_v38 = vpop.f32.mrf.mxu0  ;;  %2625 = vrcp.f32 %v1211_v36  ;;  %v1223_v46 = vand.u32 2147483648, %v1211_v36  ;;  %v1221_v48 = vand.u32 2147483647, %v1211_v36  ;;  %vm1217_vm9 = vweird.f32 %v1211_v36 }
 0x136   :  { %v1224_v52 = vor.u32 1.1754944e-38, %v1223_v46  ;;  %vm1222_vm11 = vcmp.eq.f32.partialorder %v1221_v48, 8.507059e+37 }
 0x137   :  { %v1357_v39 = vpop.f32.mrf.mxu2 }
 0x13a   :  { %v2626_v42 = vpop.eup %2625 }
 0x13b   :  { %v1213_v43 = vmul.f32 %v2626_v42, %v1211_v36  ;;  %vm1218_vm8 = vweird.f32 %v2626_v42 }
 0x13c   :  { %vm1219_vm10 = vmor %vm1217_vm9, %vm1218_vm8 }
 0x13d   :  { %v1214_v45 = vsub.f32 1.0, %v1213_v43 }
 0x13f   :  { %v1215_v47 = vmul.f32 %v2626_v42, %v1214_v45 }
 0x141   :  { %v1216_v50 = vadd.f32 %v2626_v42, %v1215_v47 }
 0x143   :  { %v1220_v53 = vsel %vm1219_vm10, %v2626_v42, %v1216_v50 }
 0x144   :  { %v1474_v51 = vpop.f32.mrf.mxu1  ;;  %v1225_v54 = vsel %vm1222_vm11, %v1224_v52, %v1220_v53 }
 0x145   :  { %v1227_v55 = vmul.f32 %v1225_v54, %v1206_v49  ;;  %v1475_v57 = vadd.f32 %v1474_v51, %v1368_v32 }
 0x147   :  { %v1228_v56 = vpack.c.bf16 %v1227_v55, %v1227_v55 }
 0x149   :  { %2222 = vst [vmem:[%s2760_s3 + $0x8] sm:$0xf] %v1228_v56 }
 0x14a   :  { %v1461_v59 = vpop.f32.mrf.mxu0 }
 0x14b   :  { %v1598_v58 = vpop.f32.mrf.mxu3  ;;  %v1462_v7 = vadd.f32 %v1461_v59, %v1355_v35 }
 0x14c   :  { %v1603_v60 = vadd.f32 %v1598_v58, %v1475_v57  ;;  %v1476_v61 = vpop.f32.mrf.mxu1 }
 0x14e   :  { %v1605_v62 = vadd.f32 %v1603_v60, %v2733_v22 }
 0x14f   :  { %v1585_v0 = vpop.f32.mrf.mxu2 }
 0x150   :  { %v2418_v63 = vmul.f32 -1.442695, %v1605_v62  ;;  %v1602_v11 = vadd.f32 %v1585_v0, %v1462_v7 }
 0x152   :  { %2627 = vpow2.f32 %v2418_v63  ;;  %v1463_v2 = vpop.f32.mrf.mxu0  ;;  %v1604_v15 = vadd.f32 %v1602_v11, %v2736_v40 }
 0x153   :  { %v1600_v1 = vpop.f32.mrf.mxu3 }
 0x157   :  { %v1587_v4 = vpop.f32.mrf.mxu2 }
 0x158   :  { %v2628_v3 = vpop.eup %2627 }
 0x159   :  { %v1609_v5 = vadd.f32 1.0, %v2628_v3 }
 0x15b   :  { %2629 = vrcp.f32 %v1609_v5  ;;  %v1621_v10 = vand.u32 2147483648, %v1609_v5  ;;  %v1619_v13 = vand.u32 2147483647, %v1609_v5  ;;  %vm1615_vm13 = vweird.f32 %v1609_v5 }
 0x15d   :  { %v1622_v22 = vor.u32 1.1754944e-38, %v1621_v10  ;;  %vm1620_vm15 = vcmp.eq.f32.partialorder %v1619_v13, 8.507059e+37 }
 0x161   :  { %v2630_v6 = vpop.eup %2629 }
 0x162   :  { %v1611_v8 = vmul.f32 %v2630_v6, %v1609_v5  ;;  %vm1616_vm12 = vweird.f32 %v2630_v6 }
 0x163   :  { %vm1617_vm14 = vmor %vm1615_vm13, %vm1616_vm12 }
 0x164   :  { %v1612_v9 = vsub.f32 1.0, %v1611_v8 }
 0x166   :  { %v1613_v12 = vmul.f32 %v2630_v6, %v1612_v9 }
 0x168   :  { %v1614_v14 = vadd.f32 %v2630_v6, %v1613_v12 }
 0x16a   :  { %v1618_v16 = vsel %vm1617_vm14, %v2630_v6, %v1614_v14 }
 0x16b   :  { %v1623_v17 = vsel %vm1620_vm15, %v1622_v22, %v1618_v16 }
 0x16c   :  { %v1625_v18 = vmul.f32 %v1623_v17, %v1604_v15 }
 0x16e   :  { %v1626_v19 = vpack.c.bf16 %v1625_v18, %v1625_v18 }
 0x170   :  { %2419 = vst [vmem:[%s2760_s3 + $0xc] sm:$0xf] %v1626_v19 }
 0x171   :  { %1633 = vsyncpa [#allocation3], 1 }

</bundles_post_ra>
